<compile_context>
chip_gen: v6e
topology: v6e:2x2x1
jax: 0.10.0
libtpu: 0.0.40
codegen_flags: <defaults>
</compile_context>

<pallas_src>
import jax
import jax.numpy as jnp
from jax.experimental import pallas as pl
from jax.experimental.pallas import tpu as pltpu


def _embed_kernel(ids_ref, tok_ref, pos_ref, out_ref):
    # ids_ref: VMEM (TS, 1) int32 — token ids for this (batch, seq-block)
    # tok_ref: VMEM (V, E)        — token-embedding table (constant index map)
    # pos_ref: VMEM (TS, E)       — positional rows for this seq block
    # out_ref: VMEM (TS, E)       — output tile
    ts, _ = out_ref.shape
    vocab = tok_ref.shape[0]

    # Vectorized gather via one-hot matmul on the MXU:
    #   rows[t, :] = tok_table[ids[t], :]
    vocab_iota = jax.lax.broadcasted_iota(jnp.int32, (ts, vocab), 1)
    one_hot = (ids_ref[...] == vocab_iota).astype(tok_ref.dtype)      # (TS, V)
    rows = jnp.dot(one_hot, tok_ref[...],
                   preferred_element_type=jnp.float32,
                   precision=jax.lax.Precision.HIGHEST)               # (TS, E)

    # Fused positional add, single full-vreg store of the whole tile.
    out_ref[...] = (rows + pos_ref[...]).astype(out_ref.dtype)


def transformer_embeddings(ids, tok_table, pos_table, *, block_tokens=128):
    B, S = ids.shape
    V, E = tok_table.shape
    Smax, E2 = pos_table.shape
    assert E == E2 and S <= Smax

    # Prefer a large token block (128); fall back to one block per row if S
    # isn't a multiple of it.
    ts = block_tokens if S % block_tokens == 0 else S
    assert S % ts == 0 and (ts % 8 == 0 or ts == S)
    # TODO(synk): mask/pad the tail block to support seq lens not divisible by block_tokens.

    # (B, S, 1) so each kernel block is a (TS, 1) sublane column of ids.
    ids3 = ids.astype(jnp.int32).reshape(B, S, 1)

    grid = (B, S // ts)
    return pl.pallas_call(
        _embed_kernel,
        out_shape=jax.ShapeDtypeStruct((B, S, E), tok_table.dtype),
        grid=grid,
        in_specs=[
            # token ids for this (batch, seq-block)
            pl.BlockSpec((pl.Squeezed(), ts, 1), lambda b, sb: (b, sb, 0)),
            # whole token-embedding table VMEM-resident; constant index map so
            # it is only fetched once across the grid.
            # TODO(synk): for large vocabularies keep the table in HBM
            # (memory_space=pl.ANY) and DMA-gather the TS needed rows per block
            # instead of making the full table VMEM-resident.
            pl.BlockSpec((V, E), lambda b, sb: (0, 0)),
            # positional rows matching this sequence block
            pl.BlockSpec((ts, E), lambda b, sb: (sb, 0)),
        ],
        out_specs=pl.BlockSpec((pl.Squeezed(), ts, E), lambda b, sb: (b, sb, 0)),
        compiler_params=pltpu.CompilerParams(
            # both axes produce independent output tiles -> shard across TCs (v7x)
            dimension_semantics=("parallel", "parallel"),
            # table-resident mode: raise the default scoped VMEM limit
            # (16 MiB v5e / 32 MiB v6e+v7x) while staying under v7x's 64 MiB.
            vmem_limit_bytes=48 * 1024 * 1024,
        ),
    )(ids3, tok_table, pos_table)


if __name__ == "__main__":
    # Small, deterministic setup consistent with the module's __init__.
    vocab_size, embed_dim, max_seq_len = 512, 128, 256
    batch, seq_len = 2, 256

    key = jax.random.PRNGKey(0)
    k_tok, k_pos, k_ids = jax.random.split(key, 3)

    # nn.Embedding default init is N(0, 1).
    tok_table = jax.random.normal(k_tok, (vocab_size, embed_dim), jnp.float32)
    pos_table = jax.random.normal(k_pos, (max_seq_len, embed_dim), jnp.float32)
    ids = jax.random.randint(k_ids, (batch, seq_len), 0, vocab_size, jnp.int32)

    out = transformer_embeddings(ids, tok_table, pos_table)
    out = jax.block_until_ready(out)

    # Pure-JAX reference of the PyTorch forward.
    ref = tok_table[ids] + pos_table[jnp.arange(seq_len)][None, :, :]
    assert out.shape == (batch, seq_len, embed_dim)
    assert jnp.allclose(out, ref, atol=1e-5, rtol=1e-5), float(jnp.max(jnp.abs(out - ref)))

    print("KERNEL_OK")
</pallas_src>

<mosaic_0001>
module attributes {stable_mosaic.version = 11 : i64} {
  func.func @_embed_kernel(%arg0: i32, %arg1: i32, %arg2: memref<1x128x1xi32, #tpu.memory_space<vmem>>, %arg3: memref<512x128xf32, #tpu.memory_space<vmem>>, %arg4: memref<128x128xf32, #tpu.memory_space<vmem>>, %arg5: memref<1x128x128xf32, #tpu.memory_space<vmem>>) attributes {dimension_semantics = [#tpu.dimension_semantics<parallel>, #tpu.dimension_semantics<parallel>], iteration_bounds = array<i64: 2, 2>, scalar_prefetch = 0 : i64, scratch_operands = 0 : i64, tpu.core_type = #tpu.core_type<tc>, window_params = [{transform_indices = @transform_0, window_bounds = array<i64: 1, 128, 1>}, {pipeline_mode = #tpu.pipeline_mode<synchronous>, transform_indices = @transform_1, window_bounds = array<i64: 512, 128>}, {transform_indices = @transform_2, window_bounds = array<i64: 128, 128>}, {transform_indices = @transform_3, window_bounds = array<i64: 1, 128, 128>}]} {
    %0 = tpu.iota {dimensions = array<i32: 1>} : vector<128x512xi32>
    %c0 = arith.constant 0 : index
    %c0_0 = arith.constant 0 : index
    %c0_1 = arith.constant 0 : index
    %1 = vector.load %arg2[%c0, %c0_0, %c0_1] : memref<1x128x1xi32, #tpu.memory_space<vmem>>, vector<1x128x1xi32>
    %2 = vector.shape_cast %1 : vector<1x128x1xi32> to vector<128x1xi32>
    %3 = vector.broadcast %2 : vector<128x1xi32> to vector<128x512xi32>
    %4 = arith.cmpi eq, %3, %0 : vector<128x512xi32>
    %5 = arith.extui %4 : vector<128x512xi1> to vector<128x512xi32>
    %6 = arith.sitofp %5 : vector<128x512xi32> to vector<128x512xf32>
    %c0_2 = arith.constant 0 : index
    %c0_3 = arith.constant 0 : index
    %7 = vector.load %arg3[%c0_2, %c0_3] : memref<512x128xf32, #tpu.memory_space<vmem>>, vector<512x128xf32>
    %cst = arith.constant dense<0.000000e+00> : vector<128x128xf32>
    %8 = tpu.matmul %6, %7, %cst {dimension_numbers = #tpu.dot_dimension_numbers<[1], [0], [0], [1], [0, 0, 1, 1], [], []>, precision = #tpu.contract_precision<fp32>} : vector<128x512xf32>, vector<512x128xf32>, vector<128x128xf32> -> vector<128x128xf32>
    %c0_4 = arith.constant 0 : index
    %c0_5 = arith.constant 0 : index
    %9 = vector.load %arg4[%c0_4, %c0_5] : memref<128x128xf32, #tpu.memory_space<vmem>>, vector<128x128xf32>
    %10 = arith.addf %8, %9 : vector<128x128xf32>
    %c0_6 = arith.constant 0 : index
    %c0_7 = arith.constant 0 : index
    %c0_8 = arith.constant 0 : index
    %11 = vector.load %arg5[%c0_6, %c0_7, %c0_8] : memref<1x128x128xf32, #tpu.memory_space<vmem>>, vector<1x128x128xf32>
    %12 = vector.shape_cast %11 : vector<1x128x128xf32> to vector<128x128xf32>
    %13 = vector.shape_cast %10 : vector<128x128xf32> to vector<1x128x128xf32>
    tpu.vector_store %arg5[%c0_6, %c0_7, %c0_8], %13 {strides = array<i32>} : memref<1x128x128xf32, #tpu.memory_space<vmem>>, vector<1x128x128xf32>,
    return
  }
  func.func @transform_0(%arg0: i32, %arg1: i32) -> (i32, i32, i32) {
    %c0_i32 = arith.constant 0 : i32
    %c0_i32_0 = arith.constant 0 : i32
    return %arg0, %arg1, %c0_i32 : i32, i32, i32
  }
  func.func @transform_1(%arg0: i32, %arg1: i32) -> (i32, i32) {
    %c0_i32 = arith.constant 0 : i32
    %c0_i32_0 = arith.constant 0 : i32
    %c0_i32_1 = arith.constant 0 : i32
    return %c0_i32, %c0_i32_0 : i32, i32
  }
  func.func @transform_2(%arg0: i32, %arg1: i32) -> (i32, i32) {
    %c0_i32 = arith.constant 0 : i32
    %c0_i32_0 = arith.constant 0 : i32
    return %arg1, %c0_i32 : i32, i32
  }
  func.func @transform_3(%arg0: i32, %arg1: i32) -> (i32, i32, i32) {
    %c0_i32 = arith.constant 0 : i32
    %c0_i32_0 = arith.constant 0 : i32
    return %arg0, %arg1, %c0_i32 : i32, i32, i32
  }
}

</mosaic_0001>

<bundles_post_ra>
// kernel: tpu_custom_call.1
= control target key start
LH: loop header
LB: loop body
LE: loop exit
PB: predicated region body
PF: predicated region fallthrough
CT: control target
= control target key end

     0   :  { %8 = vsyncpa [#allocation3], 0  ;;  %s9254_s0 = inlined_call_operand.vmem [shape: s32[2,256,1], index: 0, kind: input, shape index: {}]   ;;  %s9255_s1 = inlined_call_operand.vmem [shape: f32[512,128], index: 1, kind: input, shape index: {}]   ;;  %s9256_s2 = inlined_call_operand.hbm [shape: f32[256,128], index: 2, kind: input, shape index: {}]   ;;  %s9257_s3 = inlined_call_operand.hbm [shape: f32[2,256,128], index: 3, kind: output, shape index: {}]  }
   0x1   :  { %10 = vsyncpa [#allocation3 + $0x1], 0 }
   0x2   :  { %11 = vsyncpa [#allocation4], 0 }
   0x3   :  { %13 = vsyncpa [#allocation4 + $0x1], 0  ;;  %s5649_s12 = smov 0   ;;  %s5651_s13 = smov 0  }
   0x4   :  { %s5653_s14 = smov 0   ;;  %s5655_s15 = smov 0  }
   0x5   :  { %s5657_s16 = smov 0   ;;  %s5659_s17 = smov 0  }
   0x6   :  { %s5661_s18 = smov 0   ;;  %s5663_s19 = smov 0  }
   0x7   :  { %s5665_s20 = smov 0   ;;  %s5667_s21 = smov 0  }
   0x8   :  { %s5669_s22 = smov 0  }
   0x9 LB: > { %9621 = sst [smem:[#allocation8_spill]] %s5614_s21  ;;  %s4123_s23 = sadd.s32 4294967295, %s5618_s22   ;;  %s5618_s22 = sphi %s5669_s22, %s19_s22   ;;  %s5614_s21 = sphi %s5667_s21, %s10309_s21   ;;  %s5610_s20 = sphi %s5665_s20, %s10317_s20   ;;  %s5606_s19 = sphi %s5663_s19, %s10307_s19   ;;  %s5602_s18 = sphi %s5661_s18, %s10316_s18   ;;  %s5598_s17 = sphi %s5659_s17, %s10315_s17   ;;  %s5594_s16 = sphi %s5657_s16, %s10314_s16   ;;  %s5590_s15 = sphi %s5655_s15, %s10313_s15   ;;  %s5586_s14 = sphi %s5653_s14, %s10312_s14   ;;  %s5582_s13 = sphi %s5651_s13, %s10311_s13   ;;  %s5578_s12 = sphi %s5649_s12, %s10310_s12  }
   0xa   : > { %s4124_s24 = sadd.s32 4294967294, %s5618_s22   ;;  %s28_s25 = sadd.s32 1, %s5610_s20 }
   0xb   : > { %s31_s26 = sadd.s32 1, %s5614_s21  ;;  %p29_p0 = scmp.ge.s32.totalorder %s28_s25, 2 }
   0xc   : > { %s87_s27 = sadd.s32 1, %s5598_s17  ;;  %p94_p1 = scmp.ne.s32.totalorder %s5598_s17, %s5594_s16 }
   0xd   : > { %p95_p2 = scmp.eq.s32.totalorder %s5618_s22, 0  ;;  %s10319_s25 = smov (%p29_p0, %s28_s25), 0 }
   0xe   : > { %9622 = sst [smem:[#allocation9_spill]] %s10319_s25  ;;  %s10321_s26 = smov (!%p29_p0, %s31_s26), %s5614_s21 }
   0xf   : > { %s84_s28 = ssub.s32 %s5610_s20, %s10319_s25  ;;  %p5715_p3 = por %p95_p2, %p94_p1 }
  0x10   : > { %p33_p4 = scmp.ge.s32.totalorder %s10321_s26, 2  ;;  %p85_p5 = scmp.eq.s32.totalorder %s84_s28, 0 }
  0x11   : > { %p100_p6 = scmp.ne.s32.totalorder %s5594_s16, %s5590_s15  ;;  %p101_p7 = scmp.eq.s32.totalorder %s4123_s23, 0 }
  0x12   : > { %s10323_s26 = smov (%p33_p4, %s10321_s26), 0  ;;  %s115_s7 = sadd.s32 1, %s5586_s14 }
  0x13   : > { %9624 = sst [smem:[#allocation10_spill]] %s10323_s26  ;;  %p5725_p8 = por %p101_p7, %p100_p6 }
  0x14   : > { %s5723_s30 = scalar_select %p85_p5, %s5598_s17, %s87_s27  }
  0x15   : > { %s110_s5 = ssub.s32 %s5614_s21, %s10323_s26  ;;  %p125_p10 = scmp.ne.s32.totalorder %s5586_s14, %s5582_s13 }
  0x16   : > { %s112_s6 = sor.u32 %s110_s5, %s84_s28  ;;  %p126_p11 = scmp.eq.s32.totalorder %s4123_s23, 3 }
  0x17   : > { %p113_p9 = scmp.eq.s32.totalorder %s112_s6, 0  ;;  %p131_p12 = scmp.ne.s32.totalorder %s5582_s13, %s5578_s12 }
  0x18   : > { %p5739_p13 = por %p126_p11, %p125_p10  ;;  %p132_p0 = scmp.eq.s32.totalorder %s4124_s24, 3 }
  0x19   : > { %s5737_s8 = scalar_select %p113_p9, %s5586_s14, %s115_s7  }
  0x1a   : > { %p5371_p1 = scmp.lt.s32.totalorder %s5618_s22, 4  ;;  %p5744_p2 = por %p132_p0, %p131_p12 }
  0x1b   : > { %s168_s11 = sand.u32 1, %s5598_s17   ;;  %s4398_s27 = sshll.u32 %s5610_s20, 11 }
  0x1c   : > { %s4127_s15 = sshll.u32 %s168_s11, 7  ;;  %s178_s23 = scalar_lea.hbm %s9256_s2, %s4398_s27 }
  0x1d   : > { %s172_s6 = scalar_lea.vmem [#allocation2], %s4127_s15  ;;  %p5755_p4 = pnand %p5371_p1, %p5715_p3 }
  0x1e   : > { %s179_s7 = sshll.u32 %s172_s6, 4  ;;  %p4130_p5 = scmp.ge.s32.totalorder %s5618_s22, 1  ;;  %s180_s7 = int_to_ptr.vmem [resolvable:$true] %s179_s7 }
  0x1f   : > { %s169_s24 = scalar_lea.sflag [#allocation3], %s168_s11  ;;  %p5472_p6 = pneg %p5755_p4 }
  0x20   : > { %s5483_s25 = scalar_lea.vmem %s180_s7, 2048  ;;  %s5620_s21 = smov [#allocation2]  }
  0x21   : > { %p5484_p7 = scmp.ne.s32.totalorder %s180_s7, %s5483_s25  ;;  %s5488_s28 = sshll.u32 %s5620_s21, 4  ;;  %s5489_s28 = int_to_ptr.vmem [resolvable:$false] %s5488_s28 }
  0x22   : > { %s5490_s15 = scalar_lea.vmem %s5489_s28, 4096  ;;  %p5491_p11 = scmp.lt.s32.totalorder %s180_s7, %s5489_s28 }
  0x23   : > { %p5486_p9 = pnand %p5484_p7, %p5472_p6  ;;  %p5492_p12 = scmp.lt.s32.totalorder %s5490_s15, %s5483_s25 }
  0x25   : > { %p5487_p10 = pneg %p5486_p9  ;;  %p5493_p0 = por %p5492_p12, %p5491_p11 }
  0x27   : > { %p5494_p3 = pnand %p5493_p0, %p5487_p10 }
  0x29   : > { %5497 = shalt.err (!%p5494_p3)
}
  0x2a   : > { %s5621_s29 = smov 128   ;;  %s5622_s11 = smov 8  }
  0x2b   : > { %5366 = dma.hbm_to_vmem [thread:$0]  (!%p5755_p4), %s178_s23, 2048, %s180_s7, %s169_s24, %s5621_s29, %s5621_s29, %s5622_s11  }
  0x2c   : > { %p187_p1 = scmp.lt.s32.totalorder %s5618_s22, 5 }
  0x2e   : > { %p188_p6 = pnand %p4130_p5, %p187_p1 }
  0x30   : > { %191 = sbr.rel (%p188_p6) target bundleno = 802 (0x322), region = 32 }
  0x35   : > { %s193_s21 = sand.u32 1, %s5594_s16  }
  0x36   : > { %s4131_s27 = sshll.u32 %s193_s21, 7  ;;  %s194_s5 = scalar_lea.sflag [#allocation3], %s193_s21 }
  0x37   : > { %s5768_s25 = scalar_lea.vmem [#allocation2], %s4131_s27 }
  0x38   : > { %5569 = dma.done.wait (%p5725_p8), %s194_s5, 2048  }
  0x39   : > { %5571 = vsyncadd (%p5725_p8), %s194_s5, 4294965248  ;;  %s5775_s26 = sshll.u32 %s5602_s18, 4  ;;  %p230_p4 = scmp.lt.s32.totalorder %s5606_s19, 1  ;;  %v5623_v0 = vmov 0   ;;  %v533_v1 = vld [vmem:[%s9255_s1 + $0xf8] sm:$0xff]  ;;  %v532_v3 = vld [vmem:[%s9255_s1 + $0xf0] sm:$0xff] }
  0x3a   : > { %5469 = vset.pattern.permute.xlu1 %v5623_v0  ;;  %5468 = vset.pattern.permute.xlu0 %v5623_v0  ;;  %p232_p5 = scmp.lt.s32.totalorder %s5775_s26, 31  ;;  %v517_v2 = vld [vmem:[%s9255_s1 + $0x78] sm:$0xff]  ;;  %v5797_v6 = vand.u32 4294901760, %v533_v1  ;;  %v5801_v8 = vand.u32 4294901760, %v532_v3  ;;  %v516_v19 = vld [vmem:[%s9255_s1 + $0x70] sm:$0xff]  ;;  %v531_v20 = vld [vmem:[%s9255_s1 + $0xe8] sm:$0xff] }
  0x3b   : > { %s231_s23 = scalar_select %p230_p4, %s5606_s19, 1  ;;  %v5799_v7 = vand.u32 4294901760, %v517_v2  ;;  %v5837_v24 = vand.u32 4294901760, %v516_v19  ;;  %v515_v25 = vld [vmem:[%s9255_s1 + $0x68] sm:$0xff]  ;;  %v530_v26 = vld [vmem:[%s9255_s1 + $0xe0] sm:$0xff]  ;;  %v5848_v28 = vand.u32 4294901760, %v531_v20 }
  0x3c   : > { %s233_s6 = scalar_select %p232_p5, %s5775_s26, 31  ;;  %9629 = vst [vmem:[#allocation11_spill] sm:$0xff] %v5797_v6  ;;  %9631 = vst [vmem:[#allocation13_spill] sm:$0xff] %v5801_v8  ;;  %v5806_v11 = vsub.f32 %v533_v1, %v5797_v6  ;;  %v5812_v13 = vsub.f32 %v532_v3, %v5801_v8  ;;  %4399 = vmatprep.subr.mxu0 %v5797_v6  ;;  %v514_v27 = vld [vmem:[%s9255_s1 + $0x60] sm:$0xff]  ;;  %v5850_v29 = vand.u32 4294901760, %v515_v25  ;;  %v5852_v30 = vand.u32 4294901760, %v530_v26 }
  0x3d   : > { %s4134_s7 = sshll.u32 %s231_s23, 5  ;;  %9630 = vst [vmem:[#allocation12_spill] sm:$0xff] %v5799_v7  ;;  %v5809_v12 = vsub.f32 %v517_v2, %v5799_v7  ;;  %4400 = vmatpush3.msra.mxu0 %v5799_v7  ;;  %9635 = vst [vmem:[#allocation17_spill] sm:$0xff] %v5837_v24  ;;  %v5854_v31 = vand.u32 4294901760, %v514_v27  ;;  %v529_v32 = vld [vmem:[%s9255_s1 + $0xd8] sm:$0xff]  ;;  %v5863_v37 = vsub.f32 %v516_v19, %v5837_v24  ;;  %v528_v38 = vld [vmem:[%s9255_s1 + $0xd0] sm:$0xff] }
  0x3e   : > { %s235_s24 = sadd.s32 %s4134_s7, %s233_s6  ;;  %9632 = vst [vmem:[#allocation14_spill] sm:$0xff] %v5806_v11  ;;  %9634 = vst [vmem:[#allocation16_spill] sm:$0xff] %v5812_v13  ;;  %v9279_v15 = vand.u32 4294901760, %v5806_v11  ;;  %v9277_v17 = vand.u32 4294901760, %v5812_v13  ;;  %4401 = vmatprep.subr.mxu0 %v5801_v8  ;;  %v513_v33 = vld [vmem:[%s9255_s1 + $0x58] sm:$0xff]  ;;  %v5870_v39 = vsub.f32 %v531_v20, %v5848_v28  ;;  %v5873_v40 = vsub.f32 %v515_v25, %v5850_v29  ;;  %v512_v63 = vld [vmem:[%s9255_s1 + $0x50] sm:$0xff] }
  0x3f   : > { %s4135_s28 = sshll.u32 %s235_s24, 3  ;;  %9633 = vst [vmem:[#allocation15_spill] sm:$0xff] %v5809_v12  ;;  %v9278_v16 = vand.u32 4294901760, %v5809_v12  ;;  %9636 = vst [vmem:[#allocation18_spill] sm:$0xff] %v5848_v28  ;;  %4402 = vmatpush3.msra.mxu0 %v5837_v24  ;;  %v5876_v41 = vsub.f32 %v530_v26, %v5852_v30  ;;  %v5878_v42 = vand.u32 4294901760, %v529_v32  ;;  %v9273_v45 = vand.u32 4294901760, %v5863_v37 }
  0x40   : > { %s5784_s29 = scalar_lea.vmem %s9254_s0, %s4135_s28  ;;  %v1035_v21 = vsub.f32 %v5806_v11, %v9279_v15  ;;  %v1042_v23 = vsub.f32 %v5812_v13, %v9277_v17  ;;  %9637 = vst [vmem:[#allocation19_spill] sm:$0xff] %v5850_v29  ;;  %9638 = vst [vmem:[#allocation20_spill] sm:$0xff] %v5852_v30  ;;  %v5884_v46 = vsub.f32 %v514_v27, %v5854_v31  ;;  %v5886_v47 = vand.u32 4294901760, %v513_v33  ;;  %v510_v20 = vld [vmem:[%s9255_s1 + $0x40] sm:$0xff]  ;;  %v525_v26 = vld [vmem:[%s9255_s1 + $0xb8] sm:$0xff]  ;;  %s4394_s27 = sshll.u32 %s5606_s19, 5 }
  0x41   : > { %v248_v4 = vld [vmem:[%s5784_s29 + $0x10] sm:$0xff]  ;;  %v246_v5 = vld [vmem:[%s5784_s29] sm:$0xff]  ;;  %v249_v9 = vld [vmem:[%s5784_s29 + $0x18] sm:$0xff]  ;;  %v923_v22 = vsub.f32 %v5809_v12, %v9278_v16  ;;  %9639 = vst [vmem:[#allocation21_spill] sm:$0xff] %v5854_v31  ;;  %v5888_v48 = vand.u32 4294901760, %v528_v38  ;;  %4403 = vmatprep.subr.mxu0 %v5848_v28  ;;  %v9272_v49 = vand.u32 4294901760, %v5870_v39  ;;  %v5895_v52 = vsub.f32 %v529_v32, %v5878_v42  ;;  %s4015_s5 = sadd.s32 %s4394_s27, %s5775_s26 }
  0x42   : > { %269 = vperm.xlu1 %5469, %v248_v4   ;;  %263 = vperm.xlu0 %5468, %v246_v5   ;;  %v247_v10 = vld [vmem:[%s5784_s29 + $0x8] sm:$0xff]  ;;  %v250_v18 = vld [vmem:[%s5784_s29 + $0x20] sm:$0xff]  ;;  %v1036_v34 = vand.u32 4294901760, %v1035_v21  ;;  %v1043_v36 = vand.u32 4294901760, %v1042_v23  ;;  %9640 = vst [vmem:[#allocation22_spill] sm:$0xff] %v5878_v42  ;;  %v253_v43 = vld [vmem:[%s5784_s29 + $0x38] sm:$0xff]  ;;  %v930_v53 = vsub.f32 %v5863_v37, %v9273_v45  ;;  %v5903_v55 = vsub.f32 %v513_v33, %v5886_v47 }
  0x43   : > { %v251_v14 = vld [vmem:[%s5784_s29 + $0x28] sm:$0xff]  ;;  %v924_v35 = vand.u32 4294901760, %v923_v22  ;;  %v252_v44 = vld [vmem:[%s5784_s29 + $0x30] sm:$0xff]  ;;  %9641 = vst [vmem:[#allocation23_spill] sm:$0xff] %v5884_v46  ;;  %9642 = vst [vmem:[#allocation24_spill] sm:$0xff] %v5886_v47  ;;  %v9271_v50 = vand.u32 4294901760, %v5873_v40  ;;  %4404 = vmatpush3.msra.mxu0 %v5850_v29  ;;  %v5906_v56 = vsub.f32 %v528_v38, %v5888_v48  ;;  %v1049_v59 = vsub.f32 %v5870_v39, %v9272_v49 }
  0x44   : > { %4479 = vmatprep.subr.mxu1 %v1036_v34  ;;  %9643 = vst [vmem:[#allocation25_spill] sm:$0xff] %v5888_v48  ;;  %v9270_v51 = vand.u32 4294901760, %v5876_v41  ;;  %9644 = vst [vmem:[#allocation26_spill] sm:$0xff] %v5895_v52  ;;  %v9269_v54 = vand.u32 4294901760, %v5884_v46  ;;  %4405 = vmatprep.subr.mxu0 %v5852_v30  ;;  %v255_v57 = vld [vmem:[%s5784_s29 + $0x48] sm:$0xff]  ;;  %v254_v58 = vld [vmem:[%s5784_s29 + $0x40] sm:$0xff] }
  0x45   : > { %4480 = vmatpush3.msra.mxu1 %v924_v35  ;;  %v937_v60 = vsub.f32 %v5873_v40, %v9271_v50  ;;  %v9268_v62 = vand.u32 4294901760, %v5895_v52  ;;  %v931_v0 = vand.u32 4294901760, %v930_v53  ;;  %v9266_v2 = vand.u32 4294901760, %v5903_v55  ;;  %v527_v4 = vld [vmem:[%s9255_s1 + $0xc8] sm:$0xff]  ;;  %4406 = vmatpush3.msra.mxu0 %v5854_v31  ;;  %v509_v35 = vld [vmem:[%s9255_s1 + $0x38] sm:$0xff]  ;;  %v260_v49 = vld [vmem:[%s5784_s29 + $0x70] sm:$0xff] }
  0x46   : > { %272 = vperm.xlu1 %5469, %v249_v9   ;;  %266 = vperm.xlu0 %5468, %v247_v10   ;;  %v1056_v61 = vsub.f32 %v5876_v41, %v9270_v51  ;;  %v944_v1 = vsub.f32 %v5884_v46, %v9269_v54  ;;  %v9265_v3 = vand.u32 4294901760, %v5906_v56  ;;  %v511_v5 = vld [vmem:[%s9255_s1 + $0x48] sm:$0xff]  ;;  %v526_v9 = vld [vmem:[%s9255_s1 + $0xc0] sm:$0xff]  ;;  %v1050_v10 = vand.u32 4294901760, %v1049_v59  ;;  %v257_v38 = vld [vmem:[%s5784_s29 + $0x58] sm:$0xff]  ;;  %s4395_s19 = sshll.u32 %s4015_s5, 7 }
  0x47   : > { %4481 = vmatprep.subr.mxu1 %v1043_v36  ;;  %v1063_v19 = vsub.f32 %v5895_v52, %v9268_v62  ;;  %4407 = vmatprep.subr.mxu0 %v5878_v42  ;;  %v951_v22 = vsub.f32 %v5903_v55, %v9266_v2  ;;  %v5954_v25 = vand.u32 4294901760, %v512_v63  ;;  %v5960_v32 = vand.u32 4294901760, %v527_v4  ;;  %v524_v36 = vld [vmem:[%s9255_s1 + $0xb0] sm:$0xff]  ;;  %v507_v2 = vld [vmem:[%s9255_s1 + $0x28] sm:$0xff]  ;;  %v506_v51 = vld [vmem:[%s9255_s1 + $0x20] sm:$0xff]  ;;  %s9186_s7 = scalar_lea.hbm %s9257_s3, %s4395_s19  ;;  %s5626_s15 = smov [#allocation5]  }
  0x48   : > { %4482 = vmatpush3.msra.mxu1 %v931_v0  ;;  %v945_v21 = vand.u32 4294901760, %v944_v1  ;;  %v5952_v23 = vsub.f32 %v5906_v56, %v9265_v3  ;;  %4408 = vmatpush3.msra.mxu0 %v5886_v47  ;;  %v5962_v33 = vand.u32 4294901760, %v511_v5  ;;  %v5964_v34 = vand.u32 4294901760, %v526_v9  ;;  %v523_v3 = vld [vmem:[%s9255_s1 + $0xa8] sm:$0xff]  ;;  %v261_v50 = vld [vmem:[%s5784_s29 + $0x78] sm:$0xff]  ;;  %s5502_s4 = sshll.u32 %s5626_s15, 4  ;;  %s5503_s4 = int_to_ptr.vmem [resolvable:$false] %s5502_s4 }
  0x49   : > { %9645 = vst [vmem:[#allocation27_spill] sm:$0xff] %v5954_v25  ;;  %v1064_v27 = vand.u32 4294901760, %v1063_v19  ;;  %4483 = vmatprep.subr.mxu1 %v1050_v10  ;;  %4409 = vmatprep.subr.mxu0 %v5888_v48  ;;  %v5982_v59 = vsub.f32 %v527_v4, %v5960_v32  ;;  %v5990_v0 = vand.u32 4294901760, %v525_v26  ;;  %v5997_v4 = vand.u32 4294901760, %v509_v35  ;;  %v259_v19 = vld [vmem:[%s5784_s29 + $0x68] sm:$0xff]  ;;  %s5504_s11 = scalar_lea.vmem %s5503_s4, 4096 }
  0x4a   : > { %278 = vperm.xlu1 %5469, %v251_v14   ;;  %275 = vperm.xlu0 %5468, %v250_v18   ;;  %v938_v14 = vand.u32 4294901760, %v937_v60  ;;  %v1057_v18 = vand.u32 4294901760, %v1056_v61  ;;  %v1071_v53 = vand.u32 4294901760, %v5952_v23  ;;  %v5985_v60 = vsub.f32 %v511_v5, %v5962_v33 }
  0x4b   : > { %9647 = vst [vmem:[#allocation29_spill] sm:$0xff] %v5982_v59  ;;  %v5988_v61 = vsub.f32 %v526_v9, %v5964_v34  ;;  %9650 = vst [vmem:[#allocation32_spill] sm:$0xff] %v5990_v0  ;;  %4410 = vmatpush3.msra.mxu0 %v5954_v25  ;;  %v5999_v10 = vand.u32 4294901760, %v524_v36  ;;  %v9263_v5 = vand.u32 4294901760, %v5982_v59  ;;  %v6086_v16 = vand.u32 4294901760, %v506_v51 }
  0x4c   : > { %4484 = vmatpush3.msra.mxu1 %v938_v14  ;;  %9648 = vst [vmem:[#allocation30_spill] sm:$0xff] %v5985_v60  ;;  %9652 = vst [vmem:[#allocation34_spill] sm:$0xff] %v5997_v4  ;;  %4411 = vmatprep.subr.mxu0 %v5960_v32  ;;  %v9262_v9 = vand.u32 4294901760, %v5985_v60 }
  0x4d   : > { %9649 = vst [vmem:[#allocation31_spill] sm:$0xff] %v5988_v61  ;;  %4485 = vmatprep.subr.mxu1 %v1057_v18  ;;  %9653 = vst [vmem:[#allocation35_spill] sm:$0xff] %v5999_v10  ;;  %v9264_v14 = vand.u32 4294901760, %v5988_v61  ;;  %v6006_v18 = vsub.f32 %v525_v26, %v5990_v0  ;;  %4412 = vmatpush3.msra.mxu0 %v5962_v33  ;;  %v1077_v26 = vsub.f32 %v5982_v59, %v9263_v5 }
  0x4e   : > { %284 = vperm.xlu1 %5469, %v253_v43   ;;  %281 = vperm.xlu0 %5468, %v252_v44   ;;  %v256_v43 = vld [vmem:[%s5784_s29 + $0x50] sm:$0xff]  ;;  %v952_v44 = vand.u32 4294901760, %v951_v22  ;;  %9662 = vst [vmem:[#allocation44_spill] sm:$0xff] %v6086_v16 }
  0x4f   : > { %9654 = vst [vmem:[#allocation36_spill] sm:$0xff] %v6006_v18  ;;  %4486 = vmatpush3.msra.mxu1 %v945_v21  ;;  %v965_v21 = vsub.f32 %v5985_v60, %v9262_v9  ;;  %4413 = vmatprep.subr.mxu0 %v5964_v34 }
  0x50   : > { %4487 = vmatprep.subr.mxu1 %v1064_v27 }
  0x51   : > { %4488 = vmatpush3.msra.mxu1 %v952_v44  ;;  %v522_v44 = vld [vmem:[%s9255_s1 + $0xa0] sm:$0xff] }
  0x52   : > { %290 = vperm.xlu1 %5469, %v255_v57   ;;  %287 = vperm.xlu0 %5468, %v254_v58   ;;  %v5976_v57 = vsub.f32 %v512_v63, %v5954_v25  ;;  %v5978_v58 = vand.u32 4294901760, %v510_v20 }
  0x53   : > { %4489 = vmatprep.subr.mxu1 %v1071_v53  ;;  %v6070_v53 = vand.u32 4294901760, %v523_v3 }
  0x54   : > { %9646 = vst [vmem:[#allocation28_spill] sm:$0xff] %v5976_v57  ;;  %v9261_v63 = vand.u32 4294901760, %v5976_v57  ;;  %v5995_v1 = vsub.f32 %v510_v20, %v5978_v58  ;;  %v258_v20 = vld [vmem:[%s5784_s29 + $0x60] sm:$0xff]  ;;  %4414 = vmatpush3.msra.mxu0 %v5978_v58 }
  0x55   : > { %4415 = vmatprep.subr.mxu0 %v5990_v0  ;;  %9658 = vst [vmem:[#allocation40_spill] sm:$0xff] %v6070_v53  ;;  %v6090_v15 = vsub.f32 %v523_v3, %v6070_v53 }
  0x56   : > { %9651 = vst [vmem:[#allocation33_spill] sm:$0xff] %v5995_v1  ;;  %296 = vperm.xlu1 %5469, %v257_v38   ;;  %293 = vperm.xlu0 %5468, %v256_v43   ;;  %v958_v22 = vsub.f32 %v5976_v57, %v9261_v63  ;;  %v9267_v23 = vand.u32 4294901760, %v5995_v1  ;;  %v6015_v38 = vsub.f32 %v509_v35, %v5997_v4  ;;  %v9274_v35 = vand.u32 4294901760, %v6006_v18 }
  0x57   : > { %v6018_v43 = vsub.f32 %v524_v36, %v5999_v10  ;;  %v1084_v63 = vsub.f32 %v5988_v61, %v9264_v14  ;;  %v508_v36 = vld [vmem:[%s9255_s1 + $0x30] sm:$0xff]  ;;  %4416 = vmatpush3.msra.mxu0 %v5997_v4  ;;  %9663 = vst [vmem:[#allocation45_spill] sm:$0xff] %v6090_v15 }
  0x58   : > { %9655 = vst [vmem:[#allocation37_spill] sm:$0xff] %v6015_v38  ;;  %v959_v27 = vand.u32 4294901760, %v958_v22  ;;  %v972_v9 = vsub.f32 %v5995_v1, %v9267_v23  ;;  %v9276_v5 = vand.u32 4294901760, %v6015_v38  ;;  %v1078_v22 = vand.u32 4294901760, %v1077_v26  ;;  %v521_v26 = vld [vmem:[%s9255_s1 + $0x98] sm:$0xff]  ;;  %4417 = vmatprep.subr.mxu0 %v5999_v10 }
  0x59   : > { %9656 = vst [vmem:[#allocation38_spill] sm:$0xff] %v6018_v43  ;;  %v9275_v14 = vand.u32 4294901760, %v6018_v43  ;;  %v966_v23 = vand.u32 4294901760, %v965_v21  ;;  %v1085_v62 = vand.u32 4294901760, %v1084_v63  ;;  %v1091_v54 = vsub.f32 %v6006_v18, %v9274_v35 }
  0x5a   : > { %302 = vperm.xlu1 %5469, %v259_v19   ;;  %299 = vperm.xlu0 %5468, %v258_v20   ;;  %v973_v45 = vand.u32 4294901760, %v972_v9  ;;  %v979_v19 = vsub.f32 %v6015_v38, %v9276_v5  ;;  %v6064_v20 = vand.u32 4294901760, %v508_v36  ;;  %v6072_v9 = vand.u32 4294901760, %v507_v2  ;;  %v520_v5 = vld [vmem:[%s9255_s1 + $0x90] sm:$0xff] }
  0x5b   : > { %v1098_v63 = vsub.f32 %v6018_v43, %v9275_v14  ;;  %4490 = vmatpush3.msra.mxu1 %v959_v27  ;;  %v1092_v21 = vand.u32 4294901760, %v1091_v54  ;;  %v6074_v35 = vand.u32 4294901760, %v522_v44  ;;  %v505_v14 = vld [vmem:[%s9255_s1 + $0x18] sm:$0xff] }
  0x5c   : > { %9657 = vst [vmem:[#allocation39_spill] sm:$0xff] %v6064_v20  ;;  %9659 = vst [vmem:[#allocation41_spill] sm:$0xff] %v6072_v9  ;;  %4491 = vmatprep.subr.mxu1 %v1078_v22  ;;  %v980_v17 = vand.u32 4294901760, %v979_v19  ;;  %v6084_v54 = vsub.f32 %v508_v36, %v6064_v20  ;;  %v6093_v4 = vsub.f32 %v507_v2, %v6072_v9  ;;  %v6098_v22 = vand.u32 4294901760, %v521_v26 }
  0x5d   : > { %9660 = vst [vmem:[#allocation42_spill] sm:$0xff] %v6074_v35  ;;  %v1099_v27 = vand.u32 4294901760, %v1098_v63  ;;  %v6096_v43 = vsub.f32 %v522_v44, %v6074_v35  ;;  %4492 = vmatpush3.msra.mxu1 %v966_v23  ;;  %v6102_v19 = vsub.f32 %v506_v51, %v6086_v16  ;;  %v6104_v63 = vand.u32 4294901760, %v505_v14  ;;  %4418 = vmatpush3.msra.mxu0 %v6064_v20 }
  0x5e   : > { %9661 = vst [vmem:[#allocation43_spill] sm:$0xff] %v6084_v54  ;;  %308 = vperm.xlu1 %5469, %v261_v50   ;;  %305 = vperm.xlu0 %5468, %v260_v49   ;;  %9664 = vst [vmem:[#allocation46_spill] sm:$0xff] %v6093_v4  ;;  %v9284_v36 = vand.u32 4294901760, %v6084_v54  ;;  %v6106_v49 = vand.u32 4294901760, %v520_v5  ;;  %v9287_v2 = vand.u32 4294901760, %v6093_v4  ;;  %v6113_v23 = vsub.f32 %v521_v26, %v6098_v22 }
  0x5f   : > { %9665 = vst [vmem:[#allocation47_spill] sm:$0xff] %v6096_v43  ;;  %9666 = vst [vmem:[#allocation48_spill] sm:$0xff] %v6102_v19  ;;  %4493 = vmatprep.subr.mxu1 %v1085_v62  ;;  %4419 = vmatprep.subr.mxu0 %v6070_v53  ;;  %v6121_v62 = vsub.f32 %v505_v14, %v6104_v63  ;;  %v9670_v26 = vand.u32 4294901760, %v6090_v15  ;;  %v503_v14 = vld [vmem:[%s9255_s1 + $0x8] sm:$0xff] }
  0x60   : > { %9667 = vst [vmem:[#allocation49_spill] sm:$0xff] %v6104_v63  ;;  %9668 = vst [vmem:[#allocation50_spill] sm:$0xff] %v6113_v23  ;;  %4494 = vmatpush3.msra.mxu1 %v973_v45  ;;  %v986_v51 = vsub.f32 %v6084_v54, %v9284_v36  ;;  %v6124_v50 = vsub.f32 %v520_v5, %v6106_v49  ;;  %4420 = vmatpush3.msra.mxu0 %v6072_v9  ;;  %v9671_v36 = vand.u32 4294901760, %v6096_v43  ;;  %v504_v5 = vld [vmem:[%s9255_s1 + $0x10] sm:$0xff] }
  0x61   : > { %4495 = vmatprep.subr.mxu1 %v1092_v21  ;;  %v1105_v3 = vsub.f32 %v6090_v15, %v9670_v26  ;;  %v993_v45 = vsub.f32 %v6093_v4, %v9287_v2  ;;  %4421 = vmatprep.subr.mxu0 %v6074_v35  ;;  %v9672_v26 = vand.u32 4294901760, %v6102_v19  ;;  %v9673_v53 = vand.u32 4294901760, %v6113_v23 }
  0x62   : > { %9669 = vst [vmem:[#allocation51_spill] sm:$0xff] %v6124_v50  ;;  %v1112_v44 = vsub.f32 %v6096_v43, %v9671_v36  ;;  %4496 = vmatpush3.msra.mxu1 %v980_v17  ;;  %v987_v21 = vand.u32 4294901760, %v986_v51  ;;  %v519_v36 = vld [vmem:[%s9255_s1 + $0x88] sm:$0xff]  ;;  %v518_v17 = vld [vmem:[%s9255_s1 + $0x80] sm:$0xff]  ;;  %4422 = vmatpush3.msra.mxu0 %v6086_v16  ;;  %v9674_v4 = vand.u32 4294901760, %v6121_v62 }
  0x63   : > { %v1000_v9 = vsub.f32 %v6102_v19, %v9672_v26  ;;  %4497 = vmatprep.subr.mxu1 %v1099_v27  ;;  %v1106_v51 = vand.u32 4294901760, %v1105_v3  ;;  %v994_v26 = vand.u32 4294901760, %v993_v45  ;;  %v1119_v35 = vsub.f32 %v6113_v23, %v9673_v53  ;;  %v502_v19 = vld [vmem:[%s9255_s1] sm:$0xff]  ;;  %4423 = vmatprep.subr.mxu0 %v6098_v22 }
  0x64   : > { %v1113_v2 = vand.u32 4294901760, %v1112_v44  ;;  %4498 = vmatpush3.msra.mxu1 %v987_v21  ;;  %v1007_v16 = vsub.f32 %v6121_v62, %v9674_v4  ;;  %v9675_v27 = vand.u32 4294901760, %v6124_v50  ;;  %v6169_v44 = vand.u32 4294901760, %v504_v5  ;;  %4424 = vmatpush3.msra.mxu0 %v6104_v63 }
  0x65   : > { %v1001_v43 = vand.u32 4294901760, %v1000_v9  ;;  %4499 = vmatprep.subr.mxu1 %v1106_v51  ;;  %v1120_v53 = vand.u32 4294901760, %v1119_v35  ;;  %v6172_v45 = vand.u32 4294901760, %v519_v36  ;;  %v6174_v23 = vand.u32 4294901760, %v503_v14  ;;  %4425 = vmatprep.subr.mxu0 %v6106_v49 }
  0x66   : > { %v1126_v3 = vsub.f32 %v6124_v50, %v9675_v27  ;;  %v6176_v21 = vand.u32 4294901760, %v518_v17  ;;  %4500 = vmatpush3.msra.mxu1 %v994_v26  ;;  %v1008_v4 = vand.u32 4294901760, %v1007_v16  ;;  %v6180_v9 = vsub.f32 %v504_v5, %v6169_v44  ;;  %4426 = vmatpush3.msra.mxu0 %v6169_v44 }
  0x67   : > { %9676 = vst [vmem:[#allocation52_spill] sm:$0xff] %v6174_v23  ;;  %v6182_v27 = vand.u32 4294901760, %v502_v19  ;;  %4501 = vmatprep.subr.mxu1 %v1113_v2  ;;  %v6186_v35 = vsub.f32 %v519_v36, %v6172_v45  ;;  %v6189_v63 = vsub.f32 %v503_v14, %v6174_v23  ;;  %4427 = vmatprep.subr.mxu0 %v6172_v45 }
  0x68   : > { %9677 = vst [vmem:[#allocation53_spill] sm:$0xff] %v6176_v21  ;;  %v1127_v51 = vand.u32 4294901760, %v1126_v3  ;;  %v6192_v50 = vsub.f32 %v518_v17, %v6176_v21  ;;  %4502 = vmatpush3.msra.mxu1 %v1001_v43  ;;  %v9306_v16 = vand.u32 4294901760, %v6180_v9  ;;  %4428 = vmatpush3.msra.mxu0 %v6174_v23 }
  0x69   : > { %9678 = vst [vmem:[#allocation54_spill] sm:$0xff] %v6182_v27  ;;  %9679 = vst [vmem:[#allocation55_spill] sm:$0xff] %v6186_v35  ;;  %v6197_v5 = vsub.f32 %v502_v19, %v6182_v27  ;;  %4503 = vmatprep.subr.mxu1 %v1120_v53  ;;  %v9309_v2 = vand.u32 4294901760, %v6186_v35  ;;  %v9310_v36 = vand.u32 4294901760, %v6189_v63  ;;  %4429 = vmatprep.subr.mxu0 %v6176_v21 }
  0x6a   : > { %9680 = vst [vmem:[#allocation56_spill] sm:$0xff] %v6189_v63  ;;  %9681 = vst [vmem:[#allocation57_spill] sm:$0xff] %v6192_v50  ;;  %v9311_v14 = vand.u32 4294901760, %v6192_v50  ;;  %4504 = vmatpush3.msra.mxu1 %v1008_v4  ;;  %v1014_v43 = vsub.f32 %v6180_v9, %v9306_v16  ;;  %4430 = vmatpush3.msra.mxu0 %v6182_v27 }
  0x6b   : > { %9682 = vst [vmem:[#allocation58_spill] sm:$0xff] %v6197_v5  ;;  %v9313_v17 = vand.u32 4294901760, %v6197_v5  ;;  %4505 = vmatprep.subr.mxu1 %v1127_v51  ;;  %v1133_v19 = vsub.f32 %v6186_v35, %v9309_v2  ;;  %v1021_v26 = vsub.f32 %v6189_v63, %v9310_v36  ;;  %4559 = vmatprep.subr.mxu0 %v5806_v11  ;;  %v241_v36 = vlaneseq }
  0x6c   : > { %v1140_v3 = vsub.f32 %v6192_v50, %v9311_v14  ;;  %v1015_v53 = vand.u32 4294901760, %v1014_v43 }
  0x6d   : > { %v1028_v4 = vsub.f32 %v6197_v5, %v9313_v17  ;;  %v1134_v51 = vand.u32 4294901760, %v1133_v19  ;;  %v1022_v16 = vand.u32 4294901760, %v1021_v26  ;;  %v6223_v14 = vand.u32 127, %v241_v36 }
  0x6e   : > { %v1141_v27 = vand.u32 4294901760, %v1140_v3  ;;  %4506 = vmatpush3.msra.mxu1 %v1015_v53 }
  0x6f   : > { %v1029_v2 = vand.u32 4294901760, %v1028_v4  ;;  %4507 = vmatprep.subr.mxu1 %v1134_v51  ;;  %9683 = vst [vmem:[#allocation59_spill] sm:$0xff] %v6223_v14  ;;  %v6226_v43 = vadd.s32 128, %v6223_v14 }
  0x70   : > { %4508 = vmatpush3.msra.mxu1 %v1022_v16  ;;  %v9338_v16 = vmov 0.0  }
  0x71   : > { %4509 = vmatprep.subr.mxu1 %v1141_v27  ;;  %9684 = vst [vmem:[#allocation60_spill] sm:$0xff] %v6226_v43  ;;  %v9326_v27 = vmov 1.0  }
  0x72   : > { %4510 = vmatpush3.msra.mxu1 %v1029_v2 }
  0x73   : > { %4639 = vmatprep.subr.mxu1 %v5797_v6 }
  0xbd   : > { %v6228_v11 = vpop.permute.xlu1 %269  ;;  %v6230_v17 = vpop.permute.xlu0 %263 }
  0xbe   : > { %9685 = vst [vmem:[#allocation61_spill] sm:$0xff] %v6228_v11  ;;  %9686 = vst [vmem:[#allocation62_spill] sm:$0xff] %v6230_v17  ;;  %vm311_vm0 = vcmp.eq.s32.totalorder %v6230_v17, %v6226_v43  ;;  %vm310_vm1 = vcmp.eq.s32.totalorder %v6230_v17, %v6223_v14  ;;  %vm319_vm2 = vcmp.eq.s32.totalorder %v6228_v11, %v6226_v43 }
  0xbf   : > { %4200 = vmatprep.mubr.msk.f32.mxu1 %vm311_vm0, %v9326_v27  ;;  %v4136_v2 = vsel %vm310_vm1, 1.0, %v9338_v16  ;;  %v4145_v36 = vsel %vm319_vm2, 1.0, %v9338_v16  ;;  %v4137_v19 = vsel %vm311_vm0, 1.0, %v9338_v16  ;;  %vm318_vm3 = vcmp.eq.s32.totalorder %v6228_v11, %v6223_v14 }
  0xc0   : > { %v6254_v26 = vsub.f32 %v4136_v2, %v4136_v2  ;;  %4201 = vmatmul.mubr.msk.f32.vlgmr.msra.gmra.mxu1 %vm310_vm1, %v9326_v27  ;;  %v6260_v3 = vsub.f32 %v4137_v19, %v4137_v19  ;;  %v6266_v51 = vsub.f32 %v4145_v36, %v4145_v36  ;;  %v4144_v19 = vsel %vm318_vm3, 1.0, %v9338_v16 }
  0xc1   : > { %v6262_v53 = vpop.permute.xlu1 %272  ;;  %v6264_v4 = vpop.permute.xlu0 %266  ;;  %4640 = vmatpush3.msra.mxu1 %v5799_v7  ;;  %v6293_v17 = vsub.f32 %v4144_v19, %v4144_v19 }
  0xc2   : > { %9687 = vst [vmem:[#allocation63_spill] sm:$0xff] %v6254_v26  ;;  %9688 = vst [vmem:[#allocation64_spill] sm:$0xff] %v6260_v3  ;;  %vm315_vm4 = vcmp.eq.s32.totalorder %v6264_v4, %v6226_v43  ;;  %vm314_vm5 = vcmp.eq.s32.totalorder %v6264_v4, %v6223_v14  ;;  %4641 = vmatprep.subr.mxu1 %v5801_v8  ;;  %v9330_v7 = vand.u32 4294901760, %v6254_v26  ;;  %v9692_v5 = vand.u32 4294901760, %v6260_v3 }
  0xc3   : > { %9689 = vst [vmem:[#allocation65_spill] sm:$0xff] %v6262_v53  ;;  %9690 = vst [vmem:[#allocation66_spill] sm:$0xff] %v6264_v4  ;;  %v4141_v36 = vsel %vm315_vm4, 1.0, %v9338_v16  ;;  %4202 = vmatprep.mubr.msk.f32.mxu1 %vm315_vm4, %v9326_v27  ;;  %v4140_v2 = vsel %vm314_vm5, 1.0, %v9338_v16  ;;  %4642 = vmatpush3.msra.mxu1 %v5837_v24  ;;  %vm323_vm6 = vcmp.eq.s32.totalorder %v6262_v53, %v6226_v43 }
  0xc4   : > { %9691 = vst [vmem:[#allocation67_spill] sm:$0xff] %v6266_v51  ;;  %v6297_v8 = vsub.f32 %v4141_v36, %v4141_v36  ;;  %v6299_v6 = vsub.f32 %v4140_v2, %v4140_v2  ;;  %4203 = vmatmul.mubr.msk.f32.gmra.mxu1 %vm314_vm5, %v9326_v27  ;;  %v681_v21 = vsub.f32 %v6260_v3, %v9692_v5  ;;  %v4149_v36 = vsel %vm323_vm6, 1.0, %v9338_v16 }
  0xc5   : > { %v6310_v19 = vpop.permute.xlu0 %275  ;;  %4204 = vmatprep.mubr.msk.f32.mxu1 %vm319_vm2, %v9326_v27  ;;  %v687_v2 = vsub.f32 %v6254_v26, %v9330_v7  ;;  %vm322_vm7 = vcmp.eq.s32.totalorder %v6262_v53, %v6223_v14  ;;  %4643 = vmatprep.subr.mxu1 %v5848_v28  ;;  %v6327_v4 = vpop.permute.xlu1 %278  ;;  %v6329_v27 = vsub.f32 %v4149_v36, %v4149_v36 }
  0xc6   : > { %9693 = vst [vmem:[#allocation68_spill] sm:$0xff] %v6310_v19  ;;  %9694 = vst [vmem:[#allocation69_spill] sm:$0xff] %v6327_v4  ;;  %v682_v24 = vand.u32 4294901760, %v681_v21  ;;  %v9335_v3 = vand.u32 4294901760, %v6297_v8  ;;  %v4148_v7 = vsel %vm322_vm7, 1.0, %v9338_v16  ;;  %4644 = vmatpush3.msra.mxu1 %v5850_v29  ;;  %vm327_vm8 = vcmp.eq.s32.totalorder %v6310_v19, %v6226_v43 }
  0xc7   : > { %v688_v26 = vand.u32 4294901760, %v687_v2  ;;  %v6337_v23 = vsub.f32 %v4148_v7, %v4148_v7  ;;  %4645 = vmatprep.subr.mxu1 %v5852_v30  ;;  %v9695_v21 = vmov 1.0   ;;  %v4153_v7 = vsel %vm327_vm8, 1.0, %v9338_v16 }
  0xc8   : > { %683 = vmatprep.mubr.f32.mxu0 %v682_v24  ;;  %4205 = vmatmul.mubr.msk.f32.gmra.mxu1 %vm318_vm3, %v9695_v21  ;;  %v696_v36 = vsub.f32 %v6297_v8, %v9335_v3  ;;  %v9696_v2 = vand.u32 4294901760, %v6266_v51  ;;  %vm9356_vm9 = vcmp.eq.s32.totalorder %v6310_v19, %v6223_v14  ;;  %v9698_v3 = vand.u32 4294901760, %v6299_v6 }
  0xc9   : > { %689 = vmatmul.mubr.f32.vlgmr.msra.gmra.mxu0 %v688_v26  ;;  %4206 = vmatprep.mubr.msk.f32.mxu1 %vm323_vm6, %v9695_v21  ;;  %v6363_v24 = vpop.permute.xlu0 %281  ;;  %v6368_v16 = vsub.f32 %v4153_v7, %v4153_v7  ;;  %v9699_v30 = vmov 0.0   ;;  %v9345_v26 = vand.u32 4294901760, %v6293_v17  ;;  %vm9360_vm10 = vcmp.eq.s32.totalorder %v6327_v4, %v6226_v43 }
  0xca   : > { %v711_v5 = vsub.f32 %v6266_v51, %v9696_v2  ;;  %9697 = vst [vmem:[#allocation70_spill] sm:$0xff] %v6363_v24  ;;  %v702_v11 = vsub.f32 %v6299_v6, %v9698_v3  ;;  %v4152_v2 = vsel %vm9356_vm9, 1.0, %v9699_v30  ;;  %4560 = vmatpush3.msra.mxu0 %v5809_v12  ;;  %v697_v29 = vand.u32 4294901760, %v696_v36  ;;  %4646 = vmatpush3.msra.mxu1 %v5854_v31 }
  0xcb   : > { %v6376_v51 = vsub.f32 %v4152_v2, %v4152_v2  ;;  %4561 = vmatprep.subr.mxu0 %v5812_v13  ;;  %v717_v7 = vsub.f32 %v6293_v17, %v9345_v26  ;;  %v4157_v36 = vsel %vm9360_vm10, 1.0, %v9699_v30  ;;  %4647 = vmatprep.subr.mxu1 %v5878_v42  ;;  %v6391_v2 = vpop.permute.xlu1 %284  ;;  %vm9359_vm11 = vcmp.eq.s32.totalorder %v6327_v4, %v6223_v14 }
  0xcc   : > { %v712_v28 = vand.u32 4294901760, %v711_v5  ;;  %v703_v3 = vand.u32 4294901760, %v702_v11  ;;  %v9349_v5 = vand.u32 4294901760, %v6329_v27  ;;  %9700 = vst [vmem:[#allocation71_spill] sm:$0xff] %v6391_v2  ;;  %698 = vmatprep.mubr.f32.mxu0 %v697_v29  ;;  %4207 = vmatmul.mubr.msk.f32.gmra.mxu1 %vm322_vm7, %v9695_v21  ;;  %vm9368_vm12 = vcmp.eq.s32.totalorder %v6363_v24, %v6226_v43 }
  0xcd   : > { %4208 = vmatprep.mubr.msk.f32.mxu1 %vm327_vm8, %v9695_v21  ;;  %v6406_v29 = vsub.f32 %v4157_v36, %v4157_v36  ;;  %v4156_v11 = vsel %vm9359_vm11, 1.0, %v9699_v30  ;;  %4562 = vmatpush3.msra.mxu0 %v5863_v37  ;;  %v718_v53 = vand.u32 4294901760, %v717_v7  ;;  %v9701_v42 = vand.u32 4294901760, %v6337_v23  ;;  %v6426_v13 = vpop.permute.xlu0 %287 }
  0xce   : > { %704 = vmatmul.mubr.f32.gmra.mxu0 %v703_v3  ;;  %v726_v26 = vsub.f32 %v6329_v27, %v9349_v5  ;;  %v4161_v3 = vsel %vm9368_vm12, 1.0, %v9699_v30  ;;  %v6420_v36 = vsub.f32 %v4156_v11, %v4156_v11  ;;  %v9353_v31 = vand.u32 4294901760, %v6368_v16  ;;  %9702 = vst [vmem:[#allocation72_spill] sm:$0xff] %v6426_v13  ;;  %4563 = vmatprep.subr.mxu0 %v5870_v39 }
  0xcf   : > { %713 = vmatprep.mubr.f32.mxu0 %v712_v28  ;;  %v732_v5 = vsub.f32 %v6337_v23, %v9701_v42  ;;  %v6429_v12 = vsub.f32 %v4161_v3, %v4161_v3  ;;  %vm9365_vm13 = vcmp.eq.s32.totalorder %v6363_v24, %v6223_v14  ;;  %vm9372_vm14 = vcmp.eq.s32.totalorder %v6391_v2, %v6226_v43  ;;  %v6458_v28 = vpop.permute.xlu1 %290 }
  0xd0   : > { %4648 = vmatpush3.msra.mxu1 %v5886_v47  ;;  %4564 = vmatpush3.msra.mxu0 %v5873_v40  ;;  %v727_v42 = vand.u32 4294901760, %v726_v26  ;;  %v741_v7 = vsub.f32 %v6368_v16, %v9353_v31  ;;  %v4160_v11 = vsel %vm9365_vm13, 1.0, %v9699_v30  ;;  %v4165_v3 = vsel %vm9372_vm14, 1.0, %v9699_v30  ;;  %9703 = vst [vmem:[#allocation73_spill] sm:$0xff] %v6458_v28 }
  0xd1   : > { %4209 = vmatmul.mubr.msk.f32.gmra.mxu1 %vm9356_vm9, %v9695_v21  ;;  %4565 = vmatprep.subr.mxu0 %v5876_v41  ;;  %v733_v31 = vand.u32 4294901760, %v732_v5  ;;  %v6461_v19 = vsub.f32 %v4160_v11, %v4160_v11  ;;  %vm9371_vm15 = vcmp.eq.s32.totalorder %v6391_v2, %v6223_v14  ;;  %vm9378_vm9 = vcmp.eq.s32.totalorder %v6426_v13, %v6226_v43 }
  0xd2   : > { %719 = vmatmul.mubr.f32.gmra.mxu0 %v718_v53  ;;  %4210 = vmatprep.mubr.msk.f32.mxu1 %vm9360_vm10, %v9695_v21  ;;  %v9704_v53 = vand.u32 4294901760, %v6376_v51  ;;  %v6471_v47 = vsub.f32 %v4165_v3, %v4165_v3  ;;  %v4164_v5 = vsel %vm9371_vm15, 1.0, %v9699_v30  ;;  %v742_v11 = vand.u32 4294901760, %v741_v7 }
  0xd3   : > { %728 = vmatprep.mubr.f32.mxu0 %v727_v42  ;;  %4566 = vmatpush3.msra.mxu0 %v5884_v46  ;;  %v9705_v3 = vand.u32 4294901760, %v6406_v29  ;;  %v4169_v46 = vsel %vm9378_vm9, 1.0, %v9699_v30  ;;  %vm9384_vm10 = vcmp.eq.s32.totalorder %v6458_v28, %v6226_v43  ;;  %v6501_v7 = vsub.f32 %v4164_v5, %v4164_v5  ;;  %v6504_v42 = vpop.permute.xlu0 %293 }
  0xd4   : > { %v747_v26 = vsub.f32 %v6376_v51, %v9704_v53  ;;  %4649 = vmatprep.subr.mxu1 %v5888_v48  ;;  %4567 = vmatprep.subr.mxu0 %v5895_v52  ;;  %9706 = vst [vmem:[#allocation74_spill] sm:$0xff] %v6504_v42  ;;  %v9707_v4 = vand.u32 4294901760, %v6420_v36  ;;  %v6510_v52 = vsub.f32 %v4169_v46, %v4169_v46  ;;  %v9710_v24 = vand.u32 4294901760, %v6461_v19 }
  0xd5   : > { %4211 = vmatmul.mubr.msk.f32.gmra.mxu1 %vm9359_vm11, %v9695_v21  ;;  %v756_v53 = vsub.f32 %v6406_v29, %v9705_v3  ;;  %vm9379_vm11 = vcmp.eq.s32.totalorder %v6426_v13, %v6223_v14  ;;  %4568 = vmatpush3.msra.mxu0 %v5903_v55 }
  0xd6   : > { %734 = vmatmul.mubr.f32.gmra.mxu0 %v733_v31  ;;  %4212 = vmatprep.mubr.msk.f32.mxu1 %vm9368_vm12, %v9695_v21  ;;  %v748_v31 = vand.u32 4294901760, %v747_v26  ;;  %v762_v48 = vsub.f32 %v6420_v36, %v9707_v4  ;;  %v4168_v5 = vsel %vm9379_vm11, 1.0, %v9699_v30  ;;  %v4173_v4 = vsel %vm9384_vm10, 1.0, %v9699_v30 }
  0xd7   : > { %743 = vmatprep.mubr.f32.mxu0 %v742_v11  ;;  %4569 = vmatprep.subr.mxu0 %v5906_v56  ;;  %v757_v26 = vand.u32 4294901760, %v756_v53  ;;  %v9708_v11 = vand.u32 4294901760, %v6429_v12  ;;  %v6536_v53 = vpop.permute.xlu1 %296  ;;  %v777_v3 = vsub.f32 %v6461_v19, %v9710_v24  ;;  %vm9391_vm12 = vcmp.eq.s32.totalorder %v6504_v42, %v6226_v43 }
  0xd8   : > { %4650 = vmatpush3.msra.mxu1 %v5954_v25  ;;  %4570 = vmatpush3.msra.mxu0 %v5976_v57  ;;  %9709 = vst [vmem:[#allocation75_spill] sm:$0xff] %v6536_v53  ;;  %v763_v57 = vand.u32 4294901760, %v762_v48  ;;  %v6547_v25 = vsub.f32 %v4173_v4, %v4173_v4  ;;  %v6576_v4 = vpop.permute.xlu0 %299 }
  0xd9   : > { %4213 = vmatmul.mubr.msk.f32.gmra.mxu1 %vm9365_vm13, %v9695_v21  ;;  %v771_v46 = vsub.f32 %v6429_v12, %v9708_v11  ;;  %vm9388_vm13 = vcmp.eq.s32.totalorder %v6458_v28, %v6223_v14  ;;  %v6538_v11 = vsub.f32 %v4168_v5, %v4168_v5  ;;  %4571 = vmatprep.subr.mxu0 %v5982_v59 }
  0xda   : > { %749 = vmatmul.mubr.f32.gmra.mxu0 %v748_v31  ;;  %4214 = vmatprep.mubr.msk.f32.mxu1 %vm9372_vm14, %v9695_v21  ;;  %v4172_v48 = vsel %vm9388_vm13, 1.0, %v9699_v30  ;;  %vm9401_vm14 = vcmp.eq.s32.totalorder %v6536_v53, %v6226_v43  ;;  %9712 = vst [vmem:[#allocation76_spill] sm:$0xff] %v6576_v4 }
  0xdb   : > { %758 = vmatprep.mubr.f32.mxu0 %v757_v26  ;;  %4572 = vmatpush3.msra.mxu0 %v5985_v60  ;;  %v772_v24 = vand.u32 4294901760, %v771_v46  ;;  %v9711_v26 = vand.u32 4294901760, %v6471_v47  ;;  %v4177_v46 = vsel %vm9391_vm12, 1.0, %v9699_v30  ;;  %v9385_v2 = vand.u32 4294901760, %v6538_v11 }
  0xdc   : > { %4651 = vmatprep.subr.mxu1 %v5960_v32  ;;  %4573 = vmatprep.subr.mxu0 %v5988_v61  ;;  %v6583_v61 = vsub.f32 %v4172_v48, %v4172_v48  ;;  %v9714_v60 = vand.u32 4294901760, %v6510_v52 }
  0xdd   : > { %4215 = vmatmul.mubr.msk.f32.gmra.mxu1 %vm9371_vm15, %v9695_v21  ;;  %v786_v31 = vsub.f32 %v6471_v47, %v9711_v26  ;;  %vm9392_vm15 = vcmp.eq.s32.totalorder %v6504_v42, %v6223_v14  ;;  %v9713_v26 = vand.u32 4294901760, %v6501_v7  ;;  %4574 = vmatpush3.msra.mxu0 %v5995_v1  ;;  %v9718_v1 = vand.u32 4294901760, %v6547_v25 }
  0xde   : > { %764 = vmatmul.mubr.f32.gmra.mxu0 %v763_v57  ;;  %4216 = vmatprep.mubr.msk.f32.mxu1 %vm9378_vm9, %v9695_v21  ;;  %v778_v57 = vand.u32 4294901760, %v777_v3  ;;  %v801_v59 = vsub.f32 %v6510_v52, %v9714_v60  ;;  %v4176_v3 = vsel %vm9392_vm15, 1.0, %v9699_v30  ;;  %v4181_v60 = vsel %vm9401_vm14, 1.0, %v9699_v30 }
  0xdf   : > { %773 = vmatprep.mubr.f32.mxu0 %v772_v24  ;;  %4652 = vmatpush3.msra.mxu1 %v5962_v33  ;;  %v792_v5 = vsub.f32 %v6501_v7, %v9713_v26  ;;  %v787_v48 = vand.u32 4294901760, %v786_v31  ;;  %v6599_v26 = vsub.f32 %v4177_v46, %v4177_v46  ;;  %vm9402_vm9 = vcmp.eq.s32.totalorder %v6536_v53, %v6223_v14  ;;  %v6620_v24 = vpop.permute.xlu1 %302  ;;  %v9730_v53 = vld [vmem:[#allocation48_spill] sm:$0xff] }
  0xe0   : > { %4653 = vmatprep.subr.mxu1 %v5964_v34  ;;  %4575 = vmatprep.subr.mxu0 %v6006_v18  ;;  %v6615_v46 = vsub.f32 %v4176_v3, %v4176_v3  ;;  %9716 = vst [vmem:[#allocation78_spill] sm:$0xff] %v6620_v24  ;;  %v802_v13 = vand.u32 4294901760, %v801_v59  ;;  %v6622_v18 = vsub.f32 %v4181_v60, %v4181_v60  ;;  %v4180_v59 = vsel %vm9402_vm9, 1.0, %v9699_v30  ;;  %v9719_v3 = vld [vmem:[#allocation38_spill] sm:$0xff] }
  0xe1   : > { %4217 = vmatmul.mubr.msk.f32.gmra.mxu1 %vm9379_vm11, %v9695_v21  ;;  %vm359_vm11 = vcmp.eq.s32.totalorder %v6576_v4, %v6226_v43  ;;  %v793_v31 = vand.u32 4294901760, %v792_v5  ;;  %4576 = vmatpush3.msra.mxu0 %v6015_v38  ;;  %v9720_v5 = vld [vmem:[#allocation34_spill] sm:$0xff]  ;;  %v6656_v60 = vsub.f32 %v4180_v59, %v4180_v59  ;;  %v9723_v59 = vand.u32 4294901760, %v6599_v26 }
  0xe2   : > { %779 = vmatmul.mubr.f32.gmra.mxu0 %v778_v57  ;;  %4218 = vmatprep.mubr.msk.f32.mxu1 %vm9384_vm10, %v9695_v21  ;;  %9715 = vst [vmem:[#allocation77_spill] sm:$0xff] %v6615_v46  ;;  %v807_v57 = vsub.f32 %v6538_v11, %v9385_v2  ;;  %9717 = vst [vmem:[#allocation79_spill] sm:$0xff] %v6622_v18  ;;  %vm9409_vm10 = vcmp.eq.s32.totalorder %v6576_v4, %v6223_v14  ;;  %v9398_v28 = vand.u32 4294901760, %v6615_v46 }
  0xe3   : > { %788 = vmatprep.mubr.f32.mxu0 %v787_v48  ;;  %4654 = vmatpush3.msra.mxu1 %v5978_v58  ;;  %v816_v48 = vsub.f32 %v6547_v25, %v9718_v1  ;;  %v4185_v1 = vsel %vm359_vm11, 1.0, %v9699_v30 }
  0xe4   : > { %4655 = vmatprep.subr.mxu1 %v5990_v0  ;;  %4577 = vmatprep.subr.mxu0 %v9719_v3  ;;  %v808_v2 = vand.u32 4294901760, %v807_v57  ;;  %v6654_v3 = vpop.permute.xlu0 %305  ;;  %v6661_v0 = vsub.f32 %v4185_v1, %v4185_v1  ;;  %v831_v1 = vsub.f32 %v6599_v26, %v9723_v59 }
  0xe5   : > { %4219 = vmatmul.mubr.msk.f32.gmra.mxu1 %vm9388_vm13, %v9695_v21  ;;  %vm363_vm13 = vcmp.eq.s32.totalorder %v6620_v24, %v6226_v43  ;;  %9721 = vst [vmem:[#allocation34_spill] sm:$0xff] %v6654_v3  ;;  %4578 = vmatpush3.msra.mxu0 %v6084_v54  ;;  %v817_v57 = vand.u32 4294901760, %v816_v48  ;;  %v9726_v54 = vld [vmem:[#allocation40_spill] sm:$0xff] }
  0xe6   : > { %794 = vmatmul.mubr.f32.gmra.mxu0 %v793_v31  ;;  %4220 = vmatprep.mubr.msk.f32.mxu1 %vm9391_vm12, %v9695_v21  ;;  %v9722_v31 = vand.u32 4294901760, %v6583_v61  ;;  %vm362_vm12 = vcmp.eq.s32.totalorder %v6620_v24, %v6223_v14  ;;  %v4189_v48 = vsel %vm363_vm13, 1.0, %v9699_v30 }
  0xe7   : > { %803 = vmatprep.mubr.f32.mxu0 %v802_v13  ;;  %4656 = vmatpush3.msra.mxu1 %v9720_v5  ;;  %v4184_v13 = vsel %vm9409_vm10, 1.0, %v9699_v30 }
  0xe8   : > { %v822_v38 = vsub.f32 %v6583_v61, %v9722_v31  ;;  %4657 = vmatprep.subr.mxu1 %v5999_v10  ;;  %4579 = vmatprep.subr.mxu0 %v6090_v15  ;;  %v6689_v59 = vsub.f32 %v4184_v13, %v4184_v13  ;;  %v837_v31 = vsub.f32 %v6615_v46, %v9398_v28  ;;  %v9725_v15 = vld [vmem:[#allocation46_spill] sm:$0xff]  ;;  %v4188_v13 = vsel %vm362_vm12, 1.0, %v9699_v30  ;;  %v9728_v46 = vld [vmem:[#allocation47_spill] sm:$0xff] }
  0xe9   : > { %4221 = vmatmul.mubr.msk.f32.gmra.mxu1 %vm9392_vm15, %v9695_v21  ;;  %vm367_vm15 = vcmp.eq.s32.totalorder %v6654_v3, %v6226_v43  ;;  %4580 = vmatpush3.msra.mxu0 %v9725_v15  ;;  %v832_v28 = vand.u32 4294901760, %v831_v1  ;;  %v9727_v15 = vand.u32 4294901760, %v6622_v18  ;;  %v9732_v10 = vld [vmem:[#allocation42_spill] sm:$0xff] }
  0xea   : > { %809 = vmatmul.mubr.f32.gmra.mxu0 %v808_v2  ;;  %4222 = vmatprep.mubr.msk.f32.mxu1 %vm9401_vm14, %v9695_v21  ;;  %v6696_v2 = vpop.permute.xlu1 %308  ;;  %v823_v42 = vand.u32 4294901760, %v822_v38  ;;  %v6710_v38 = vsub.f32 %v4189_v48, %v4189_v48  ;;  %vm366_vm14 = vcmp.eq.s32.totalorder %v6654_v3, %v6223_v14  ;;  %v4193_v1 = vsel %vm367_vm15, 1.0, %v9699_v30 }
  0xeb   : > { %818 = vmatprep.mubr.f32.mxu0 %v817_v57  ;;  %4658 = vmatpush3.msra.mxu1 %v6064_v20  ;;  %9724 = vst [vmem:[#allocation80_spill] sm:$0xff] %v6696_v2  ;;  %v9408_v57 = vand.u32 4294901760, %v6656_v60  ;;  %v838_v48 = vand.u32 4294901760, %v837_v31  ;;  %v9729_v20 = vld [vmem:[#allocation41_spill] sm:$0xff]  ;;  %v9735_v4 = vand.u32 4294901760, %v6689_v59 }
  0xec   : > { %4659 = vmatprep.subr.mxu1 %v9726_v54  ;;  %v846_v54 = vsub.f32 %v6622_v18, %v9727_v15  ;;  %4581 = vmatprep.subr.mxu0 %v9728_v46  ;;  %v6727_v15 = vsub.f32 %v4188_v13, %v4188_v13  ;;  %v9731_v46 = vand.u32 4294901760, %v6661_v0 }
  0xed   : > { %4223 = vmatmul.mubr.msk.f32.gmra.mxu1 %vm9402_vm9, %v9695_v21  ;;  %vm371_vm9 = vcmp.eq.s32.totalorder %v6696_v2, %v6226_v43  ;;  %4582 = vmatpush3.msra.mxu0 %v9730_v53  ;;  %v9733_v53 = vld [vmem:[#allocation50_spill] sm:$0xff]  ;;  %v9749_v43 = vld [vmem:[#allocation63_spill] sm:$0xff] }
  0xee   : > { %824 = vmatmul.mubr.f32.gmra.mxu0 %v823_v42  ;;  %4224 = vmatprep.mubr.msk.f32.mxu1 %vm359_vm11, %v9695_v21  ;;  %v852_v42 = vsub.f32 %v6656_v60, %v9408_v57  ;;  %v861_v18 = vsub.f32 %v6661_v0, %v9731_v46  ;;  %v847_v13 = vand.u32 4294901760, %v846_v54  ;;  %v6748_v57 = vsub.f32 %v4193_v1, %v4193_v1  ;;  %v9734_v54 = vld [vmem:[#allocation44_spill] sm:$0xff] }
  0xef   : > { %833 = vmatprep.mubr.f32.mxu0 %v832_v28  ;;  %4660 = vmatpush3.msra.mxu1 %v9729_v20  ;;  %v4192_v28 = vsel %vm366_vm14, 1.0, %v9699_v30  ;;  %v4197_v31 = vsel %vm371_vm9, 1.0, %v9699_v30 }
  0xf0   : > { %4661 = vmatprep.subr.mxu1 %v9732_v10  ;;  %4583 = vmatprep.subr.mxu0 %v9733_v53  ;;  %v6763_v1 = vsub.f32 %v4192_v28, %v4192_v28  ;;  %v853_v46 = vand.u32 4294901760, %v852_v42  ;;  %v867_v53 = vsub.f32 %v6689_v59, %v9735_v4  ;;  %v9736_v42 = vand.u32 4294901760, %v6710_v38  ;;  %v9737_v28 = vld [vmem:[#allocation51_spill] sm:$0xff] }
  0xf1   : > { %4225 = vmatmul.mubr.msk.f32.gmra.mxu1 %vm9409_vm10, %v9695_v21  ;;  %vm370_vm10 = vcmp.eq.s32.totalorder %v6696_v2, %v6223_v14  ;;  %4584 = vmatpush3.msra.mxu0 %v6121_v62  ;;  %v9415_v10 = vand.u32 4294901760, %v6748_v57  ;;  %v9745_v14 = vld [vmem:[#allocation58_spill] sm:$0xff] }
  0xf2   : > { %839 = vmatmul.mubr.f32.gmra.mxu0 %v838_v48  ;;  %4226 = vmatprep.mubr.msk.f32.mxu1 %vm363_vm13, %v9695_v21  ;;  %v862_v48 = vand.u32 4294901760, %v861_v18  ;;  %v876_v18 = vsub.f32 %v6710_v38, %v9736_v42  ;;  %v4196_v4 = vsel %vm370_vm10, 1.0, %v9699_v30  ;;  %v868_v24 = vand.u32 4294901760, %v867_v53 }
  0xf3   : > { %848 = vmatprep.mubr.f32.mxu0 %v847_v13  ;;  %4662 = vmatpush3.msra.mxu1 %v9734_v54  ;;  %v6775_v13 = vsub.f32 %v4197_v31, %v4197_v31  ;;  %v9738_v31 = vld [vmem:[#allocation49_spill] sm:$0xff]  ;;  %v6792_v42 = vsub.f32 %v4196_v4, %v4196_v4  ;;  %v9739_v30 = vand.u32 4294901760, %v6727_v15  ;;  %v891_v53 = vsub.f32 %v6748_v57, %v9415_v10 }
  0xf4   : > { %4663 = vmatprep.subr.mxu1 %v6098_v22  ;;  %4585 = vmatprep.subr.mxu0 %v9737_v28  ;;  %v9743_v10 = vld [vmem:[#allocation53_spill] sm:$0xff] }
  0xf5   : > { %4227 = vmatmul.mubr.msk.f32.gmra.mxu1 %vm362_vm12, %v9695_v21  ;;  %v882_v28 = vsub.f32 %v6727_v15, %v9739_v30  ;;  %4586 = vmatpush3.msra.mxu0 %v6180_v9  ;;  %v9425_v4 = vand.u32 4294901760, %v6775_v13  ;;  %v9744_v2 = vand.u32 4294901760, %v6792_v42 }
  0xf6   : > { %854 = vmatmul.mubr.f32.gmra.mxu0 %v853_v46  ;;  %4228 = vmatprep.mubr.msk.f32.mxu1 %vm367_vm15, %v9695_v21  ;;  %v9416_v46 = vand.u32 4294901760, %v6763_v1 }
  0xf7   : > { %863 = vmatprep.mubr.f32.mxu0 %v862_v48  ;;  %4664 = vmatpush3.msra.mxu1 %v9738_v31  ;;  %v877_v48 = vand.u32 4294901760, %v876_v18  ;;  %v883_v30 = vand.u32 4294901760, %v882_v28  ;;  %v9740_v28 = vld [vmem:[#allocation52_spill] sm:$0xff] }
  0xf8   : > { %4665 = vmatprep.subr.mxu1 %v6106_v49  ;;  %4587 = vmatprep.subr.mxu0 %v6186_v35  ;;  %v897_v18 = vsub.f32 %v6763_v1, %v9416_v46  ;;  %v9741_v46 = vld [vmem:[#allocation64_spill] sm:$0xff]  ;;  %v9746_v35 = vld [vmem:[#allocation54_spill] sm:$0xff] }
  0xf9   : > { %4229 = vmatmul.mubr.msk.f32.gmra.mxu1 %vm366_vm14, %v9695_v21  ;;  %4588 = vmatpush3.msra.mxu0 %v6189_v63  ;;  %v9742_v3 = vand.u32 4294901760, %v9741_v46 }
  0xfa   : > { %869 = vmatmul.mubr.f32.gmra.mxu0 %v868_v24  ;;  %4230 = vmatprep.mubr.msk.f32.mxu1 %vm371_vm9, %v9695_v21  ;;  %v892_v24 = vand.u32 4294901760, %v891_v53  ;;  %v898_v63 = vand.u32 4294901760, %v897_v18  ;;  %v912_v53 = vsub.f32 %v6792_v42, %v9744_v2  ;;  %v9753_v2 = vld [vmem:[#allocation12_spill] sm:$0xff] }
  0xfb   : > { %878 = vmatprep.mubr.f32.mxu0 %v877_v48  ;;  %4666 = vmatpush3.msra.mxu1 %v6169_v44  ;;  %v906_v48 = vsub.f32 %v6775_v13, %v9425_v4 }
  0xfc   : > { %4667 = vmatprep.subr.mxu1 %v6172_v45  ;;  %4589 = vmatprep.subr.mxu0 %v6192_v50  ;;  %v9747_v50 = vld [vmem:[#allocation14_spill] sm:$0xff]  ;;  %v913_v18 = vand.u32 4294901760, %v912_v53  ;;  %v9760_v53 = vand.u32 4294901760, %v6329_v27 }
  0xfd   : > { %4231 = vmatmul.mubr.msk.f32.gmra.mxu1 %vm370_vm10, %v9695_v21  ;;  %4590 = vmatpush3.msra.mxu0 %v9745_v14  ;;  %v907_v4 = vand.u32 4294901760, %v906_v48  ;;  %v9750_v21 = vand.u32 4294901760, %v9749_v43  ;;  %v9754_v14 = vand.u32 4294901760, %v6299_v6  ;;  %v9755_v48 = vld [vmem:[#allocation67_spill] sm:$0xff] }
  0xfe   : > { %884 = vmatmul.mubr.f32.gmra.mxu0 %v883_v30  ;;  %4668 = vmatpush3.msra.mxu1 %v9740_v28  ;;  %v9748_v30 = vand.u32 4294901760, %v9747_v50  ;;  %v9756_v50 = vand.u32 4294901760, %v9755_v48 }
  0xff   : > { %1628 = vmatprep.mubr.f32.mxu1 %v9742_v3  ;;  %893 = vmatprep.mubr.f32.mxu0 %v892_v24  ;;  %v9751_v3 = vand.u32 4294901760, %v6297_v8  ;;  %v9752_v24 = vld [vmem:[#allocation11_spill] sm:$0xff] }
 0x100   : > { %4669 = vmatprep.subr.mxu1 %v9743_v10  ;;  %4719 = vmatprep.subr.mxu0 %v9748_v30  ;;  %v9761_v30 = vld [vmem:[#allocation15_spill] sm:$0xff] }
 0x101   : > { %4670 = vmatpush3.msra.mxu1 %v9746_v35 }
 0x102   : > { %1632 = vmatmul.mubr.f32.vlgmr.msra.gmra.mxu1 %v9750_v21  ;;  %899 = vmatmul.mubr.f32.gmra.mxu0 %v898_v63  ;;  %v9757_v21 = vld [vmem:[#allocation13_spill] sm:$0xff] }
 0x103   : > { %1639 = vmatprep.mubr.f32.mxu1 %v9751_v3  ;;  %908 = vmatprep.mubr.f32.mxu0 %v907_v4  ;;  %v9758_v63 = vld [vmem:[#allocation17_spill] sm:$0xff]  ;;  %v9759_v4 = vand.u32 4294901760, %v6293_v17  ;;  %v9763_v3 = vld [vmem:[#allocation16_spill] sm:$0xff] }
 0x104   : > { %4799 = vmatprep.subr.mxu1 %v9752_v24  ;;  %v9766_v24 = vld [vmem:[#allocation18_spill] sm:$0xff] }
 0x105   : > { %4800 = vmatpush3.msra.mxu1 %v9753_v2  ;;  %v9767_v2 = vand.u32 4294901760, %v6337_v23 }
 0x106   : > { %1643 = vmatmul.mubr.f32.gmra.mxu1 %v9754_v14  ;;  %914 = vmatmul.mubr.f32.gmra.mxu0 %v913_v18  ;;  %v9762_v14 = vand.u32 4294901760, %v9761_v30  ;;  %v9764_v18 = vand.u32 4294901760, %v9763_v3  ;;  %v9780_v30 = vand.u32 4294901760, %v6420_v36  ;;  %v9785_v3 = vand.u32 4294901760, %v5903_v55 }
 0x107   : > { %1650 = vmatprep.mubr.f32.mxu1 %v9756_v50  ;;  %1386 = vmatprep.mubr.f32.mxu0 %v9741_v46  ;;  %v9765_v46 = vand.u32 4294901760, %v5863_v37  ;;  %v9770_v50 = vld [vmem:[#allocation19_spill] sm:$0xff]  ;;  %v9771_v37 = vand.u32 4294901760, %v5873_v40 }
 0x108   : > { %4801 = vmatprep.subr.mxu1 %v9757_v21  ;;  %v9772_v21 = vld [vmem:[#allocation20_spill] sm:$0xff] }
 0x109   : > { %4802 = vmatpush3.msra.mxu1 %v9758_v63  ;;  %v9773_v63 = vand.u32 4294901760, %v6376_v51 }
 0x10a   : > { %1654 = vmatmul.mubr.f32.gmra.mxu1 %v9759_v4  ;;  %1389 = vmatmul.mubr.f32.vlgmr.msra.gmra.mxu0 %v9749_v43  ;;  %v9768_v43 = vand.u32 4294901760, %v6368_v16  ;;  %v9777_v4 = vld [vmem:[#allocation23_spill] sm:$0xff] }
 0x10b   : > { %1661 = vmatprep.mubr.f32.mxu1 %v9760_v53  ;;  %4720 = vmatpush3.msra.mxu0 %v9762_v14  ;;  %v9778_v40 = vand.u32 4294901760, %v9777_v4  ;;  %v9779_v53 = vld [vmem:[#allocation22_spill] sm:$0xff]  ;;  %v9784_v14 = vld [vmem:[#allocation24_spill] sm:$0xff]  ;;  %v9813_v4 = vld [vmem:[#allocation77_spill] sm:$0xff] }
 0x10c   : > { %1395 = vmatprep.mubr.f32.mxu0 %v6297_v8  ;;  %4721 = vmatprep.subr.mxu0 %v9764_v18  ;;  %v9769_v8 = vand.u32 4294901760, %v5870_v39  ;;  %v9775_v39 = vand.u32 4294901760, %v5876_v41  ;;  %v9786_v18 = vld [vmem:[#allocation25_spill] sm:$0xff] }
 0x10d   : > { %4722 = vmatpush3.msra.mxu0 %v9765_v46  ;;  %4803 = vmatprep.subr.mxu1 %v9766_v24  ;;  %v9787_v46 = vand.u32 4294901760, %v6461_v19  ;;  %v9790_v24 = vld [vmem:[#allocation27_spill] sm:$0xff] }
 0x10e   : > { %1665 = vmatmul.mubr.f32.gmra.mxu1 %v9767_v2  ;;  %1398 = vmatmul.mubr.f32.gmra.mxu0 %v6299_v6  ;;  %v9774_v6 = vand.u32 4294901760, %v6406_v29  ;;  %v9791_v2 = vld [vmem:[#allocation28_spill] sm:$0xff] }
 0x10f   : > { %1672 = vmatprep.mubr.f32.mxu1 %v9768_v43  ;;  %1404 = vmatprep.mubr.f32.mxu0 %v9755_v48  ;;  %v9776_v48 = vld [vmem:[#allocation21_spill] sm:$0xff]  ;;  %v9792_v55 = vand.u32 4294901760, %v9791_v2  ;;  %v9793_v43 = vand.u32 4294901760, %v6501_v7  ;;  %v9831_v2 = vand.u32 4294901760, %v6689_v59 }
 0x110   : > { %4723 = vmatprep.subr.mxu0 %v9769_v8  ;;  %4804 = vmatpush3.msra.mxu1 %v9770_v50  ;;  %v9797_v8 = vld [vmem:[#allocation30_spill] sm:$0xff] }
 0x111   : > { %4724 = vmatpush3.msra.mxu0 %v9771_v37  ;;  %4805 = vmatprep.subr.mxu1 %v9772_v21  ;;  %v9798_v50 = vand.u32 4294901760, %v9797_v8 }
 0x112   : > { %1676 = vmatmul.mubr.f32.gmra.mxu1 %v9773_v63  ;;  %1407 = vmatmul.mubr.f32.gmra.mxu0 %v6293_v17  ;;  %v9781_v17 = vand.u32 4294901760, %v6429_v12  ;;  %v9805_v63 = vld [vmem:[#allocation32_spill] sm:$0xff] }
 0x113   : > { %1683 = vmatprep.mubr.f32.mxu1 %v9774_v6  ;;  %1413 = vmatprep.mubr.f32.mxu0 %v6329_v27  ;;  %v9782_v27 = vld [vmem:[#allocation26_spill] sm:$0xff] }
 0x114   : > { %4725 = vmatprep.subr.mxu0 %v9775_v39  ;;  %4806 = vmatpush3.msra.mxu1 %v9776_v48  ;;  %v9783_v41 = vand.u32 4294901760, %v9782_v27  ;;  %v9812_v48 = vld [vmem:[#allocation35_spill] sm:$0xff] }
 0x115   : > { %4726 = vmatpush3.msra.mxu0 %v9778_v40  ;;  %4807 = vmatprep.subr.mxu1 %v9779_v53  ;;  %v9814_v40 = vand.u32 4294901760, %v9813_v4 }
 0x116   : > { %1687 = vmatmul.mubr.f32.gmra.mxu1 %v9780_v30  ;;  %1416 = vmatmul.mubr.f32.gmra.mxu0 %v6337_v23  ;;  %v9788_v23 = vand.u32 4294901760, %v6471_v47 }
 0x117   : > { %1694 = vmatprep.mubr.f32.mxu1 %v9781_v17  ;;  %1422 = vmatprep.mubr.f32.mxu0 %v6368_v16  ;;  %v9789_v16 = vand.u32 4294901760, %v5906_v56  ;;  %v9819_v17 = vld [vmem:[#allocation39_spill] sm:$0xff] }
 0x118   : > { %4727 = vmatprep.subr.mxu0 %v9783_v41  ;;  %4808 = vmatpush3.msra.mxu1 %v9784_v14  ;;  %v9822_v41 = vld [vmem:[#allocation40_spill] sm:$0xff]  ;;  %v9823_v14 = vand.u32 4294901760, %v6656_v60 }
 0x119   : > { %4728 = vmatpush3.msra.mxu0 %v9785_v3  ;;  %4809 = vmatprep.subr.mxu1 %v9786_v18  ;;  %v9825_v3 = vld [vmem:[#allocation45_spill] sm:$0xff] }
 0x11a   : > { %1698 = vmatmul.mubr.f32.gmra.mxu1 %v9787_v46  ;;  %1425 = vmatmul.mubr.f32.gmra.mxu0 %v6376_v51  ;;  %v9794_v51 = vand.u32 4294901760, %v6510_v52  ;;  %v9826_v18 = vand.u32 4294901760, %v9825_v3  ;;  %v9827_v46 = vld [vmem:[#allocation46_spill] sm:$0xff] }
 0x11b   : > { %1705 = vmatprep.mubr.f32.mxu1 %v9788_v23  ;;  %1431 = vmatprep.mubr.f32.mxu0 %v6406_v29  ;;  %v9795_v29 = vld [vmem:[#allocation29_spill] sm:$0xff]  ;;  %v9828_v23 = vand.u32 4294901760, %v9827_v46  ;;  %v9866_v3 = vld [vmem:[#allocation66_spill] sm:$0xff] }
 0x11c   : > { %4729 = vmatprep.subr.mxu0 %v9789_v16  ;;  %4810 = vmatpush3.msra.mxu1 %v9790_v24  ;;  %v9796_v56 = vand.u32 4294901760, %v9795_v29  ;;  %v9829_v16 = vld [vmem:[#allocation42_spill] sm:$0xff]  ;;  %v9836_v29 = vld [vmem:[#allocation48_spill] sm:$0xff] }
 0x11d   : > { %4730 = vmatpush3.msra.mxu0 %v9792_v55  ;;  %4811 = vmatprep.subr.mxu1 %v5960_v32  ;;  %v9799_v32 = vand.u32 4294901760, %v6538_v11  ;;  %v549_v24 = vld [vmem:[%s9255_s1 + $0x178] sm:$0xff]  ;;  %v9833_v55 = vld [vmem:[#allocation47_spill] sm:$0xff] }
 0x11e   : > { %1709 = vmatmul.mubr.f32.gmra.mxu1 %v9793_v43  ;;  %1434 = vmatmul.mubr.f32.gmra.mxu0 %v6420_v36  ;;  %v9800_v36 = vand.u32 4294901760, %v6547_v25  ;;  %v9834_v43 = vand.u32 4294901760, %v9833_v55 }
 0x11f   : > { %1716 = vmatprep.mubr.f32.mxu1 %v9794_v51  ;;  %1440 = vmatprep.mubr.f32.mxu0 %v6429_v12  ;;  %v9801_v12 = vld [vmem:[#allocation31_spill] sm:$0xff]  ;;  %v6992_v51 = vand.u32 4294901760, %v549_v24 }
 0x120   : > { %4731 = vmatprep.subr.mxu0 %v9796_v56  ;;  %4812 = vmatpush3.msra.mxu1 %v5962_v33  ;;  %v9802_v37 = vand.u32 4294901760, %v9801_v12  ;;  %v9803_v33 = vld [vmem:[#allocation33_spill] sm:$0xff]  ;;  %v9837_v56 = vand.u32 4294901760, %v9836_v29 }
 0x121   : > { %4732 = vmatpush3.msra.mxu0 %v9798_v50  ;;  %4813 = vmatprep.subr.mxu1 %v5964_v34  ;;  %v9804_v21 = vand.u32 4294901760, %v9803_v33  ;;  %v9806_v34 = vand.u32 4294901760, %v6583_v61  ;;  %9835 = vst [vmem:[#allocation44_spill] sm:$0xff] %v6992_v51  ;;  %v9845_v33 = vand.u32 4294901760, %v6121_v62  ;;  %v9848_v62 = vand.u32 4294901760, %v6775_v13 }
 0x122   : > { %1720 = vmatmul.mubr.f32.gmra.mxu1 %v9799_v32  ;;  %1443 = vmatmul.mubr.f32.gmra.mxu0 %v6461_v19  ;;  %v9807_v19 = vand.u32 4294901760, %v6599_v26  ;;  %v9840_v32 = vand.u32 4294901760, %v6727_v15 }
 0x123   : > { %1727 = vmatprep.mubr.f32.mxu1 %v9800_v36  ;;  %1449 = vmatprep.mubr.f32.mxu0 %v6471_v47  ;;  %v9808_v47 = vld [vmem:[#allocation36_spill] sm:$0xff]  ;;  %v9841_v36 = vand.u32 4294901760, %v6748_v57 }
 0x124   : > { %4733 = vmatprep.subr.mxu0 %v9802_v37  ;;  %4814 = vmatpush3.msra.mxu1 %v5978_v58  ;;  %v9809_v6 = vand.u32 4294901760, %v9808_v47  ;;  %v9810_v58 = vld [vmem:[#allocation37_spill] sm:$0xff]  ;;  %v7015_v37 = vsub.f32 %v549_v24, %v6992_v51 }
 0x125   : > { %4734 = vmatpush3.msra.mxu0 %v9804_v21  ;;  %4815 = vmatprep.subr.mxu1 %v9805_v63  ;;  %v9811_v39 = vand.u32 4294901760, %v9810_v58  ;;  %v9852_v58 = vand.u32 4294901760, %v6180_v9  ;;  %v9856_v9 = vmov 1.0  }
 0x126   : > { %1731 = vmatmul.mubr.f32.gmra.mxu1 %v9806_v34  ;;  %1452 = vmatmul.mubr.f32.gmra.mxu0 %v6501_v7  ;;  %v9815_v7 = vld [vmem:[#allocation79_spill] sm:$0xff]  ;;  %9844 = vst [vmem:[#allocation64_spill] sm:$0xff] %v7015_v37  ;;  %v9442_v47 = vand.u32 4294901760, %v7015_v37 }
 0x127   : > { %1738 = vmatprep.mubr.f32.mxu1 %v9807_v19  ;;  %1458 = vmatprep.mubr.f32.mxu0 %v6510_v52  ;;  %v9816_v53 = vand.u32 4294901760, %v9815_v7  ;;  %v9817_v52 = vld [vmem:[#allocation38_spill] sm:$0xff]  ;;  %v9849_v34 = vld [vmem:[#allocation51_spill] sm:$0xff] }
 0x128   : > { %4735 = vmatprep.subr.mxu0 %v9809_v6  ;;  %4816 = vmatpush3.msra.mxu1 %v9720_v5  ;;  %v9818_v30 = vand.u32 4294901760, %v9817_v52  ;;  %v9820_v5 = vld [vmem:[#allocation43_spill] sm:$0xff]  ;;  %v9850_v19 = vand.u32 4294901760, %v9849_v34  ;;  %v2625_v52 = vsub.f32 %v7015_v37, %v9442_v47  ;;  %v559_v34 = vld [vmem:[%s9255_s1 + $0x1c8] sm:$0xff] }
 0x129   : > { %4736 = vmatpush3.msra.mxu0 %v9811_v39  ;;  %4817 = vmatprep.subr.mxu1 %v9812_v48  ;;  %v9821_v27 = vand.u32 4294901760, %v9820_v5 }
 0x12a   : > { %1742 = vmatmul.mubr.f32.gmra.mxu1 %v9814_v40  ;;  %1461 = vmatmul.mubr.f32.gmra.mxu0 %v6538_v11  ;;  %v565_v11 = vld [vmem:[%s9255_s1 + $0x1f8] sm:$0xff] }
 0x12b   : > { %1749 = vmatprep.mubr.f32.mxu1 %v9816_v53  ;;  %1467 = vmatprep.mubr.f32.mxu0 %v6547_v25  ;;  %v9824_v25 = vand.u32 4294901760, %v6661_v0  ;;  %v9857_v40 = vld [vmem:[#allocation62_spill] sm:$0xff] }
 0x12c   : > { %4737 = vmatprep.subr.mxu0 %v9818_v30  ;;  %4818 = vmatpush3.msra.mxu1 %v9819_v17  ;;  %v9861_v17 = vld [vmem:[#allocation55_spill] sm:$0xff] }
 0x12d   : > { %4738 = vmatpush3.msra.mxu0 %v9821_v27  ;;  %4819 = vmatprep.subr.mxu1 %v9822_v41  ;;  %v9862_v5 = vand.u32 4294901760, %v9861_v17  ;;  %v558_v17 = vld [vmem:[%s9255_s1 + $0x1c0] sm:$0xff] }
 0x12e   : > { %1753 = vmatmul.mubr.f32.gmra.mxu1 %v9823_v14  ;;  %1470 = vmatmul.mubr.f32.gmra.mxu0 %v6583_v61  ;;  %v6975_v61 = vand.u32 4294901760, %v565_v11  ;;  %v9863_v14 = vld [vmem:[#allocation59_spill] sm:$0xff] }
 0x12f   : > { %1760 = vmatprep.mubr.f32.mxu1 %v9824_v25  ;;  %1476 = vmatprep.mubr.f32.mxu0 %v6599_v26  ;;  %v9832_v26 = vand.u32 4294901760, %v6710_v38 }
 0x130   : > { %4739 = vmatprep.subr.mxu0 %v9826_v18  ;;  %4820 = vmatpush3.msra.mxu1 %v9729_v20  ;;  %9830 = vst [vmem:[#allocation41_spill] sm:$0xff] %v6975_v61  ;;  %v564_v20 = vld [vmem:[%s9255_s1 + $0x1f0] sm:$0xff]  ;;  %v6998_v8 = vsub.f32 %v565_v11, %v6975_v61  ;;  %v9864_v11 = vld [vmem:[#allocation56_spill] sm:$0xff] }
 0x131   : > { %4740 = vmatpush3.msra.mxu0 %v9828_v23  ;;  %4821 = vmatprep.subr.mxu1 %v9829_v16  ;;  %v7000_v50 = vand.u32 4294901760, %v564_v20  ;;  %v9865_v25 = vand.u32 4294901760, %v9864_v11  ;;  %v2626_v16 = vand.u32 4294901760, %v2625_v52  ;;  %v542_v11 = vld [vmem:[%s9255_s1 + $0x140] sm:$0xff] }
 0x132   : > { %1764 = vmatmul.mubr.f32.gmra.mxu1 %v9831_v2  ;;  %1479 = vmatmul.mubr.f32.gmra.mxu0 %v9813_v4  ;;  %9838 = vst [vmem:[#allocation49_spill] sm:$0xff] %v6998_v8  ;;  %v546_v4 = vld [vmem:[%s9255_s1 + $0x160] sm:$0xff] }
 0x133   : > { %1771 = vmatprep.mubr.f32.mxu1 %v9832_v26  ;;  %1485 = vmatprep.mubr.f32.mxu0 %v9815_v7  ;;  %9839 = vst [vmem:[#allocation52_spill] sm:$0xff] %v7000_v50  ;;  %v7024_v63 = vsub.f32 %v564_v20, %v7000_v50  ;;  %v9858_v7 = vld [vmem:[#allocation60_spill] sm:$0xff]  ;;  %v9872_v20 = vld [vmem:[#allocation58_spill] sm:$0xff] }
 0x134   : > { %4741 = vmatprep.subr.mxu0 %v9834_v43  ;;  %4822 = vmatpush3.msra.mxu1 %v9734_v54  ;;  %v548_v54 = vld [vmem:[%s9255_s1 + $0x170] sm:$0xff]  ;;  %v9873_v26 = vand.u32 4294901760, %v9872_v20 }
 0x135   : > { %4742 = vmatpush3.msra.mxu0 %v9837_v56  ;;  %4823 = vmatprep.subr.mxu1 %v6098_v22  ;;  %v9842_v22 = vld [vmem:[#allocation50_spill] sm:$0xff]  ;;  %v7021_v21 = vand.u32 4294901760, %v548_v54  ;;  %v9439_v39 = vand.u32 4294901760, %v7024_v63  ;;  %v560_v56 = vld [vmem:[%s9255_s1 + $0x1d0] sm:$0xff] }
 0x136   : > { %1775 = vmatmul.mubr.f32.gmra.mxu1 %v9840_v32  ;;  %1488 = vmatmul.mubr.f32.gmra.mxu0 %v6656_v60  ;;  %v9843_v12 = vand.u32 4294901760, %v9842_v22  ;;  %v9443_v60 = vand.u32 4294901760, %v6998_v8  ;;  %v544_v32 = vld [vmem:[%s9255_s1 + $0x150] sm:$0xff] }
 0x137   : > { %1782 = vmatprep.mubr.f32.mxu1 %v9841_v36  ;;  %1494 = vmatprep.mubr.f32.mxu0 %v6661_v0  ;;  %9846 = vst [vmem:[#allocation53_spill] sm:$0xff] %v7021_v21  ;;  %v563_v0 = vld [vmem:[%s9255_s1 + $0x1e8] sm:$0xff] }
 0x138   : > { %4743 = vmatprep.subr.mxu0 %v9843_v12  ;;  %4824 = vmatpush3.msra.mxu1 %v9738_v31  ;;  %v9847_v31 = vand.u32 4294901760, %v6763_v1  ;;  %v7042_v6 = vand.u32 4294901760, %v563_v0 }
 0x139   : > { %4744 = vmatpush3.msra.mxu0 %v9845_v33  ;;  %4825 = vmatprep.subr.mxu1 %v6106_v49  ;;  %v547_v49 = vld [vmem:[%s9255_s1 + $0x168] sm:$0xff]  ;;  %v7157_v33 = vand.u32 4294901760, %v560_v56 }
 0x13a   : > { %1786 = vmatmul.mubr.f32.gmra.mxu1 %v9847_v31  ;;  %1497 = vmatmul.mubr.f32.gmra.mxu0 %v6689_v59  ;;  %9851 = vst [vmem:[#allocation54_spill] sm:$0xff] %v7042_v6  ;;  %v562_v59 = vld [vmem:[%s9255_s1 + $0x1e0] sm:$0xff]  ;;  %v7057_v48 = vand.u32 4294901760, %v547_v49  ;;  %v7078_v30 = vsub.f32 %v563_v0, %v7042_v6 }
 0x13b   : > { %1793 = vmatprep.mubr.f32.mxu1 %v9848_v62  ;;  %1503 = vmatprep.mubr.f32.mxu0 %v6710_v38  ;;  %v7054_v38 = vsub.f32 %v548_v54, %v7021_v21  ;;  %v7070_v53 = vand.u32 4294901760, %v562_v59  ;;  %v9875_v54 = vld [vmem:[#allocation61_spill] sm:$0xff]  ;;  %9877 = vst [vmem:[#allocation18_spill] sm:$0xff] %v7157_v33  ;;  %v7165_v62 = vand.u32 4294901760, %v544_v32  ;;  %v7199_v52 = vsub.f32 %v560_v56, %v7157_v33 }
 0x13c   : > { %4826 = vmatpush3.msra.mxu1 %v6169_v44  ;;  %4745 = vmatprep.subr.mxu0 %v9850_v19  ;;  %v2737_v44 = vsub.f32 %v6998_v8, %v9443_v60  ;;  %9854 = vst [vmem:[#allocation63_spill] sm:$0xff] %v7057_v48  ;;  %v7093_v41 = vsub.f32 %v547_v49, %v7057_v48  ;;  %v9437_v24 = vand.u32 4294901760, %v7078_v30  ;;  %v543_v19 = vld [vmem:[%s9255_s1 + $0x148] sm:$0xff] }
 0x13d   : > { %4827 = vmatprep.subr.mxu1 %v6172_v45  ;;  %4746 = vmatpush3.msra.mxu0 %v9852_v58  ;;  %9853 = vst [vmem:[#allocation14_spill] sm:$0xff] %v7054_v38  ;;  %v9855_v45 = vand.u32 4294901760, %v6792_v42  ;;  %9859 = vst [vmem:[#allocation11_spill] sm:$0xff] %v7070_v53  ;;  %v9438_v27 = vand.u32 4294901760, %v7054_v38  ;;  %v7110_v18 = vsub.f32 %v562_v59, %v7070_v53  ;;  %v9880_v59 = vld [vmem:[#allocation65_spill] sm:$0xff]  ;;  %v9431_v20 = vand.u32 4294901760, %v7199_v52 }
 0x13e   : > { %1506 = vmatmul.mubr.f32.gmra.mxu0 %v6727_v15  ;;  %4828 = vmatpush3.msra.mxu1 %v9740_v28  ;;  %v7080_v15 = vand.u32 4294901760, %v546_v4  ;;  %v561_v28 = vld [vmem:[%s9255_s1 + $0x1d8] sm:$0xff]  ;;  %9879 = vst [vmem:[#allocation20_spill] sm:$0xff] %v7165_v62  ;;  %9881 = vst [vmem:[#allocation21_spill] sm:$0xff] %v7199_v52 }
 0x13f   : > { %1797 = vmatmul.mubr.f32.gmra.mxu1 %v9855_v45  ;;  %1512 = vmatprep.mubr.f32.mxu0 %v6748_v57  ;;  %v2738_v57 = vand.u32 4294901760, %v2737_v44  ;;  %9867 = vst [vmem:[#allocation67_spill] sm:$0xff] %v7110_v18  ;;  %v7112_v46 = vand.u32 4294901760, %v561_v28  ;;  %v2632_v43 = vsub.f32 %v7054_v38, %v9438_v27  ;;  %v9435_v36 = vand.u32 4294901760, %v7110_v18 }
 0x140   : > { %4264 = vmatprep.mubr.msk.f32.mxu1 %vm311_vm0, %v9856_v9  ;;  %4829 = vmatprep.subr.mxu1 %v9743_v10  ;;  %9860 = vst [vmem:[#allocation12_spill] sm:$0xff] %v7080_v15  ;;  %v2744_v10 = vsub.f32 %v7024_v63, %v9439_v39  ;;  %v7119_v2 = vsub.f32 %v546_v4, %v7080_v15 }
 0x141   : > { %4830 = vmatpush3.msra.mxu1 %v9746_v35  ;;  %4747 = vmatprep.subr.mxu0 %v9862_v5  ;;  %v545_v35 = vld [vmem:[%s9255_s1 + $0x158] sm:$0xff]  ;;  %9868 = vst [vmem:[#allocation13_spill] sm:$0xff] %v7112_v46  ;;  %v7150_v22 = vsub.f32 %v561_v28, %v7112_v46  ;;  %v2633_v0 = vand.u32 4294901760, %v2632_v43  ;;  %v2758_v58 = vsub.f32 %v7110_v18, %v9435_v36  ;;  %v7201_v28 = vand.u32 4294901760, %v559_v34 }
 0x142   : > { %1515 = vmatmul.mubr.f32.gmra.mxu0 %v6763_v1  ;;  %v9869_v1 = vld [vmem:[#allocation57_spill] sm:$0xff]  ;;  %9871 = vst [vmem:[#allocation17_spill] sm:$0xff] %v7119_v2  ;;  %4959 = vmatprep.subr.mxu1 %v2738_v57  ;;  %v2745_v55 = vand.u32 4294901760, %v2744_v10  ;;  %v7127_v29 = vand.u32 4294901760, %v545_v35  ;;  %v9434_v12 = vand.u32 4294901760, %v7119_v2  ;;  %v7209_v10 = vsub.f32 %v544_v32, %v7165_v62 }
 0x143   : > { %4265 = vmatmul.mubr.msk.f32.vlgmr.msra.gmra.mxu1 %vm310_vm1, %v9856_v9  ;;  %4748 = vmatpush3.msra.mxu0 %v9865_v25  ;;  %v9870_v23 = vand.u32 4294901760, %v9869_v1  ;;  %9876 = vst [vmem:[#allocation16_spill] sm:$0xff] %v7150_v22  ;;  %v9432_v44 = vand.u32 4294901760, %v7150_v22  ;;  %9882 = vst [vmem:[#allocation23_spill] sm:$0xff] %v7201_v28  ;;  %v9885_v25 = vld [vmem:[#allocation68_spill] sm:$0xff] }
 0x144   : > { %4266 = vmatprep.mubr.msk.f32.mxu1 %vm315_vm4, %v9856_v9  ;;  %1521 = vmatprep.mubr.f32.mxu0 %v6775_v13  ;;  %v9436_v13 = vand.u32 4294901760, %v7093_v41  ;;  %9874 = vst [vmem:[#allocation15_spill] sm:$0xff] %v7127_v29  ;;  %v7163_v49 = vsub.f32 %v545_v35, %v7127_v29  ;;  %v2646_v45 = vsub.f32 %v7119_v2, %v9434_v12  ;;  %9883 = vst [vmem:[#allocation22_spill] sm:$0xff] %v7209_v10 }
 0x145   : > { %4749 = vmatprep.subr.mxu0 %v9870_v23  ;;  %4960 = vmatpush3.msra.mxu1 %v2626_v16  ;;  %v7211_v35 = vand.u32 4294901760, %v543_v19  ;;  %v2765_v1 = vsub.f32 %v7150_v22, %v9432_v44  ;;  %v7235_v23 = vand.u32 4294901760, %v558_v17  ;;  %v2759_v16 = vand.u32 4294901760, %v2758_v58 }
 0x146   : > { %4750 = vmatpush3.msra.mxu0 %v9873_v26  ;;  %4961 = vmatprep.subr.mxu1 %v2745_v55  ;;  %v2639_v31 = vsub.f32 %v7093_v41, %v9436_v13  ;;  %9878 = vst [vmem:[#allocation19_spill] sm:$0xff] %v7163_v49  ;;  %v9430_v57 = vand.u32 4294901760, %v7163_v49  ;;  %v7240_v26 = vsub.f32 %v559_v34, %v7201_v28  ;;  %v7242_v55 = vand.u32 4294901760, %v542_v11  ;;  %v9891_v34 = vld [vmem:[#allocation69_spill] sm:$0xff] }
 0x147   : > { %4267 = vmatmul.mubr.msk.f32.gmra.mxu1 %vm314_vm5, %v9856_v9  ;;  %1524 = vmatmul.mubr.f32.gmra.mxu0 %v6792_v42  ;;  %v2751_v42 = vsub.f32 %v7078_v30, %v9437_v24  ;;  %9884 = vst [vmem:[#allocation26_spill] sm:$0xff] %v7211_v35  ;;  %9886 = vst [vmem:[#allocation24_spill] sm:$0xff] %v7235_v23  ;;  %v2647_v43 = vand.u32 4294901760, %v2646_v45  ;;  %v9433_v32 = vand.u32 4294901760, %v7209_v10 }
 0x148   : > { %4268 = vmatprep.mubr.msk.f32.mxu1 %vm319_vm2, %v9856_v9  ;;  %4232 = vmatprep.mubr.msk.f32.mxu0 %vm311_vm0, %v9856_v9  ;;  %v2640_v5 = vand.u32 4294901760, %v2639_v31  ;;  %9887 = vst [vmem:[#allocation25_spill] sm:$0xff] %v7240_v26  ;;  %9888 = vst [vmem:[#allocation27_spill] sm:$0xff] %v7242_v55  ;;  %v2653_v56 = vsub.f32 %v7163_v49, %v9430_v57  ;;  %vm9890_vm0 = vcmp.eq.s32.totalorder %v9885_v25, %v9863_v14  ;;  %v541_v31 = vld [vmem:[%s9255_s1 + $0x138] sm:$0xff] }
 0x149   : > { %4879 = vmatprep.subr.mxu0 %v6975_v61  ;;  %v2752_v4 = vand.u32 4294901760, %v2751_v42  ;;  %4962 = vmatpush3.msra.mxu1 %v2633_v0  ;;  %v7250_v42 = vsub.f32 %v543_v19, %v7211_v35  ;;  %v557_v0 = vld [vmem:[%s9255_s1 + $0x1b8] sm:$0xff]  ;;  %v2766_v19 = vand.u32 4294901760, %v2765_v1  ;;  %v7275_v58 = vsub.f32 %v558_v17, %v7235_v23  ;;  %v556_v1 = vld [vmem:[%s9255_s1 + $0x1b0] sm:$0xff] }
 0x14a   : > { %v9440_v45 = vand.u32 4294901760, %v7240_v26  ;;  %v7285_v57 = vand.u32 4294901760, %v557_v0  ;;  %v2654_v17 = vand.u32 4294901760, %v2653_v56  ;;  %v7295_v44 = vand.u32 4294901760, %v541_v31 }
 0x14b   : > { %4269 = vmatmul.mubr.msk.f32.gmra.mxu1 %vm318_vm3, %v9856_v9  ;;  %4233 = vmatmul.mubr.msk.f32.vlgmr.msra.gmra.mxu0 %vm310_vm1, %v9856_v9  ;;  %9889 = vst [vmem:[#allocation28_spill] sm:$0xff] %v7250_v42  ;;  %vm9892_vm1 = vcmp.eq.s32.totalorder %v9891_v34, %v9858_v7  ;;  %9893 = vst [vmem:[#allocation29_spill] sm:$0xff] %v7275_v58  ;;  %v9448_v56 = vand.u32 4294901760, %v7275_v58 }
 0x14c   : > { %4270 = vmatprep.mubr.msk.f32.mxu1 %vm323_vm6, %v9856_v9  ;;  %4880 = vmatpush3.msra.mxu0 %v6992_v51  ;;  %9895 = vst [vmem:[#allocation31_spill] sm:$0xff] %v7285_v57  ;;  %9896 = vst [vmem:[#allocation33_spill] sm:$0xff] %v7295_v44  ;;  %v2779_v36 = vsub.f32 %v7240_v26, %v9440_v45  ;;  %v7325_v24 = vsub.f32 %v557_v0, %v7285_v57  ;;  %v555_v45 = vld [vmem:[%s9255_s1 + $0x1a8] sm:$0xff]  ;;  %v554_v26 = vld [vmem:[%s9255_s1 + $0x1a0] sm:$0xff] }
 0x14d   : > { %4234 = vmatprep.mubr.msk.f32.mxu0 %vm315_vm4, %v9856_v9  ;;  %4881 = vmatprep.subr.mxu0 %v7000_v50  ;;  %v539_v0 = vld [vmem:[%s9255_s1 + $0x128] sm:$0xff] }
 0x14e   : > { %4882 = vmatpush3.msra.mxu0 %v7021_v21  ;;  %4963 = vmatprep.subr.mxu1 %v2752_v4  ;;  %v2772_v4 = vsub.f32 %v7199_v52, %v9431_v20  ;;  %v9441_v20 = vand.u32 4294901760, %v7250_v42  ;;  %9901 = vst [vmem:[#allocation36_spill] sm:$0xff] %v7325_v24  ;;  %v9460_v60 = vand.u32 4294901760, %v7325_v24 }
 0x14f   : > { %4271 = vmatmul.mubr.msk.f32.gmra.mxu1 %vm322_vm7, %v9856_v9  ;;  %4235 = vmatmul.mubr.msk.f32.gmra.mxu0 %vm314_vm5, %v9856_v9  ;;  %vm9905_vm5 = vmmov %vm9890_vm0 }
 0x150   : > { %4272 = vmatprep.mubr.msk.f32.mxu1 %vm327_vm8, %v9856_v9  ;;  %4236 = vmatprep.mubr.msk.f32.mxu0 %vm319_vm2, %v9856_v9  ;;  %vm9897_vm2 = vcmp.eq.s32.totalorder %v9891_v34, %v9863_v14  ;;  %v2773_v12 = vand.u32 4294901760, %v2772_v4  ;;  %v2667_v39 = vsub.f32 %v7250_v42, %v9441_v20  ;;  %v2780_v20 = vand.u32 4294901760, %v2779_v36 }
 0x151   : > { %4883 = vmatprep.subr.mxu0 %v7042_v6  ;;  %4964 = vmatpush3.msra.mxu1 %v2640_v5  ;;  %v7283_v5 = vsub.f32 %v542_v11, %v7242_v55  ;;  %v540_v11 = vld [vmem:[%s9255_s1 + $0x130] sm:$0xff]  ;;  %v7369_v42 = vand.u32 4294901760, %v555_v45 }
 0x152   : > { %4884 = vmatpush3.msra.mxu0 %v7057_v48  ;;  %4965 = vmatprep.subr.mxu1 %v2759_v16  ;;  %v2660_v16 = vsub.f32 %v7209_v10, %v9433_v32  ;;  %v7317_v32 = vand.u32 4294901760, %v556_v1  ;;  %v7334_v4 = vand.u32 4294901760, %v540_v11 }
 0x153   : > { %4273 = vmatmul.mubr.msk.f32.gmra.mxu1 %vm9890_vm0, %v9856_v9  ;;  %4237 = vmatmul.mubr.msk.f32.gmra.mxu0 %vm318_vm3, %v9856_v9  ;;  %9894 = vst [vmem:[#allocation30_spill] sm:$0xff] %v7283_v5  ;;  %v9449_v13 = vand.u32 4294901760, %v7283_v5  ;;  %9910 = vst [vmem:[#allocation79_spill] sm:$0xff] %v7369_v42 }
 0x154   : > { %4274 = vmatprep.mubr.msk.f32.mxu1 %vm9892_vm1, %v9856_v9  ;;  %4238 = vmatprep.mubr.msk.f32.mxu0 %vm323_vm6, %v9856_v9  ;;  %9900 = vst [vmem:[#allocation32_spill] sm:$0xff] %v7317_v32  ;;  %v2661_v27 = vand.u32 4294901760, %v2660_v16  ;;  %9903 = vst [vmem:[#allocation35_spill] sm:$0xff] %v7334_v4  ;;  %v7362_v16 = vsub.f32 %v556_v1, %v7317_v32  ;;  %v2668_v1 = vand.u32 4294901760, %v2667_v39  ;;  %v9915_v39 = vld [vmem:[#allocation72_spill] sm:$0xff] }
 0x155   : > { %4885 = vmatprep.subr.mxu0 %v7070_v53  ;;  %4966 = vmatpush3.msra.mxu1 %v2647_v43  ;;  %v9898_v43 = vld [vmem:[#allocation70_spill] sm:$0xff]  ;;  %v2674_v47 = vsub.f32 %v7283_v5, %v9449_v13  ;;  %v7377_v36 = vsub.f32 %v540_v11, %v7334_v4  ;;  %v538_v13 = vld [vmem:[%s9255_s1 + $0x120] sm:$0xff]  ;;  %vm9914_vm0 = vmmov %vm9897_vm2  ;;  %v7401_v11 = vand.u32 4294901760, %v554_v26  ;;  %v2793_v5 = vsub.f32 %v7325_v24, %v9460_v60 }
 0x156   : > { %4886 = vmatpush3.msra.mxu0 %v7080_v15  ;;  %vm9899_vm3 = vcmp.eq.s32.totalorder %v9898_v43, %v9858_v7  ;;  %4967 = vmatprep.subr.mxu1 %v2766_v19  ;;  %v7332_v19 = vsub.f32 %v541_v31, %v7295_v44  ;;  %vm9904_vm4 = vcmp.eq.s32.totalorder %v9898_v43, %v9863_v14  ;;  %v9906_v31 = vld [vmem:[#allocation71_spill] sm:$0xff]  ;;  %v7410_v10 = vand.u32 4294901760, %v538_v13 }
 0x157   : > { %4275 = vmatmul.mubr.msk.f32.gmra.mxu1 %vm9897_vm2, %v9856_v9  ;;  %4239 = vmatmul.mubr.msk.f32.gmra.mxu0 %vm322_vm7, %v9856_v9  ;;  %vm9907_vm6 = vcmp.eq.s32.totalorder %v9906_v31, %v9858_v7  ;;  %vm9908_vm7 = vmmov %vm9892_vm1  ;;  %9909 = vst [vmem:[#allocation77_spill] sm:$0xff] %v7362_v16  ;;  %vm9916_vm1 = vcmp.eq.s32.totalorder %v9915_v39, %v9858_v7 }
 0x158   : > { %4276 = vmatprep.mubr.msk.f32.mxu1 %vm9899_vm3, %v9856_v9  ;;  %4240 = vmatprep.mubr.msk.f32.mxu0 %vm327_vm8, %v9856_v9  ;;  %9902 = vst [vmem:[#allocation37_spill] sm:$0xff] %v7332_v19  ;;  %9911 = vst [vmem:[#allocation38_spill] sm:$0xff] %v7377_v36  ;;  %vm9913_vm8 = vcmp.eq.s32.totalorder %v9906_v31, %v9863_v14  ;;  %v7446_v60 = vsub.f32 %v554_v26, %v7401_v11 }
 0x159   : > { %4887 = vmatprep.subr.mxu0 %v7112_v46  ;;  %4968 = vmatpush3.msra.mxu1 %v2654_v17  ;;  %v2786_v17 = vsub.f32 %v7275_v58, %v9448_v56  ;;  %vm9917_vm2 = vmmov %vm9899_vm3  ;;  %9918 = vst [vmem:[#allocation43_spill] sm:$0xff] %v7401_v11  ;;  %v7408_v58 = vsub.f32 %v555_v45, %v7369_v42  ;;  %v553_v45 = vld [vmem:[%s9255_s1 + $0x198] sm:$0xff] }
 0x15a   : > { %4888 = vmatpush3.msra.mxu0 %v7127_v29  ;;  %4969 = vmatprep.subr.mxu1 %v2773_v12  ;;  %v7379_v12 = vand.u32 4294901760, %v539_v0  ;;  %vm9922_vm3 = vcmp.eq.s32.totalorder %v9915_v39, %v9863_v14  ;;  %9926 = vst [vmem:[#allocation46_spill] sm:$0xff] %v7446_v60  ;;  %v7451_v24 = vsub.f32 %v538_v13, %v7410_v10  ;;  %v536_v13 = vld [vmem:[%s9255_s1 + $0x110] sm:$0xff] }
 0x15b   : > { %4277 = vmatmul.mubr.msk.f32.gmra.mxu1 %vm9904_vm4, %v9856_v9  ;;  %4241 = vmatmul.mubr.msk.f32.gmra.mxu0 %vm9905_vm5, %v9856_v9  ;;  %v2787_v56 = vand.u32 4294901760, %v2786_v17  ;;  %9919 = vst [vmem:[#allocation40_spill] sm:$0xff] %v7408_v58 }
 0x15c   : > { %4278 = vmatprep.mubr.msk.f32.mxu1 %vm9907_vm6, %v9856_v9  ;;  %4242 = vmatprep.mubr.msk.f32.mxu0 %vm9908_vm7, %v9856_v9  ;;  %9912 = vst [vmem:[#allocation39_spill] sm:$0xff] %v7379_v12  ;;  %v7418_v17 = vsub.f32 %v539_v0, %v7379_v12  ;;  %v9923_v0 = vld [vmem:[#allocation73_spill] sm:$0xff]  ;;  %9927 = vst [vmem:[#allocation42_spill] sm:$0xff] %v7451_v24  ;;  %v9942_v49 = vand.u32 4294901760, %v7451_v24 }
 0x15d   : > { %4889 = vmatprep.subr.mxu0 %v7157_v33  ;;  %4970 = vmatpush3.msra.mxu1 %v2661_v27  ;;  %v9920_v27 = vand.u32 4294901760, %v7332_v19  ;;  %vm9924_vm5 = vcmp.eq.s32.totalorder %v9923_v0, %v9858_v7  ;;  %vm9930_vm7 = vcmp.eq.s32.totalorder %v9923_v0, %v9863_v14 }
 0x15e   : > { %4890 = vmatpush3.msra.mxu0 %v7165_v62  ;;  %4971 = vmatprep.subr.mxu1 %v2780_v20  ;;  %v2675_v62 = vand.u32 4294901760, %v2674_v47  ;;  %9921 = vst [vmem:[#allocation45_spill] sm:$0xff] %v7418_v17  ;;  %v537_v47 = vld [vmem:[%s9255_s1 + $0x118] sm:$0xff]  ;;  %v2794_v20 = vand.u32 4294901760, %v2793_v5  ;;  %v552_v5 = vld [vmem:[%s9255_s1 + $0x190] sm:$0xff]  ;;  %v2702_v29 = vsub.f32 %v7451_v24, %v9942_v49 }
 0x15f   : > { %4279 = vmatmul.mubr.msk.f32.gmra.mxu1 %vm9913_vm8, %v9856_v9  ;;  %4243 = vmatmul.mubr.msk.f32.gmra.mxu0 %vm9914_vm0, %v9856_v9  ;;  %v2681_v52 = vsub.f32 %v7332_v19, %v9920_v27  ;;  %v9481_v19 = vand.u32 4294901760, %v7408_v58  ;;  %v7496_v33 = vand.u32 4294901760, %v552_v5 }
 0x160   : > { %4280 = vmatprep.mubr.msk.f32.mxu1 %vm9916_vm1, %v9856_v9  ;;  %4244 = vmatprep.mubr.msk.f32.mxu0 %vm9917_vm2, %v9856_v9  ;;  %v2703_v24 = vand.u32 4294901760, %v2702_v29 }
 0x161   : > { %4891 = vmatprep.subr.mxu0 %v7201_v28  ;;  %4972 = vmatpush3.msra.mxu1 %v2668_v1  ;;  %v9925_v1 = vand.u32 4294901760, %v7362_v16  ;;  %v2682_v28 = vand.u32 4294901760, %v2681_v52  ;;  %v7545_v46 = vsub.f32 %v552_v5, %v7496_v33 }
 0x162   : > { %4892 = vmatpush3.msra.mxu0 %v7211_v35  ;;  %4973 = vmatprep.subr.mxu1 %v2787_v56  ;;  %v7453_v35 = vand.u32 4294901760, %v553_v45 }
 0x163   : > { %4281 = vmatmul.mubr.msk.f32.gmra.mxu1 %vm9922_vm3, %v9856_v9  ;;  %4245 = vmatmul.mubr.msk.f32.gmra.mxu0 %vm9904_vm4, %v9856_v9  ;;  %v2800_v27 = vsub.f32 %v7362_v16, %v9925_v1  ;;  %v9929_v1 = vand.u32 4294901760, %v7377_v36  ;;  %v2807_v16 = vsub.f32 %v7408_v58, %v9481_v19  ;;  %v534_v58 = vld [vmem:[%s9255_s1 + $0x100] sm:$0xff] }
 0x164   : > { %4282 = vmatprep.mubr.msk.f32.mxu1 %vm9924_vm5, %v9856_v9  ;;  %4246 = vmatprep.mubr.msk.f32.mxu0 %vm9907_vm6, %v9856_v9  ;;  %9928 = vst [vmem:[#allocation47_spill] sm:$0xff] %v7453_v35 }
 0x165   : > { %4893 = vmatprep.subr.mxu0 %v7235_v23  ;;  %4974 = vmatpush3.msra.mxu1 %v2675_v62  ;;  %v2688_v26 = vsub.f32 %v7377_v36, %v9929_v1  ;;  %v7460_v23 = vand.u32 4294901760, %v537_v47  ;;  %v9931_v62 = vld [vmem:[#allocation74_spill] sm:$0xff]  ;;  %v2801_v52 = vand.u32 4294901760, %v2800_v27  ;;  %v551_v1 = vld [vmem:[%s9255_s1 + $0x188] sm:$0xff]  ;;  %v7508_v36 = vand.u32 4294901760, %v536_v13 }
 0x166   : > { %4894 = vmatpush3.msra.mxu0 %v7242_v55  ;;  %vm9932_vm0 = vcmp.eq.s32.totalorder %v9931_v62, %v9858_v7  ;;  %4975 = vmatprep.subr.mxu1 %v2794_v20  ;;  %v7494_v55 = vsub.f32 %v553_v45, %v7453_v35  ;;  %v535_v27 = vld [vmem:[%s9255_s1 + $0x108] sm:$0xff]  ;;  %v9934_v20 = vand.u32 4294901760, %v7418_v17  ;;  %vm9936_vm2 = vcmp.eq.s32.totalorder %v9931_v62, %v9863_v14  ;;  %v550_v45 = vld [vmem:[%s9255_s1 + $0x180] sm:$0xff] }
 0x167   : > { %4283 = vmatmul.mubr.msk.f32.gmra.mxu1 %vm9930_vm7, %v9856_v9  ;;  %4247 = vmatmul.mubr.msk.f32.gmra.mxu0 %vm9913_vm8, %v9856_v9  ;;  %v2689_v56 = vand.u32 4294901760, %v2688_v26  ;;  %v7506_v19 = vsub.f32 %v537_v47, %v7460_v23  ;;  %v9938_v47 = vld [vmem:[#allocation75_spill] sm:$0xff]  ;;  %v9940_v26 = vand.u32 4294901760, %v7446_v60  ;;  %v7550_v2 = vsub.f32 %v536_v13, %v7508_v36  ;;  %vm9949_vm8 = vmmov %vm9932_vm0 }
 0x168   : > { %4284 = vmatprep.mubr.msk.f32.mxu1 %vm9932_vm0, %v9856_v9  ;;  %4248 = vmatprep.mubr.msk.f32.mxu0 %vm9916_vm1, %v9856_v9  ;;  %9933 = vst [vmem:[#allocation48_spill] sm:$0xff] %v7494_v55  ;;  %vm9939_vm4 = vcmp.eq.s32.totalorder %v9938_v47, %v9858_v7  ;;  %v9504_v22 = vand.u32 4294901760, %v7494_v55  ;;  %vm9945_vm6 = vcmp.eq.s32.totalorder %v9938_v47, %v9863_v14  ;;  %vm9956_vm1 = vmmov %vm9936_vm2 }
 0x169   : > { %4895 = vmatprep.subr.mxu0 %v7285_v57  ;;  %4976 = vmatpush3.msra.mxu1 %v2682_v28  ;;  %v2695_v57 = vsub.f32 %v7418_v17, %v9934_v20  ;;  %9935 = vst [vmem:[#allocation50_spill] sm:$0xff] %v7506_v19  ;;  %v7518_v28 = vand.u32 4294901760, %v551_v1  ;;  %v2814_v20 = vsub.f32 %v7446_v60, %v9940_v26  ;;  %v7534_v17 = vand.u32 4294901760, %v535_v27 }
 0x16a   : > { %4896 = vmatpush3.msra.mxu0 %v7295_v44  ;;  %4977 = vmatprep.subr.mxu1 %v2801_v52  ;;  %v2808_v44 = vand.u32 4294901760, %v2807_v16  ;;  %9943 = vst [vmem:[#allocation55_spill] sm:$0xff] %v7550_v2  ;;  %v7552_v52 = vand.u32 4294901760, %v550_v45  ;;  %v9948_v16 = vld [vmem:[#allocation76_spill] sm:$0xff]  ;;  %v7584_v60 = vadd.s32 384, %v9863_v14 }
 0x16b   : > { %4285 = vmatmul.mubr.msk.f32.gmra.mxu1 %vm9936_vm2, %v9856_v9  ;;  %4249 = vmatmul.mubr.msk.f32.gmra.mxu0 %vm9922_vm3, %v9856_v9  ;;  %9937 = vst [vmem:[#allocation51_spill] sm:$0xff] %v7518_v28  ;;  %9941 = vst [vmem:[#allocation60_spill] sm:$0xff] %v7534_v17  ;;  %v2696_v26 = vand.u32 4294901760, %v2695_v57  ;;  %v7563_v49 = vsub.f32 %v551_v1, %v7518_v28  ;;  %v7565_v57 = vand.u32 4294901760, %v534_v58  ;;  %v2815_v13 = vand.u32 4294901760, %v2814_v20 }
 0x16c   : > { %4286 = vmatprep.mubr.msk.f32.mxu1 %vm9939_vm4, %v9856_v9  ;;  %4250 = vmatprep.mubr.msk.f32.mxu0 %vm9924_vm5, %v9856_v9  ;;  %9944 = vst [vmem:[#allocation59_spill] sm:$0xff] %v7552_v52  ;;  %v7576_v5 = vsub.f32 %v535_v27, %v7534_v17  ;;  %v9509_v1 = vand.u32 4294901760, %v7545_v46  ;;  %9951 = vst [vmem:[#allocation81_spill] sm:$0xff] %v7584_v60  ;;  %v9952_v27 = vand.u32 4294901760, %v7506_v19 }
 0x16d   : > { %4897 = vmatprep.subr.mxu0 %v7317_v32  ;;  %4978 = vmatpush3.msra.mxu1 %v2689_v56  ;;  %9946 = vst [vmem:[#allocation56_spill] sm:$0xff] %v7563_v49  ;;  %9947 = vst [vmem:[#allocation57_spill] sm:$0xff] %v7565_v57  ;;  %v2821_v56 = vsub.f32 %v7494_v55, %v9504_v22  ;;  %v7592_v20 = vsub.f32 %v550_v45, %v7552_v52  ;;  %v7595_v22 = vadd.s32 256, %v9863_v14  ;;  %v9958_v45 = vld [vmem:[#allocation78_spill] sm:$0xff] }
 0x16e   : > { %4898 = vmatpush3.msra.mxu0 %v7334_v4  ;;  %9950 = vst [vmem:[#allocation58_spill] sm:$0xff] %v7576_v5  ;;  %4979 = vmatprep.subr.mxu1 %v2808_v44  ;;  %v2709_v4 = vsub.f32 %v7506_v19, %v9952_v27  ;;  %vm9955_vm0 = vcmp.eq.s32.totalorder %v9948_v16, %v9863_v14  ;;  %vm9959_vm2 = vmmov %vm9939_vm4  ;;  %v9960_v19 = vand.u32 4294901760, %v7550_v2  ;;  %v9965_v27 = vmov 0.0  }
 0x16f   : > { %4287 = vmatmul.mubr.msk.f32.gmra.mxu1 %vm9945_vm6, %v9856_v9  ;;  %4251 = vmatmul.mubr.msk.f32.gmra.mxu0 %vm9930_vm7, %v9856_v9  ;;  %9953 = vst [vmem:[#allocation82_spill] sm:$0xff] %v7592_v20  ;;  %9954 = vst [vmem:[#allocation83_spill] sm:$0xff] %v7595_v22  ;;  %v2822_v44 = vand.u32 4294901760, %v2821_v56  ;;  %vm313_vm3 = vcmp.eq.s32.totalorder %v9857_v40, %v7584_v60  ;;  %vm312_vm4 = vcmp.eq.s32.totalorder %v9857_v40, %v7595_v22 }
 0x170   : > { %4288 = vmatprep.mubr.msk.f32.mxu1 %vm359_vm11, %v9856_v9  ;;  %4252 = vmatprep.mubr.msk.f32.mxu0 %vm9949_vm8, %v9856_v9  ;;  %v2710_v29 = vand.u32 4294901760, %v2709_v4  ;;  %v2716_v55 = vsub.f32 %v7550_v2, %v9960_v19  ;;  %vm9961_vm5 = vmmov %vm9945_vm6  ;;  %v9964_v56 = vand.u32 4294901760, %v7576_v5  ;;  %vm316_vm7 = vcmp.eq.s32.totalorder %v9866_v3, %v7595_v22 }
 0x171   : > { %4899 = vmatprep.subr.mxu0 %v7369_v42  ;;  %4980 = vmatpush3.msra.mxu1 %v2696_v26  ;;  %v7607_v26 = vsub.f32 %v534_v58, %v7565_v57  ;;  %v2828_v58 = vsub.f32 %v7545_v46, %v9509_v1  ;;  %vm9967_vm6 = vmmov %vm9955_vm0  ;;  %vm321_vm8 = vcmp.eq.s32.totalorder %v9875_v54, %v7584_v60 }
 0x172   : > { %4900 = vmatpush3.msra.mxu0 %v7379_v12  ;;  %4981 = vmatprep.subr.mxu1 %v2815_v13  ;;  %v9963_v13 = vld [vmem:[#allocation34_spill] sm:$0xff]  ;;  %v2723_v1 = vsub.f32 %v7576_v5, %v9964_v56  ;;  %v2717_v2 = vand.u32 4294901760, %v2716_v55  ;;  %v9966_v56 = vand.u32 4294901760, %v7592_v20 }
 0x173   : > { %4289 = vmatmul.mubr.msk.f32.gmra.mxu1 %vm9955_vm0, %v9856_v9  ;;  %4253 = vmatmul.mubr.msk.f32.gmra.mxu0 %vm9956_vm1, %v9856_v9  ;;  %9957 = vst [vmem:[#allocation84_spill] sm:$0xff] %v7607_v26  ;;  %v2829_v19 = vand.u32 4294901760, %v2828_v58  ;;  %v9969_v55 = vand.u32 4294901760, %v7607_v26  ;;  %vm324_vm0 = vcmp.eq.s32.totalorder %v9880_v59, %v7595_v22  ;;  %vm9556_vm1 = vcmp.eq.s32.totalorder %v9898_v43, %v7584_v60 }
 0x174   : > { %4290 = vmatprep.mubr.msk.f32.mxu1 %vm363_vm13, %v9856_v9  ;;  %4254 = vmatprep.mubr.msk.f32.mxu0 %vm9959_vm2, %v9856_v9  ;;  %v2842_v5 = vsub.f32 %v7592_v20, %v9966_v56  ;;  %v9970_v56 = vld [vmem:[#allocation80_spill] sm:$0xff]  ;;  %v2724_v20 = vand.u32 4294901760, %v2723_v1  ;;  %vm9559_vm2 = vcmp.eq.s32.totalorder %v9898_v43, %v7595_v22 }
 0x175   : > { %4901 = vmatprep.subr.mxu0 %v7401_v11  ;;  %4982 = vmatpush3.msra.mxu1 %v2703_v24  ;;  %v9962_v24 = vand.u32 4294901760, %v7563_v49  ;;  %v2730_v58 = vsub.f32 %v7607_v26, %v9969_v55 }
 0x176   : > { %4902 = vmatpush3.msra.mxu0 %v7410_v10  ;;  %4983 = vmatprep.subr.mxu1 %v2822_v44  ;;  %v2843_v1 = vand.u32 4294901760, %v2842_v5  ;;  %v4147_v5 = vsel %vm321_vm8, 1.0, %v9965_v27 }
 0x177   : > { %4291 = vmatmul.mubr.msk.f32.gmra.mxu1 %vm362_vm12, %v9856_v9  ;;  %4255 = vmatmul.mubr.msk.f32.gmra.mxu0 %vm9961_vm5, %v9856_v9  ;;  %v2835_v4 = vsub.f32 %v7563_v49, %v9962_v24  ;;  %v4139_v24 = vsel %vm313_vm3, 1.0, %v9965_v27  ;;  %v4138_v49 = vsel %vm312_vm4, 1.0, %v9965_v27  ;;  %vm9561_vm5 = vcmp.eq.s32.totalorder %v9906_v31, %v7584_v60 }
 0x178   : > { %4292 = vmatprep.mubr.msk.f32.mxu1 %vm367_vm15, %v9856_v9  ;;  %4256 = vmatprep.mubr.msk.f32.mxu0 %vm359_vm11, %v9856_v9  ;;  %vm317_vm11 = vcmp.eq.s32.totalorder %v9866_v3, %v7584_v60 }
 0x179   : > { %4903 = vmatprep.subr.mxu0 %v7453_v35  ;;  %4984 = vmatpush3.msra.mxu1 %v2710_v29  ;;  %v2836_v44 = vand.u32 4294901760, %v2835_v4  ;;  %v7677_v29 = vsub.f32 %v4139_v24, %v4139_v24  ;;  %v7692_v4 = vsub.f32 %v4138_v49, %v4138_v49  ;;  %v4143_v24 = vsel %vm317_vm11, 1.0, %v9965_v27 }
 0x17a   : > { %4904 = vmatpush3.msra.mxu0 %v7460_v23  ;;  %4985 = vmatprep.subr.mxu1 %v2829_v19  ;;  %v2731_v49 = vand.u32 4294901760, %v2730_v58  ;;  %v4142_v19 = vsel %vm316_vm7, 1.0, %v9965_v27 }
 0x17b   : > { %4293 = vmatmul.mubr.msk.f32.gmra.mxu1 %vm366_vm14, %v9856_v9  ;;  %4257 = vmatmul.mubr.msk.f32.gmra.mxu0 %vm9967_vm6, %v9856_v9  ;;  %9968 = vst [vmem:[#allocation85_spill] sm:$0xff] %v7677_v29  ;;  %9971 = vst [vmem:[#allocation86_spill] sm:$0xff] %v7692_v4  ;;  %v9518_v55 = vand.u32 4294901760, %v7677_v29  ;;  %v7735_v58 = vsub.f32 %v4142_v19, %v4142_v19  ;;  %v9975_v40 = vand.u32 4294901760, %v7692_v4 }
 0x17c   : > { %4294 = vmatprep.mubr.msk.f32.mxu1 %vm371_vm9, %v9856_v9  ;;  %4258 = vmatprep.mubr.msk.f32.mxu0 %vm363_vm13, %v9856_v9  ;;  %vm320_vm13 = vcmp.eq.s32.totalorder %v9875_v54, %v7595_v22  ;;  %vm9566_vm6 = vcmp.eq.s32.totalorder %v9906_v31, %v7595_v22 }
 0x17d   : > { %4905 = vmatprep.subr.mxu0 %v7496_v33  ;;  %4986 = vmatpush3.msra.mxu1 %v2717_v2  ;;  %v7715_v2 = vsub.f32 %v4143_v24, %v4143_v24  ;;  %9973 = vst [vmem:[#allocation88_spill] sm:$0xff] %v7735_v58  ;;  %v7740_v24 = vsub.f32 %v4147_v5, %v4147_v5  ;;  %v4150_v5 = vsel %vm324_vm0, 1.0, %v9965_v27 }
 0x17e   : > { %4906 = vmatpush3.msra.mxu0 %v7508_v36  ;;  %4987 = vmatprep.subr.mxu1 %v2836_v44  ;;  %v2389_v26 = vsub.f32 %v7692_v4, %v9975_v40  ;;  %v7804_v7 = vsub.f32 %v4150_v5, %v4150_v5  ;;  %v9977_v5 = vand.u32 4294901760, %v7735_v58 }
 0x17f   : > { %4295 = vmatmul.mubr.msk.f32.gmra.mxu1 %vm370_vm10, %v9856_v9  ;;  %4259 = vmatmul.mubr.msk.f32.gmra.mxu0 %vm362_vm12, %v9856_v9  ;;  %9972 = vst [vmem:[#allocation87_spill] sm:$0xff] %v7715_v2  ;;  %vm325_vm12 = vcmp.eq.s32.totalorder %v9880_v59, %v7584_v60  ;;  %9974 = vst [vmem:[#allocation89_spill] sm:$0xff] %v7740_v24 }
 0x180   : > { %4988 = vmatpush3.msra.mxu1 %v2724_v20  ;;  %4296 = vmatprep.mubr.msk.f32.mxu1 %vm313_vm3, %v9856_v9  ;;  %v4511_v44 = vpop.f32.mrf.mxu1  ;;  %v2383_v20 = vsub.f32 %v7677_v29, %v9518_v55  ;;  %v4151_v19 = vsel %vm325_vm12, 1.0, %v9965_v27  ;;  %v2390_v14 = vand.u32 4294901760, %v2389_v26 }
 0x181   : > { %4260 = vmatprep.mubr.msk.f32.mxu0 %vm367_vm15, %v9856_v9  ;;  %4989 = vmatprep.subr.mxu1 %v2843_v1  ;;  %v4146_v1 = vsel %vm320_vm13, 1.0, %v9965_v27  ;;  %vm9552_vm15 = vcmp.eq.s32.totalorder %v9891_v34, %v7595_v22 }
 0x182   : > { %4907 = vmatprep.subr.mxu0 %v7518_v28  ;;  %4990 = vmatpush3.msra.mxu1 %v2731_v49  ;;  %v4512_v49 = vpop.f32.mrf.mxu1  ;;  %v2384_v40 = vand.u32 4294901760, %v2383_v20 }
 0x183   : > { %4908 = vmatpush3.msra.mxu0 %v7534_v17  ;;  %4297 = vmatmul.mubr.msk.f32.vlgmr.msra.gmra.mxu1 %vm312_vm4, %v9856_v9  ;;  %v7766_v55 = vadd.f32 %v4512_v49, %v4511_v44  ;;  %v7782_v44 = vsub.f32 %v4146_v1, %v4146_v1  ;;  %v7787_v49 = vsub.f32 %v4151_v19, %v4151_v19  ;;  %v9976_v1 = vand.u32 4294901760, %v7715_v2 }
 0x184   : > { %4261 = vmatmul.mubr.msk.f32.gmra.mxu0 %vm366_vm14, %v9856_v9  ;;  %4298 = vmatprep.mubr.msk.f32.mxu1 %vm317_vm11, %v9856_v9  ;;  %vm9587_vm14 = vcmp.eq.s32.totalorder %v9885_v25, %v7584_v60  ;;  %v4514_v29 = vpop.f32.mrf.mxu1 }
 0x185   : > { %4262 = vmatprep.mubr.msk.f32.mxu0 %vm371_vm9, %v9856_v9  ;;  %4909 = vmatprep.subr.mxu0 %v7552_v52  ;;  %vm9544_vm9 = vcmp.eq.s32.totalorder %v9885_v25, %v7595_v22  ;;  %v2398_v19 = vsub.f32 %v7715_v2, %v9976_v1  ;;  %v4155_v4 = vsel %vm9587_vm14, 1.0, %v9965_v27 }
 0x186   : > { %5119 = vmatprep.subr.mxu1 %v6975_v61  ;;  %4910 = vmatpush3.msra.mxu0 %v7565_v57  ;;  %v4515_v20 = vpop.f32.mrf.mxu1 }
 0x187   : > { %5120 = vmatpush3.msra.mxu1 %v6992_v51  ;;  %v7814_v3 = vadd.f32 %v4515_v20, %v4514_v29  ;;  %5039 = vmatprep.subr.mxu0 %v6998_v8  ;;  %v2404_v51 = vsub.f32 %v7735_v58, %v9977_v5  ;;  %v4154_v29 = vsel %vm9544_vm9, 1.0, %v9965_v27  ;;  %v7830_v20 = vsub.f32 %v4155_v4, %v4155_v4 }
 0x188   : > { %4299 = vmatmul.mubr.msk.f32.gmra.mxu1 %vm316_vm7, %v9856_v9  ;;  %4263 = vmatmul.mubr.msk.f32.gmra.mxu0 %vm370_vm10, %v9856_v9  ;;  %vm9546_vm10 = vcmp.eq.s32.totalorder %v9891_v34, %v7584_v60  ;;  %v4517_v1 = vpop.f32.mrf.mxu1  ;;  %v9978_v8 = vand.u32 4294901760, %v7740_v24  ;;  %v2399_v58 = vand.u32 4294901760, %v2398_v19  ;;  %v7854_v54 = vsub.f32 %v4154_v29, %v4154_v29 }
 0x189   : > { %4300 = vmatprep.mubr.msk.f32.mxu1 %vm321_vm8, %v9856_v9  ;;  %2385 = vmatprep.mubr.f32.mxu0 %v2384_v40  ;;  %v4431_v26 = vpop.f32.mrf.mxu0  ;;  %v4159_v4 = vsel %vm9546_vm10, 1.0, %v9965_v27  ;;  %v4158_v19 = vsel %vm9552_vm15, 1.0, %v9965_v27 }
 0x18a   : > { %5121 = vmatprep.subr.mxu1 %v7000_v50  ;;  %v2413_v5 = vsub.f32 %v7740_v24, %v9978_v8  ;;  %v4518_v40 = vpop.f32.mrf.mxu1  ;;  %v566_v50 = vld [vmem:[%s5768_s25] sm:$0xff]  ;;  %9979 = vst [vmem:[#allocation90_spill] sm:$0xff] %v7854_v54  ;;  %v7869_v2 = vsub.f32 %v4159_v4, %v4159_v4 }
 0x18b   : > { %5122 = vmatpush3.msra.mxu1 %v7021_v21  ;;  %v7851_v8 = vadd.f32 %v4518_v40, %v4517_v1  ;;  %v9980_v1 = vand.u32 4294901760, %v7782_v44 }
 0x18c   : > { %4301 = vmatmul.mubr.msk.f32.gmra.mxu1 %vm320_vm13, %v9856_v9  ;;  %2391 = vmatmul.mubr.f32.vlgmr.msra.gmra.mxu0 %v2390_v14  ;;  %v4432_v14 = vpop.f32.mrf.mxu0  ;;  %v4520_v21 = vpop.f32.mrf.mxu1  ;;  %v2414_v24 = vand.u32 4294901760, %v2413_v5  ;;  %9981 = vst [vmem:[#allocation91_spill] sm:$0xff] %v7869_v2  ;;  %v9984_v5 = vand.u32 4294901760, %v7804_v7 }
 0x18d   : > { %4302 = vmatprep.mubr.msk.f32.mxu1 %vm325_vm12, %v9856_v9  ;;  %5040 = vmatpush3.msra.mxu0 %v7015_v37  ;;  %v4433_v61 = vadd.f32 %v4432_v14, %v4431_v26  ;;  %v2405_v37 = vand.u32 4294901760, %v2404_v51  ;;  %v2419_v40 = vsub.f32 %v7782_v44, %v9980_v1 }
 0x18e   : > { %2400 = vmatprep.mubr.f32.mxu0 %v2399_v58  ;;  %5041 = vmatprep.subr.mxu0 %v7024_v63  ;;  %v4434_v29 = vpop.f32.mrf.mxu0  ;;  %v9982_v58 = vand.u32 4294901760, %v7787_v49  ;;  %v4521_v1 = vpop.f32.mrf.mxu1  ;;  %v2434_v4 = vsub.f32 %v7804_v7, %v9984_v5 }
 0x18f   : > { %5042 = vmatpush3.msra.mxu0 %v7054_v38  ;;  %5123 = vmatprep.subr.mxu1 %v7042_v6  ;;  %v691_v14 = vadd.f32 %v4433_v61, %v566_v50  ;;  %v7880_v38 = vsub.f32 %v4158_v19, %v4158_v19  ;;  %v7893_v61 = vadd.f32 %v4521_v1, %v4520_v21  ;;  %v567_v50 = vld [vmem:[%s5768_s25 + $0x8] sm:$0xff]  ;;  %v4162_v19 = vsel %vm9559_vm2, 1.0, %v9965_v27 }
 0x190   : > { %v2428_v26 = vsub.f32 %v7787_v49, %v9982_v58  ;;  %4303 = vmatmul.mubr.msk.f32.gmra.mxu1 %vm324_vm0, %v9856_v9  ;;  %2406 = vmatmul.mubr.f32.gmra.mxu0 %v2405_v37  ;;  %v4163_v58 = vsel %vm9556_vm1, 1.0, %v9965_v27  ;;  %v4435_v37 = vpop.f32.mrf.mxu0  ;;  %v2420_v6 = vand.u32 4294901760, %v2419_v40  ;;  %v4166_v40 = vsel %vm9566_vm6, 1.0, %v9965_v27 }
 0x191   : > { %9983 = vst [vmem:[#allocation92_spill] sm:$0xff] %v7880_v38  ;;  %4304 = vmatprep.mubr.msk.f32.mxu1 %vm9587_vm14, %v9856_v9  ;;  %2415 = vmatprep.mubr.f32.mxu0 %v2414_v24  ;;  %v4436_v51 = vadd.f32 %v4435_v37, %v4434_v29  ;;  %v4523_v59 = vpop.f32.mrf.mxu1  ;;  %v7908_v21 = vadd.f32 %v7766_v55, %v691_v14  ;;  %v9986_v29 = vand.u32 4294901760, %v7830_v20 }
 0x192   : > { %5043 = vmatprep.subr.mxu0 %v7078_v30  ;;  %5124 = vmatpush3.msra.mxu1 %v7057_v48  ;;  %v4437_v24 = vpop.f32.mrf.mxu0  ;;  %v2429_v1 = vand.u32 4294901760, %v2428_v26  ;;  %v7911_v5 = vsub.f32 %v4163_v58, %v4163_v58  ;;  %v7922_v14 = vsub.f32 %v4162_v19, %v4162_v19  ;;  %v4167_v26 = vsel %vm9561_vm5, 1.0, %v9965_v27 }
 0x193   : > { %5044 = vmatpush3.msra.mxu0 %v7093_v41  ;;  %v2443_v37 = vsub.f32 %v7830_v20, %v9986_v29  ;;  %5125 = vmatprep.subr.mxu1 %v7070_v53  ;;  %v706_v48 = vadd.f32 %v4436_v51, %v567_v50  ;;  %v4524_v55 = vpop.f32.mrf.mxu1  ;;  %v568_v50 = vld [vmem:[%s5768_s25 + $0x10] sm:$0xff]  ;;  %v9988_v19 = vand.u32 4294901760, %v7854_v54  ;;  %vm368_vm14 = vcmp.eq.s32.totalorder %v9963_v13, %v7595_v22 }
 0x194   : > { %9985 = vst [vmem:[#allocation93_spill] sm:$0xff] %v7911_v5  ;;  %4305 = vmatmul.mubr.msk.f32.gmra.mxu1 %vm9544_vm9, %v9856_v9  ;;  %2421 = vmatmul.mubr.f32.gmra.mxu0 %v2420_v6  ;;  %9987 = vst [vmem:[#allocation94_spill] sm:$0xff] %v7922_v14  ;;  %v7933_v51 = vadd.f32 %v4524_v55, %v4523_v59  ;;  %v4438_v6 = vpop.f32.mrf.mxu0  ;;  %vm9570_vm9 = vcmp.eq.s32.totalorder %v9915_v39, %v7584_v60  ;;  %v2435_v59 = vand.u32 4294901760, %v2434_v4  ;;  %v9992_v4 = vld [vmem:[#allocation13_spill] sm:$0xff] }
 0x195   : > { %4306 = vmatprep.mubr.msk.f32.mxu1 %vm9546_vm10, %v9856_v9  ;;  %2430 = vmatprep.mubr.f32.mxu0 %v2429_v1  ;;  %v2449_v29 = vsub.f32 %v7854_v54, %v9988_v19  ;;  %v4439_v58 = vadd.f32 %v4438_v6, %v4437_v24  ;;  %v4526_v25 = vpop.f32.mrf.mxu1  ;;  %vm9573_vm10 = vcmp.eq.s32.totalorder %v9915_v39, %v7595_v22  ;;  %v9989_v19 = vld [vmem:[#allocation17_spill] sm:$0xff]  ;;  %v2444_v53 = vand.u32 4294901760, %v2443_v37 }
 0x196   : > { %5045 = vmatprep.subr.mxu0 %v7110_v18  ;;  %5126 = vmatpush3.msra.mxu1 %v7080_v15  ;;  %v7950_v1 = vadd.f32 %v7814_v3, %v706_v48  ;;  %v4440_v55 = vpop.f32.mrf.mxu0  ;;  %v7953_v54 = vsub.f32 %v4167_v26, %v4167_v26  ;;  %v9991_v24 = vand.u32 4294901760, %v7869_v2  ;;  %v7964_v3 = vsub.f32 %v4166_v40, %v4166_v40 }
 0x197   : > { %5046 = vmatpush3.msra.mxu0 %v9989_v19  ;;  %5127 = vmatprep.subr.mxu1 %v9992_v4  ;;  %v721_v18 = vadd.f32 %v4439_v58, %v568_v50  ;;  %v4527_v48 = vpop.f32.mrf.mxu1  ;;  %v9994_v37 = vand.u32 4294901760, %v7880_v38  ;;  %v569_v50 = vld [vmem:[%s5768_s25 + $0x18] sm:$0xff]  ;;  %v9995_v4 = vld [vmem:[#allocation16_spill] sm:$0xff]  ;;  %v9997_v19 = vld [vmem:[#allocation19_spill] sm:$0xff] }
 0x198   : > { %9990 = vst [vmem:[#allocation95_spill] sm:$0xff] %v7953_v54  ;;  %v2458_v6 = vsub.f32 %v7869_v2, %v9991_v24  ;;  %4307 = vmatmul.mubr.msk.f32.gmra.mxu1 %vm9552_vm15, %v9856_v9  ;;  %2436 = vmatmul.mubr.f32.gmra.mxu0 %v2435_v59  ;;  %9993 = vst [vmem:[#allocation96_spill] sm:$0xff] %v7964_v3  ;;  %v4171_v24 = vsel %vm9570_vm9, 1.0, %v9965_v27  ;;  %v7977_v58 = vadd.f32 %v4527_v48, %v4526_v25  ;;  %v4441_v40 = vpop.f32.mrf.mxu0  ;;  %v9996_v25 = vld [vmem:[#allocation15_spill] sm:$0xff] }
 0x199   : > { %v2464_v26 = vsub.f32 %v7880_v38, %v9994_v37  ;;  %4308 = vmatprep.mubr.msk.f32.mxu1 %vm9556_vm1, %v9856_v9  ;;  %2445 = vmatprep.mubr.f32.mxu0 %v2444_v53  ;;  %v4170_v59 = vsel %vm9573_vm10, 1.0, %v9965_v27  ;;  %vm9575_vm15 = vcmp.eq.s32.totalorder %v9923_v0, %v7584_v60  ;;  %v4442_v15 = vadd.f32 %v4441_v40, %v4440_v55  ;;  %v4529_v34 = vpop.f32.mrf.mxu1 }
 0x19a   : > { %5047 = vmatprep.subr.mxu0 %v9995_v4  ;;  %v2450_v38 = vand.u32 4294901760, %v2449_v29  ;;  %5128 = vmatpush3.msra.mxu1 %v9996_v25  ;;  %vm9580_vm1 = vcmp.eq.s32.totalorder %v9923_v0, %v7595_v22  ;;  %v7992_v53 = vadd.f32 %v7851_v8, %v721_v18  ;;  %v4443_v48 = vpop.f32.mrf.mxu0  ;;  %v2459_v37 = vand.u32 4294901760, %v2458_v6  ;;  %v10000_v29 = vld [vmem:[#allocation18_spill] sm:$0xff] }
 0x19b   : > { %5048 = vmatpush3.msra.mxu0 %v9997_v19  ;;  %v7995_v2 = vsub.f32 %v4171_v24, %v4171_v24  ;;  %v9999_v55 = vand.u32 4294901760, %v7911_v5  ;;  %5129 = vmatprep.subr.mxu1 %v10000_v29  ;;  %v736_v4 = vadd.f32 %v4442_v15, %v569_v50  ;;  %v4530_v18 = vpop.f32.mrf.mxu1  ;;  %v8006_v8 = vsub.f32 %v4170_v59, %v4170_v59  ;;  %v570_v50 = vld [vmem:[%s5768_s25 + $0x20] sm:$0xff]  ;;  %v10003_v29 = vld [vmem:[#allocation21_spill] sm:$0xff] }
 0x19c   : > { %4309 = vmatmul.mubr.msk.f32.gmra.mxu1 %vm9559_vm2, %v9856_v9  ;;  %2451 = vmatmul.mubr.f32.gmra.mxu0 %v2450_v38  ;;  %v4175_v6 = vsel %vm9575_vm15, 1.0, %v9965_v27  ;;  %v8017_v15 = vadd.f32 %v4530_v18, %v4529_v34  ;;  %v4444_v38 = vpop.f32.mrf.mxu0  ;;  %v10002_v59 = vand.u32 4294901760, %v7922_v14  ;;  %v4174_v25 = vsel %vm9580_vm1, 1.0, %v9965_v27 }
 0x19d   : > { %9998 = vst [vmem:[#allocation97_spill] sm:$0xff] %v7995_v2  ;;  %v2473_v40 = vsub.f32 %v7911_v5, %v9999_v55  ;;  %10001 = vst [vmem:[#allocation98_spill] sm:$0xff] %v8006_v8  ;;  %4310 = vmatprep.mubr.msk.f32.mxu1 %vm9561_vm5, %v9856_v9  ;;  %2460 = vmatprep.mubr.f32.mxu0 %v2459_v37  ;;  %vm9584_vm2 = vcmp.eq.s32.totalorder %v9931_v62, %v7584_v60  ;;  %v4532_v43 = vpop.f32.mrf.mxu1  ;;  %v2465_v34 = vand.u32 4294901760, %v2464_v26  ;;  %v10004_v37 = vld [vmem:[#allocation20_spill] sm:$0xff]  ;;  %v10008_v26 = vld [vmem:[#allocation23_spill] sm:$0xff] }
 0x19e   : > { %v2479_v55 = vsub.f32 %v7922_v14, %v10002_v59  ;;  %v4445_v24 = vadd.f32 %v4444_v38, %v4443_v48  ;;  %5049 = vmatprep.subr.mxu0 %v10003_v29  ;;  %5130 = vmatpush3.msra.mxu1 %v10004_v37  ;;  %vm9595_vm5 = vcmp.eq.s32.totalorder %v9931_v62, %v7595_v22  ;;  %v4446_v59 = vpop.f32.mrf.mxu0  ;;  %v10005_v14 = vld [vmem:[#allocation22_spill] sm:$0xff]  ;;  %v10007_v48 = vand.u32 4294901760, %v7953_v54 }
 0x19f   : > { %v8034_v18 = vadd.f32 %v7893_v61, %v736_v4  ;;  %5050 = vmatpush3.msra.mxu0 %v10005_v14  ;;  %v2474_v19 = vand.u32 4294901760, %v2473_v40  ;;  %v8037_v5 = vsub.f32 %v4175_v6, %v4175_v6  ;;  %5131 = vmatprep.subr.mxu1 %v10008_v26  ;;  %v4533_v61 = vpop.f32.mrf.mxu1  ;;  %v8048_v4 = vsub.f32 %v4174_v25, %v4174_v25  ;;  %v10011_v26 = vld [vmem:[#allocation25_spill] sm:$0xff]  ;;  %v10013_v14 = vld [vmem:[#allocation28_spill] sm:$0xff] }
 0x1a0   : > { %v2488_v38 = vsub.f32 %v7953_v54, %v10007_v48  ;;  %v751_v29 = vadd.f32 %v4445_v24, %v570_v50  ;;  %4311 = vmatmul.mubr.msk.f32.gmra.mxu1 %vm9566_vm6, %v9856_v9  ;;  %2466 = vmatmul.mubr.f32.gmra.mxu0 %v2465_v34  ;;  %v10010_v40 = vand.u32 4294901760, %v7964_v3  ;;  %v4179_v48 = vsel %vm9584_vm2, 1.0, %v9965_v27  ;;  %v571_v50 = vld [vmem:[%s5768_s25 + $0x28] sm:$0xff]  ;;  %v4447_v25 = vpop.f32.mrf.mxu0 }
 0x1a1   : > { %10006 = vst [vmem:[#allocation99_spill] sm:$0xff] %v8037_v5  ;;  %10009 = vst [vmem:[#allocation100_spill] sm:$0xff] %v8048_v4  ;;  %4312 = vmatprep.mubr.msk.f32.mxu1 %vm9570_vm9, %v9856_v9  ;;  %v8061_v24 = vadd.f32 %v4533_v61, %v4532_v43  ;;  %2475 = vmatprep.mubr.f32.mxu0 %v2474_v19  ;;  %v4178_v34 = vsel %vm9595_vm5, 1.0, %v9965_v27  ;;  %vm9590_vm6 = vcmp.eq.s32.totalorder %v9938_v47, %v7584_v60  ;;  %v4535_v31 = vpop.f32.mrf.mxu1  ;;  %v10012_v43 = vld [vmem:[#allocation26_spill] sm:$0xff] }
 0x1a2   : > { %v2494_v6 = vsub.f32 %v7964_v3, %v10010_v40  ;;  %v4448_v37 = vadd.f32 %v4447_v25, %v4446_v59  ;;  %5051 = vmatprep.subr.mxu0 %v10011_v26  ;;  %v2480_v3 = vand.u32 4294901760, %v2479_v55  ;;  %5132 = vmatpush3.msra.mxu1 %v10012_v43  ;;  %vm356_vm9 = vcmp.eq.s32.totalorder %v9938_v47, %v7595_v22  ;;  %v4449_v61 = vpop.f32.mrf.mxu0  ;;  %v10016_v55 = vld [vmem:[#allocation24_spill] sm:$0xff] }
 0x1a3   : > { %v8076_v19 = vadd.f32 %v7933_v51, %v751_v29  ;;  %5052 = vmatpush3.msra.mxu0 %v10013_v14  ;;  %v2489_v40 = vand.u32 4294901760, %v2488_v38  ;;  %v8079_v54 = vsub.f32 %v4179_v48, %v4179_v48  ;;  %v10015_v59 = vand.u32 4294901760, %v7995_v2  ;;  %5133 = vmatprep.subr.mxu1 %v10016_v55  ;;  %v4536_v51 = vpop.f32.mrf.mxu1  ;;  %v10019_v55 = vld [vmem:[#allocation29_spill] sm:$0xff] }
 0x1a4   : > { %v766_v26 = vadd.f32 %v4448_v37, %v571_v50  ;;  %4313 = vmatmul.mubr.msk.f32.gmra.mxu1 %vm9573_vm10, %v9856_v9  ;;  %2481 = vmatmul.mubr.f32.gmra.mxu0 %v2480_v3  ;;  %v8090_v29 = vsub.f32 %v4178_v34, %v4178_v34  ;;  %v4183_v38 = vsel %vm9590_vm6, 1.0, %v9965_v27  ;;  %v8101_v37 = vadd.f32 %v4536_v51, %v4535_v31  ;;  %v572_v50 = vld [vmem:[%s5768_s25 + $0x30] sm:$0xff]  ;;  %v4450_v3 = vpop.f32.mrf.mxu0 }
 0x1a5   : > { %10014 = vst [vmem:[#allocation101_spill] sm:$0xff] %v8079_v54  ;;  %v2503_v25 = vsub.f32 %v7995_v2, %v10015_v59  ;;  %4314 = vmatprep.mubr.msk.f32.mxu1 %vm9575_vm15, %v9856_v9  ;;  %2490 = vmatprep.mubr.f32.mxu0 %v2489_v40  ;;  %v10018_v34 = vand.u32 4294901760, %v8006_v8  ;;  %v4182_v43 = vsel %vm356_vm9, 1.0, %v9965_v27  ;;  %vm9598_vm10 = vcmp.eq.s32.totalorder %v9948_v16, %v7584_v60  ;;  %v4538_v39 = vpop.f32.mrf.mxu1  ;;  %v10020_v40 = vld [vmem:[#allocation27_spill] sm:$0xff] }
 0x1a6   : > { %10017 = vst [vmem:[#allocation102_spill] sm:$0xff] %v8090_v29  ;;  %v4451_v48 = vadd.f32 %v4450_v3, %v4449_v61  ;;  %5053 = vmatprep.subr.mxu0 %v10019_v55  ;;  %v2495_v31 = vand.u32 4294901760, %v2494_v6  ;;  %5134 = vmatpush3.msra.mxu1 %v10020_v40  ;;  %vm360_vm15 = vcmp.eq.s32.totalorder %v9948_v16, %v7595_v22  ;;  %v10022_v61 = vand.u32 4294901760, %v8037_v5  ;;  %v10023_v6 = vld [vmem:[#allocation31_spill] sm:$0xff] }
 0x1a7   : > { %v2509_v59 = vsub.f32 %v8006_v8, %v10018_v34  ;;  %v8118_v51 = vadd.f32 %v7977_v58, %v766_v26  ;;  %v4452_v34 = vpop.f32.mrf.mxu0  ;;  %v10021_v8 = vld [vmem:[#allocation30_spill] sm:$0xff]  ;;  %v2504_v14 = vand.u32 4294901760, %v2503_v25  ;;  %v8121_v2 = vsub.f32 %v4183_v38, %v4183_v38  ;;  %5135 = vmatprep.subr.mxu1 %v10023_v6  ;;  %v4539_v58 = vpop.f32.mrf.mxu1  ;;  %v10026_v6 = vld [vmem:[#allocation36_spill] sm:$0xff] }
 0x1a8   : > { %5054 = vmatpush3.msra.mxu0 %v10021_v8  ;;  %v2518_v3 = vsub.f32 %v8037_v5, %v10022_v61  ;;  %v781_v55 = vadd.f32 %v4451_v48, %v572_v50  ;;  %4315 = vmatmul.mubr.msk.f32.gmra.mxu1 %vm9580_vm1, %v9856_v9  ;;  %v8132_v26 = vsub.f32 %v4182_v43, %v4182_v43  ;;  %v10025_v25 = vand.u32 4294901760, %v8048_v4  ;;  %v573_v50 = vld [vmem:[%s5768_s25 + $0x38] sm:$0xff]  ;;  %v10028_v8 = vld [vmem:[#allocation37_spill] sm:$0xff] }
 0x1a9   : > { %2496 = vmatmul.mubr.f32.gmra.mxu0 %v2495_v31  ;;  %v4187_v61 = vsel %vm9598_vm10, 1.0, %v9965_v27  ;;  %4316 = vmatprep.mubr.msk.f32.mxu1 %vm9584_vm2, %v9856_v9  ;;  %v8145_v48 = vadd.f32 %v4539_v58, %v4538_v39  ;;  %v4453_v43 = vpop.f32.mrf.mxu0  ;;  %v4186_v31 = vsel %vm360_vm15, 1.0, %v9965_v27  ;;  %vm365_vm1 = vcmp.eq.s32.totalorder %v9958_v45, %v7584_v60  ;;  %v4541_v0 = vpop.f32.mrf.mxu1  ;;  %v10027_v39 = vld [vmem:[#allocation33_spill] sm:$0xff] }
 0x1aa   : > { %10024 = vst [vmem:[#allocation103_spill] sm:$0xff] %v8132_v26  ;;  %v2524_v38 = vsub.f32 %v8048_v4, %v10025_v25  ;;  %2505 = vmatprep.mubr.f32.mxu0 %v2504_v14  ;;  %v4454_v40 = vadd.f32 %v4453_v43, %v4452_v34  ;;  %5055 = vmatprep.subr.mxu0 %v10026_v6  ;;  %v2510_v4 = vand.u32 4294901760, %v2509_v59  ;;  %v2519_v25 = vand.u32 4294901760, %v2518_v3 }
 0x1ab   : > { %5136 = vmatpush3.msra.mxu1 %v10027_v39  ;;  %vm364_vm2 = vcmp.eq.s32.totalorder %v9958_v45, %v7595_v22  ;;  %v8160_v14 = vadd.f32 %v8017_v15, %v781_v55  ;;  %v4455_v58 = vpop.f32.mrf.mxu0  ;;  %5056 = vmatpush3.msra.mxu0 %v10028_v8  ;;  %v8163_v5 = vsub.f32 %v4187_v61, %v4187_v61  ;;  %v10029_v34 = vand.u32 4294901760, %v8079_v54  ;;  %v4542_v55 = vpop.f32.mrf.mxu1  ;;  %v10032_v8 = vld [vmem:[#allocation77_spill] sm:$0xff] }
 0x1ac   : > { %5137 = vmatprep.subr.mxu1 %v7317_v32  ;;  %v796_v15 = vadd.f32 %v4454_v40, %v573_v50  ;;  %4317 = vmatmul.mubr.msk.f32.gmra.mxu1 %vm9595_vm5, %v9856_v9  ;;  %v8176_v3 = vsub.f32 %v4186_v31, %v4186_v31  ;;  %v4191_v61 = vsel %vm365_vm1, 1.0, %v9965_v27  ;;  %v8186_v40 = vadd.f32 %v4542_v55, %v4541_v0  ;;  %v574_v50 = vld [vmem:[%s5768_s25 + $0x40] sm:$0xff] }
 0x1ad   : > { %v2533_v43 = vsub.f32 %v8079_v54, %v10029_v34  ;;  %2511 = vmatmul.mubr.f32.gmra.mxu0 %v2510_v4  ;;  %4318 = vmatprep.mubr.msk.f32.mxu1 %vm9590_vm6, %v9856_v9  ;;  %v4456_v34 = vpop.f32.mrf.mxu0  ;;  %v10031_v4 = vand.u32 4294901760, %v8090_v29  ;;  %v4190_v59 = vsel %vm364_vm2, 1.0, %v9965_v27  ;;  %v4544_v39 = vpop.f32.mrf.mxu1  ;;  %v2525_v0 = vand.u32 4294901760, %v2524_v38  ;;  %v10033_v55 = vld [vmem:[#allocation35_spill] sm:$0xff]  ;;  %v575_v38 = vld [vmem:[%s5768_s25 + $0x48] sm:$0xff] }
 0x1ae   : > { %10030 = vst [vmem:[#allocation104_spill] sm:$0xff] %v8176_v3  ;;  %2520 = vmatprep.mubr.f32.mxu0 %v2519_v25  ;;  %v4457_v32 = vadd.f32 %v4456_v34, %v4455_v58  ;;  %5057 = vmatprep.subr.mxu0 %v10032_v8  ;;  %vm369_vm6 = vcmp.eq.s32.totalorder %v9963_v13, %v7584_v60  ;;  %v10035_v58 = vand.u32 4294901760, %v8121_v2 }
 0x1af   : > { %v2539_v31 = vsub.f32 %v8090_v29, %v10031_v4  ;;  %5138 = vmatpush3.msra.mxu1 %v10033_v55  ;;  %v8202_v25 = vadd.f32 %v8061_v24, %v796_v15  ;;  %v4458_v4 = vpop.f32.mrf.mxu0  ;;  %v10034_v29 = vld [vmem:[#allocation38_spill] sm:$0xff]  ;;  %v2534_v6 = vand.u32 4294901760, %v2533_v43  ;;  %v8205_v54 = vsub.f32 %v4191_v61, %v4191_v61  ;;  %v4545_v43 = vpop.f32.mrf.mxu1  ;;  %v10037_v55 = vld [vmem:[#allocation40_spill] sm:$0xff] }
 0x1b0   : > { %5058 = vmatpush3.msra.mxu0 %v10034_v29  ;;  %v2548_v34 = vsub.f32 %v8121_v2, %v10035_v58  ;;  %5139 = vmatprep.subr.mxu1 %v7369_v42  ;;  %vm372_vm5 = vcmp.eq.s32.totalorder %v9970_v56, %v7595_v22  ;;  %v4194_v24 = vsel %vm368_vm14, 1.0, %v9965_v27  ;;  %v811_v15 = vadd.f32 %v4457_v32, %v574_v50 }
 0x1b1   : > { %4319 = vmatmul.mubr.msk.f32.gmra.mxu1 %vm356_vm9, %v9856_v9  ;;  %2526 = vmatmul.mubr.f32.gmra.mxu0 %v2525_v0  ;;  %v8222_v61 = vsub.f32 %v4190_v59, %v4190_v59  ;;  %v8228_v58 = vadd.f32 %v4545_v43, %v4544_v39  ;;  %v4459_v62 = vpop.f32.mrf.mxu0  ;;  %v10036_v32 = vand.u32 4294901760, %v8132_v26  ;;  %v4195_v59 = vsel %vm369_vm6, 1.0, %v9965_v27  ;;  %v4547_v42 = vpop.f32.mrf.mxu1 }
 0x1b2   : > { %4320 = vmatprep.mubr.msk.f32.mxu1 %vm9598_vm10, %v9856_v9  ;;  %2535 = vmatprep.mubr.f32.mxu0 %v2534_v6  ;;  %v4460_v47 = vadd.f32 %v4459_v62, %v4458_v4  ;;  %v2540_v39 = vand.u32 4294901760, %v2539_v31  ;;  %vm373_vm10 = vcmp.eq.s32.totalorder %v9970_v56, %v7584_v60  ;;  %v8244_v6 = vadd.f32 %v8101_v37, %v811_v15 }
 0x1b3   : > { %v2554_v50 = vsub.f32 %v8132_v26, %v10036_v32  ;;  %5059 = vmatprep.subr.mxu0 %v10037_v55  ;;  %5140 = vmatpush3.msra.mxu1 %v7379_v12  ;;  %v4461_v43 = vpop.f32.mrf.mxu0  ;;  %v10038_v32 = vld [vmem:[#allocation45_spill] sm:$0xff]  ;;  %v2549_v26 = vand.u32 4294901760, %v2548_v34  ;;  %v10039_v0 = vand.u32 4294901760, %v8163_v5  ;;  %v4198_v4 = vsel %vm372_vm5, 1.0, %v9965_v27  ;;  %v4548_v34 = vpop.f32.mrf.mxu1  ;;  %v10041_v12 = vld [vmem:[#allocation46_spill] sm:$0xff] }
 0x1b4   : > { %5060 = vmatpush3.msra.mxu0 %v10038_v32  ;;  %5141 = vmatprep.subr.mxu1 %v7401_v11  ;;  %v826_v37 = vadd.f32 %v4460_v47, %v575_v38  ;;  %v8260_v15 = vsub.f32 %v4195_v59, %v4195_v59  ;;  %v8268_v31 = vadd.f32 %v4548_v34, %v4547_v42  ;;  %v576_v47 = vld [vmem:[%s5768_s25 + $0x50] sm:$0xff]  ;;  %v10040_v11 = vand.u32 4294901760, %v8176_v3 }
 0x1b5   : > { %v2563_v62 = vsub.f32 %v8163_v5, %v10039_v0  ;;  %4321 = vmatmul.mubr.msk.f32.gmra.mxu1 %vm360_vm15, %v9856_v9  ;;  %2541 = vmatmul.mubr.f32.gmra.mxu0 %v2540_v39  ;;  %v8262_v0 = vsub.f32 %v4194_v24, %v4194_v24  ;;  %v4462_v38 = vpop.f32.mrf.mxu0  ;;  %v4199_v24 = vsel %vm373_vm10, 1.0, %v9965_v27  ;;  %v4550_v39 = vpop.f32.mrf.mxu1  ;;  %v2555_v32 = vand.u32 4294901760, %v2554_v50 }
 0x1b6   : > { %4322 = vmatprep.mubr.msk.f32.mxu1 %vm365_vm1, %v9856_v9  ;;  %2550 = vmatprep.mubr.f32.mxu0 %v2549_v26  ;;  %v2569_v16 = vsub.f32 %v8176_v3, %v10040_v11  ;;  %v4463_v59 = vadd.f32 %v4462_v38, %v4461_v43  ;;  %v8282_v26 = vadd.f32 %v8145_v48, %v826_v37  ;;  %v10042_v11 = vld [vmem:[#allocation42_spill] sm:$0xff]  ;;  %v10043_v27 = vand.u32 4294901760, %v8205_v54 }
 0x1b7   : > { %5061 = vmatprep.subr.mxu0 %v10041_v12  ;;  %5142 = vmatpush3.msra.mxu1 %v7410_v10  ;;  %v4464_v34 = vpop.f32.mrf.mxu0  ;;  %v2564_v3 = vand.u32 4294901760, %v2563_v62  ;;  %v4551_v48 = vpop.f32.mrf.mxu1  ;;  %v8293_v50 = vsub.f32 %v4199_v24, %v4199_v24  ;;  %v8296_v42 = vsub.f32 %v4198_v4, %v4198_v4  ;;  %v10046_v4 = vand.u32 4294901760, %v8222_v61 }
 0x1b8   : > { %5062 = vmatpush3.msra.mxu0 %v10042_v11  ;;  %5143 = vmatprep.subr.mxu1 %v7453_v35  ;;  %v2578_v43 = vsub.f32 %v8205_v54, %v10043_v27  ;;  %v841_v38 = vadd.f32 %v4463_v59, %v576_v47  ;;  %v8302_v62 = vadd.f32 %v4551_v48, %v4550_v39  ;;  %v577_v47 = vld [vmem:[%s5768_s25 + $0x58] sm:$0xff]  ;;  %v2570_v27 = vand.u32 4294901760, %v2569_v16  ;;  %v10045_v35 = vld [vmem:[#allocation48_spill] sm:$0xff] }
 0x1b9   : > { %4323 = vmatmul.mubr.msk.f32.gmra.mxu1 %vm364_vm2, %v9856_v9  ;;  %2556 = vmatmul.mubr.f32.gmra.mxu0 %v2555_v32  ;;  %10044 = vst [vmem:[#allocation77_spill] sm:$0xff] %v8296_v42  ;;  %v4465_v59 = vpop.f32.mrf.mxu0  ;;  %v4553_v32 = vpop.f32.mrf.mxu1  ;;  %v2584_v24 = vsub.f32 %v8222_v61, %v10046_v4  ;;  %v10047_v48 = vld [vmem:[#allocation50_spill] sm:$0xff]  ;;  %v10048_v4 = vand.u32 4294901760, %v8260_v15 }
 0x1ba   : > { %4324 = vmatprep.mubr.msk.f32.mxu1 %vm369_vm6, %v9856_v9  ;;  %2565 = vmatprep.mubr.f32.mxu0 %v2564_v3  ;;  %v4466_v45 = vadd.f32 %v4465_v59, %v4464_v34  ;;  %v8312_v39 = vadd.f32 %v8186_v40, %v841_v38  ;;  %v2579_v16 = vand.u32 4294901760, %v2578_v43  ;;  %v10049_v40 = vand.u32 4294901760, %v8262_v0 }
 0x1bb   : > { %5063 = vmatprep.subr.mxu0 %v10045_v35  ;;  %5144 = vmatpush3.msra.mxu1 %v7460_v23  ;;  %v4467_v3 = vpop.f32.mrf.mxu0  ;;  %v4554_v59 = vpop.f32.mrf.mxu1  ;;  %v2593_v37 = vsub.f32 %v8260_v15, %v10048_v4  ;;  %v2585_v4 = vand.u32 4294901760, %v2584_v24 }
 0x1bc   : > { %5064 = vmatpush3.msra.mxu0 %v10047_v48  ;;  %5145 = vmatprep.subr.mxu1 %v7496_v33  ;;  %v856_v34 = vadd.f32 %v4466_v45, %v577_v47  ;;  %v8328_v43 = vadd.f32 %v4554_v59, %v4553_v32  ;;  %v578_v45 = vld [vmem:[%s5768_s25 + $0x60] sm:$0xff]  ;;  %v2599_v60 = vsub.f32 %v8262_v0, %v10049_v40  ;;  %v10051_v47 = vand.u32 4294901760, %v8293_v50 }
 0x1bd   : > { %4325 = vmatmul.mubr.msk.f32.gmra.mxu1 %vm368_vm14, %v9856_v9  ;;  %2571 = vmatmul.mubr.f32.gmra.mxu0 %v2570_v27  ;;  %v4468_v38 = vpop.f32.mrf.mxu0  ;;  %v4556_v13 = vpop.f32.mrf.mxu1  ;;  %v10050_v59 = vld [vmem:[#allocation55_spill] sm:$0xff] }
 0x1be   : > { %4326 = vmatprep.mubr.msk.f32.mxu1 %vm373_vm10, %v9856_v9  ;;  %2580 = vmatprep.mubr.f32.mxu0 %v2579_v16  ;;  %v4469_v27 = vadd.f32 %v4468_v38, %v4467_v3  ;;  %v8338_v32 = vadd.f32 %v8228_v58, %v856_v34  ;;  %v2594_v38 = vand.u32 4294901760, %v2593_v37  ;;  %v2608_v40 = vsub.f32 %v8293_v50, %v10051_v47  ;;  %v10052_v58 = vld [vmem:[#allocation85_spill] sm:$0xff] }
 0x1bf   : > { %5146 = vmatpush3.msra.mxu1 %v7508_v36  ;;  %5065 = vmatprep.subr.mxu0 %v7545_v46  ;;  %v4470_v16 = vpop.f32.mrf.mxu0  ;;  %v4557_v24 = vpop.f32.mrf.mxu1  ;;  %v10053_v34 = vand.u32 4294901760, %v10052_v58  ;;  %v10054_v37 = vand.u32 4294901760, %v8296_v42 }
 0x1c0   : > { %5147 = vmatprep.subr.mxu1 %v7518_v28  ;;  %5066 = vmatpush3.msra.mxu0 %v10050_v59  ;;  %v871_v3 = vadd.f32 %v4469_v27, %v578_v45  ;;  %v4558_v28 = vadd.f32 %v4557_v24, %v4556_v13  ;;  %v579_v59 = vld [vmem:[%s5768_s25 + $0x68] sm:$0xff] }
 0x1c1   : > { %4327 = vmatmul.mubr.msk.f32.gmra.mxu1 %vm372_vm5, %v9856_v9  ;;  %2586 = vmatmul.mubr.f32.gmra.mxu0 %v2585_v4  ;;  %v4471_v45 = vpop.f32.mrf.mxu0  ;;  %v2600_v4 = vand.u32 4294901760, %v2599_v60  ;;  %v2614_v56 = vsub.f32 %v8296_v42, %v10054_v37  ;;  %v10059_v60 = vld [vmem:[#allocation58_spill] sm:$0xff]  ;;  %v10065_v42 = vld [vmem:[#allocation88_spill] sm:$0xff] }
 0x1c2   : > { %5148 = vmatpush3.msra.mxu1 %v7534_v17  ;;  %3330 = vmatprep.mubr.f32.mxu1 %v10053_v34  ;;  %v4472_v27 = vadd.f32 %v4471_v45, %v4470_v16  ;;  %v8358_v47 = vadd.f32 %v8268_v31, %v871_v3  ;;  %v4671_v22 = vpop.f32.mrf.mxu1  ;;  %v10056_v34 = vld [vmem:[#allocation56_spill] sm:$0xff]  ;;  %v2609_v16 = vand.u32 4294901760, %v2608_v40  ;;  %v10060_v45 = vld [vmem:[#allocation87_spill] sm:$0xff]  ;;  %v580_v31 = vld [vmem:[%s5768_s25 + $0x70] sm:$0xff] }
 0x1c3   : > { %2595 = vmatprep.mubr.f32.mxu0 %v2594_v38  ;;  %5149 = vmatprep.subr.mxu1 %v7552_v52  ;;  %v4473_v13 = vpop.f32.mrf.mxu0  ;;  %v10057_v38 = vld [vmem:[#allocation86_spill] sm:$0xff]  ;;  %v10061_v52 = vand.u32 4294901760, %v10060_v45 }
 0x1c4   : > { %10055 = vst [vmem:[#allocation38_spill] sm:$0xff] %v8358_v47  ;;  %5150 = vmatpush3.msra.mxu1 %v7565_v57  ;;  %5067 = vmatprep.subr.mxu0 %v10056_v34  ;;  %v886_v24 = vadd.f32 %v4472_v27, %v579_v59  ;;  %v10058_v9 = vand.u32 4294901760, %v10057_v38  ;;  %v4672_v37 = vpop.f32.mrf.mxu1  ;;  %v10062_v34 = vld [vmem:[#allocation82_spill] sm:$0xff]  ;;  %v2615_v59 = vand.u32 4294901760, %v2614_v56  ;;  %v10066_v47 = vand.u32 4294901760, %v10065_v42 }
 0x1c5   : > { %2601 = vmatmul.mubr.f32.gmra.mxu0 %v2600_v4  ;;  %v4474_v3 = vpop.f32.mrf.mxu0  ;;  %v4673_v17 = vadd.f32 %v4672_v37, %v4671_v22  ;;  %v10063_v4 = vld [vmem:[#allocation84_spill] sm:$0xff]  ;;  %v10067_v22 = vld [vmem:[#allocation89_spill] sm:$0xff]  ;;  %v581_v56 = vld [vmem:[%s5768_s25 + $0x78] sm:$0xff]  ;;  %s226_s25 = sand.u32 1, %s5582_s13  }
 0x1c6   : > { %3334 = vmatmul.mubr.f32.vlgmr.msra.gmra.mxu1 %v10058_v9  ;;  %5068 = vmatpush3.msra.mxu0 %v10059_v60  ;;  %v4475_v57 = vadd.f32 %v4474_v3, %v4473_v13  ;;  %v8370_v27 = vadd.f32 %v8302_v62, %v886_v24  ;;  %v4674_v9 = vpop.f32.mrf.mxu1  ;;  %v10064_v60 = vld [vmem:[#allocation41_spill] sm:$0xff]  ;;  %s4132_s29 = sshll.u32 %s226_s25, 7  ;;  %s9194_s24 = scalar_lea.sflag [#allocation4], %s226_s25 }
 0x1c7   : > { %3341 = vmatprep.mubr.f32.mxu1 %v10061_v52  ;;  %2610 = vmatprep.mubr.f32.mxu0 %v2609_v16  ;;  %v4476_v40 = vpop.f32.mrf.mxu0  ;;  %v10068_v16 = vand.u32 4294901760, %v10067_v22  ;;  %v10069_v3 = vld [vmem:[#allocation49_spill] sm:$0xff]  ;;  %s9101_s21 = scalar_lea.vmem [#allocation5], %s4132_s29 }
 0x1c8   : > { %5069 = vmatprep.subr.mxu0 %v10062_v34  ;;  %5279 = vmatprep.subr.mxu1 %v10064_v60  ;;  %v901_v52 = vadd.f32 %v4475_v57, %v580_v31  ;;  %v4675_v13 = vpop.f32.mrf.mxu1  ;;  %v10070_v34 = vand.u32 4294901760, %v10069_v3  ;;  %v10072_v31 = vld [vmem:[#allocation52_spill] sm:$0xff]  ;;  %s4018_s26 = sshll.u32 %s9101_s21, 4  ;;  %s9189_s26 = int_to_ptr.vmem [resolvable:$true] %s4018_s26 }
 0x1c9   : > { %5070 = vmatpush3.msra.mxu0 %v10063_v4  ;;  %v4477_v62 = vpop.f32.mrf.mxu0  ;;  %v4676_v24 = vadd.f32 %v4675_v13, %v4674_v9  ;;  %v10071_v4 = vld [vmem:[#allocation44_spill] sm:$0xff]  ;;  %v10077_v13 = vand.u32 4294901760, %v7024_v63  ;;  %s5498_s28 = scalar_lea.vmem %s9189_s26, 2048  ;;  %p5505_p10 = scmp.lt.s32.totalorder %s9189_s26, %s5503_s4 }
 0x1ca   : > { %3345 = vmatmul.mubr.f32.gmra.mxu1 %v10066_v47  ;;  %2616 = vmatmul.mubr.f32.gmra.mxu0 %v2615_v59  ;;  %v4478_v37 = vadd.f32 %v4477_v62, %v4476_v40  ;;  %v8384_v57 = vadd.f32 %v8328_v43, %v901_v52  ;;  %v4677_v47 = vpop.f32.mrf.mxu1  ;;  %v10075_v9 = vld [vmem:[#allocation64_spill] sm:$0xff]  ;;  %p5499_p8 = scmp.ne.s32.totalorder %s9189_s26, %s5498_s28  ;;  %p5506_p11 = scmp.lt.s32.totalorder %s5504_s11, %s5498_s28 }
 0x1cb   : > { %3352 = vmatprep.mubr.f32.mxu1 %v10068_v16  ;;  %3088 = vmatprep.mubr.f32.mxu0 %v10052_v58  ;;  %v4591_v60 = vpop.f32.mrf.mxu0  ;;  %v10073_v16 = vand.u32 4294901760, %v7782_v44  ;;  %v10074_v58 = vand.u32 4294901760, %v7787_v49 }
 0x1cc   : > { %5199 = vmatprep.subr.mxu0 %v10070_v34  ;;  %5280 = vmatpush3.msra.mxu1 %v10071_v4  ;;  %v916_v59 = vadd.f32 %v4478_v37, %v581_v56  ;;  %v10076_v34 = vand.u32 4294901760, %v10075_v9  ;;  %v4678_v40 = vpop.f32.mrf.mxu1  ;;  %v10084_v9 = vld [vmem:[#allocation54_spill] sm:$0xff]  ;;  %p5500_p7 = pnand %p5499_p8, %p5739_p13  ;;  %p5507_p12 = por %p5506_p11, %p5505_p10 }
 0x1cd   : > { %5281 = vmatprep.subr.mxu1 %v10072_v31  ;;  %v4592_v4 = vpop.f32.mrf.mxu0  ;;  %v4679_v43 = vadd.f32 %v4678_v40, %v4677_v47  ;;  %v10080_v31 = vld [vmem:[#allocation53_spill] sm:$0xff] }
 0x1ce   : > { %3356 = vmatmul.mubr.f32.gmra.mxu1 %v10073_v16  ;;  %3091 = vmatmul.mubr.f32.vlgmr.msra.gmra.mxu0 %v10057_v38  ;;  %v4593_v52 = vadd.f32 %v4592_v4, %v4591_v60  ;;  %v8397_v56 = vadd.f32 %v4558_v28, %v916_v59  ;;  %v4680_v62 = vpop.f32.mrf.mxu1  ;;  %v10078_v38 = vld [vmem:[#allocation14_spill] sm:$0xff]  ;;  %v10083_v59 = vand.u32 4294901760, %v7078_v30  ;;  %v10086_v4 = vld [vmem:[#allocation63_spill] sm:$0xff]  ;;  %p5501_p9 = pneg %p5500_p7 }
 0x1cf   : > { %3363 = vmatprep.mubr.f32.mxu1 %v10074_v58  ;;  %5200 = vmatpush3.msra.mxu0 %v10076_v34  ;;  %v4594_v37 = vpop.f32.mrf.mxu0  ;;  %v10079_v3 = vand.u32 4294901760, %v10078_v38  ;;  %v10081_v58 = vand.u32 4294901760, %v7804_v7  ;;  %v10089_v30 = vld [vmem:[#allocation91_spill] sm:$0xff] }
 0x1d0   : > { %3097 = vmatprep.mubr.f32.mxu0 %v10060_v45  ;;  %5201 = vmatprep.subr.mxu0 %v10077_v13  ;;  %v1391_v16 = vadd.f32 %v4593_v52, %v7908_v21  ;;  %v10082_v45 = vand.u32 4294901760, %v7830_v20  ;;  %v4681_v63 = vpop.f32.mrf.mxu1  ;;  %p5508_p0 = pnand %p5507_p12, %p5501_p9 }
 0x1d1   : > { %5202 = vmatpush3.msra.mxu0 %v10079_v3  ;;  %5282 = vmatpush3.msra.mxu1 %v10080_v31  ;;  %v4595_v28 = vpop.f32.mrf.mxu0  ;;  %v4682_v47 = vadd.f32 %v4681_v63, %v4680_v62  ;;  %v10090_v62 = vand.u32 4294901760, %v10089_v30  ;;  %v10094_v63 = vld [vmem:[#allocation17_spill] sm:$0xff] }
 0x1d2   : > { %3367 = vmatmul.mubr.f32.gmra.mxu1 %v10081_v58  ;;  %3100 = vmatmul.mubr.f32.gmra.mxu0 %v10065_v42  ;;  %v4596_v60 = vadd.f32 %v4595_v28, %v4594_v37  ;;  %v8412_v21 = vadd.f32 %v4673_v17, %v1391_v16  ;;  %v4683_v34 = vpop.f32.mrf.mxu1  ;;  %v10085_v42 = vand.u32 4294901760, %v7093_v41  ;;  %v10091_v41 = vld [vmem:[#allocation67_spill] sm:$0xff]  ;;  %v10096_v28 = vld [vmem:[#allocation12_spill] sm:$0xff] }
 0x1d3   : > { %3374 = vmatprep.mubr.f32.mxu1 %v10082_v45  ;;  %3106 = vmatprep.mubr.f32.mxu0 %v10067_v22  ;;  %v4597_v40 = vpop.f32.mrf.mxu0  ;;  %v10087_v22 = vld [vmem:[#allocation90_spill] sm:$0xff]  ;;  %v10092_v31 = vand.u32 4294901760, %v10091_v41  ;;  %v10093_v16 = vld [vmem:[#allocation11_spill] sm:$0xff] }
 0x1d4   : > { %5203 = vmatprep.subr.mxu0 %v10083_v59  ;;  %5283 = vmatprep.subr.mxu1 %v10084_v9  ;;  %v1400_v52 = vadd.f32 %v4596_v60, %v7950_v1  ;;  %v10088_v13 = vand.u32 4294901760, %v10087_v22  ;;  %v4684_v37 = vpop.f32.mrf.mxu1  ;;  %v10099_v9 = vld [vmem:[#allocation93_spill] sm:$0xff]  ;;  %v10106_v41 = vld [vmem:[#allocation15_spill] sm:$0xff] }
 0x1d5   : > { %5204 = vmatpush3.msra.mxu0 %v10085_v42  ;;  %5284 = vmatpush3.msra.mxu1 %v10086_v4  ;;  %v4598_v17 = vpop.f32.mrf.mxu0  ;;  %v4685_v38 = vadd.f32 %v4684_v37, %v4683_v34  ;;  %v10100_v34 = vand.u32 4294901760, %v10099_v9 }
 0x1d6   : > { %3378 = vmatmul.mubr.f32.gmra.mxu1 %v10088_v13  ;;  %3109 = vmatmul.mubr.f32.gmra.mxu0 %v7782_v44  ;;  %v4599_v3 = vadd.f32 %v4598_v17, %v4597_v40  ;;  %v8427_v1 = vadd.f32 %v4676_v24, %v1400_v52  ;;  %v4686_v58 = vpop.f32.mrf.mxu1  ;;  %v10095_v44 = vand.u32 4294901760, %v10094_v63  ;;  %v10101_v52 = vld [vmem:[#allocation16_spill] sm:$0xff] }
 0x1d7   : > { %3385 = vmatprep.mubr.f32.mxu1 %v10090_v62  ;;  %3115 = vmatprep.mubr.f32.mxu0 %v7787_v49  ;;  %v4600_v45 = vpop.f32.mrf.mxu0  ;;  %v10097_v49 = vld [vmem:[#allocation92_spill] sm:$0xff]  ;;  %v10102_v13 = vand.u32 4294901760, %v10101_v52  ;;  %v10103_v62 = vld [vmem:[#allocation13_spill] sm:$0xff] }
 0x1d8   : > { %5205 = vmatprep.subr.mxu0 %v10092_v31  ;;  %5285 = vmatprep.subr.mxu1 %v10093_v16  ;;  %v1409_v60 = vadd.f32 %v4599_v3, %v7992_v53  ;;  %v10098_v59 = vand.u32 4294901760, %v10097_v49  ;;  %v4687_v40 = vpop.f32.mrf.mxu1  ;;  %v10104_v3 = vld [vmem:[#allocation19_spill] sm:$0xff]  ;;  %v10116_v52 = vld [vmem:[#allocation20_spill] sm:$0xff] }
 0x1d9   : > { %5206 = vmatpush3.msra.mxu0 %v10095_v44  ;;  %5286 = vmatpush3.msra.mxu1 %v10096_v28  ;;  %v4601_v24 = vpop.f32.mrf.mxu0  ;;  %v4688_v42 = vadd.f32 %v4687_v40, %v4686_v58  ;;  %v10109_v58 = vld [vmem:[#allocation95_spill] sm:$0xff] }
 0x1da   : > { %3389 = vmatmul.mubr.f32.gmra.mxu1 %v10098_v59  ;;  %3118 = vmatmul.mubr.f32.gmra.mxu0 %v7804_v7  ;;  %v4602_v4 = vadd.f32 %v4601_v24, %v4600_v45  ;;  %v8442_v53 = vadd.f32 %v4679_v43, %v1409_v60  ;;  %v4689_v37 = vpop.f32.mrf.mxu1  ;;  %v10105_v7 = vand.u32 4294901760, %v10104_v3  ;;  %v10110_v45 = vand.u32 4294901760, %v10109_v58  ;;  %v10111_v60 = vld [vmem:[#allocation21_spill] sm:$0xff] }
 0x1db   : > { %3396 = vmatprep.mubr.f32.mxu1 %v10100_v34  ;;  %3124 = vmatprep.mubr.f32.mxu0 %v7830_v20  ;;  %v4603_v17 = vpop.f32.mrf.mxu0  ;;  %v10107_v20 = vld [vmem:[#allocation94_spill] sm:$0xff]  ;;  %v10112_v59 = vand.u32 4294901760, %v10111_v60 }
 0x1dc   : > { %5207 = vmatprep.subr.mxu0 %v10102_v13  ;;  %5287 = vmatprep.subr.mxu1 %v10103_v62  ;;  %v1418_v31 = vadd.f32 %v4602_v4, %v8034_v18  ;;  %v10108_v16 = vand.u32 4294901760, %v10107_v20  ;;  %v4690_v63 = vpop.f32.mrf.mxu1  ;;  %v10113_v34 = vld [vmem:[#allocation18_spill] sm:$0xff] }
 0x1dd   : > { %5208 = vmatpush3.msra.mxu0 %v10105_v7  ;;  %5288 = vmatpush3.msra.mxu1 %v10106_v41  ;;  %v4604_v43 = vpop.f32.mrf.mxu0  ;;  %v4691_v44 = vadd.f32 %v4690_v63, %v4689_v37  ;;  %v10114_v4 = vld [vmem:[#allocation22_spill] sm:$0xff]  ;;  %v10119_v37 = vld [vmem:[#allocation97_spill] sm:$0xff] }
 0x1de   : > { %3400 = vmatmul.mubr.f32.gmra.mxu1 %v10108_v16  ;;  %3127 = vmatmul.mubr.f32.gmra.mxu0 %v10087_v22  ;;  %v4605_v28 = vadd.f32 %v4604_v43, %v4603_v17  ;;  %v8457_v18 = vadd.f32 %v4682_v47, %v1418_v31  ;;  %v4692_v40 = vpop.f32.mrf.mxu1  ;;  %v10115_v22 = vand.u32 4294901760, %v10114_v4  ;;  %v10120_v17 = vand.u32 4294901760, %v10119_v37  ;;  %v10121_v31 = vld [vmem:[#allocation25_spill] sm:$0xff]  ;;  %v10126_v60 = vld [vmem:[#allocation26_spill] sm:$0xff] }
 0x1df   : > { %3407 = vmatprep.mubr.f32.mxu1 %v10110_v45  ;;  %3133 = vmatprep.mubr.f32.mxu0 %v10089_v30  ;;  %v4606_v24 = vpop.f32.mrf.mxu0  ;;  %v10117_v30 = vld [vmem:[#allocation96_spill] sm:$0xff]  ;;  %v10122_v16 = vand.u32 4294901760, %v10121_v31  ;;  %v10123_v45 = vld [vmem:[#allocation23_spill] sm:$0xff] }
 0x1e0   : > { %5209 = vmatprep.subr.mxu0 %v10112_v59  ;;  %5289 = vmatprep.subr.mxu1 %v10113_v34  ;;  %v1427_v13 = vadd.f32 %v4605_v28, %v8076_v19  ;;  %v10118_v62 = vand.u32 4294901760, %v10117_v30  ;;  %v4693_v3 = vpop.f32.mrf.mxu1  ;;  %v10124_v28 = vld [vmem:[#allocation28_spill] sm:$0xff]  ;;  %v10136_v31 = vld [vmem:[#allocation27_spill] sm:$0xff] }
 0x1e1   : > { %5210 = vmatpush3.msra.mxu0 %v10115_v22  ;;  %5290 = vmatpush3.msra.mxu1 %v10116_v52  ;;  %v4607_v47 = vpop.f32.mrf.mxu0  ;;  %v4694_v7 = vadd.f32 %v4693_v3, %v4692_v40  ;;  %v10129_v40 = vld [vmem:[#allocation99_spill] sm:$0xff] }
 0x1e2   : > { %3411 = vmatmul.mubr.f32.gmra.mxu1 %v10118_v62  ;;  %3136 = vmatmul.mubr.f32.gmra.mxu0 %v10097_v49  ;;  %v4608_v41 = vadd.f32 %v4607_v47, %v4606_v24  ;;  %v8472_v19 = vadd.f32 %v4685_v38, %v1427_v13  ;;  %v4695_v63 = vpop.f32.mrf.mxu1  ;;  %v10125_v49 = vand.u32 4294901760, %v10124_v28  ;;  %v10130_v24 = vand.u32 4294901760, %v10129_v40  ;;  %v10131_v13 = vld [vmem:[#allocation29_spill] sm:$0xff] }
 0x1e3   : > { %3418 = vmatprep.mubr.f32.mxu1 %v10120_v17  ;;  %3142 = vmatprep.mubr.f32.mxu0 %v10099_v9  ;;  %v4609_v43 = vpop.f32.mrf.mxu0  ;;  %v10127_v9 = vld [vmem:[#allocation98_spill] sm:$0xff]  ;;  %v10132_v62 = vand.u32 4294901760, %v10131_v13  ;;  %v10133_v17 = vld [vmem:[#allocation24_spill] sm:$0xff]  ;;  %v10146_v13 = vld [vmem:[#allocation33_spill] sm:$0xff] }
 0x1e4   : > { %5211 = vmatprep.subr.mxu0 %v10122_v16  ;;  %5291 = vmatprep.subr.mxu1 %v10123_v45  ;;  %v1436_v59 = vadd.f32 %v4608_v41, %v8118_v51  ;;  %v10128_v34 = vand.u32 4294901760, %v10127_v9  ;;  %v4696_v4 = vpop.f32.mrf.mxu1  ;;  %v10134_v41 = vld [vmem:[#allocation30_spill] sm:$0xff] }
 0x1e5   : > { %5212 = vmatpush3.msra.mxu0 %v10125_v49  ;;  %5292 = vmatpush3.msra.mxu1 %v10126_v60  ;;  %v4610_v38 = vpop.f32.mrf.mxu0  ;;  %v4697_v22 = vadd.f32 %v4696_v4, %v4695_v63  ;;  %v10139_v63 = vld [vmem:[#allocation101_spill] sm:$0xff] }
 0x1e6   : > { %3422 = vmatmul.mubr.f32.gmra.mxu1 %v10128_v34  ;;  %3145 = vmatmul.mubr.f32.gmra.mxu0 %v10107_v20  ;;  %v4611_v52 = vadd.f32 %v4610_v38, %v4609_v43  ;;  %v8487_v51 = vadd.f32 %v4688_v42, %v1436_v59  ;;  %v4698_v3 = vpop.f32.mrf.mxu1  ;;  %v10135_v20 = vand.u32 4294901760, %v10134_v41  ;;  %v10140_v43 = vand.u32 4294901760, %v10139_v63  ;;  %v10141_v59 = vld [vmem:[#allocation36_spill] sm:$0xff] }
 0x1e7   : > { %3429 = vmatprep.mubr.f32.mxu1 %v10130_v24  ;;  %3151 = vmatprep.mubr.f32.mxu0 %v10109_v58  ;;  %v4612_v47 = vpop.f32.mrf.mxu0  ;;  %v10137_v58 = vld [vmem:[#allocation100_spill] sm:$0xff]  ;;  %v10142_v34 = vand.u32 4294901760, %v10141_v59  ;;  %v10143_v24 = vld [vmem:[#allocation31_spill] sm:$0xff] }
 0x1e8   : > { %5213 = vmatprep.subr.mxu0 %v10132_v62  ;;  %5293 = vmatprep.subr.mxu1 %v10133_v17  ;;  %v1445_v16 = vadd.f32 %v4611_v52, %v8160_v14  ;;  %v10138_v45 = vand.u32 4294901760, %v10137_v58  ;;  %v4699_v28 = vpop.f32.mrf.mxu1  ;;  %v10144_v52 = vld [vmem:[#allocation37_spill] sm:$0xff] }
 0x1e9   : > { %5214 = vmatpush3.msra.mxu0 %v10135_v20  ;;  %5294 = vmatpush3.msra.mxu1 %v10136_v31  ;;  %v4613_v42 = vpop.f32.mrf.mxu0  ;;  %v4700_v49 = vadd.f32 %v4699_v28, %v4698_v3  ;;  %v10149_v3 = vand.u32 4294901760, %v8121_v2  ;;  %v10150_v31 = vand.u32 4294901760, %v10032_v8  ;;  %v10153_v28 = vld [vmem:[#allocation35_spill] sm:$0xff]  ;;  %v10156_v8 = vand.u32 4294901760, %v8163_v5 }
 0x1ea   : > { %3433 = vmatmul.mubr.f32.gmra.mxu1 %v10138_v45  ;;  %3154 = vmatmul.mubr.f32.gmra.mxu0 %v10117_v30  ;;  %v4614_v60 = vadd.f32 %v4613_v42, %v4612_v47  ;;  %v8502_v14 = vadd.f32 %v4691_v44, %v1445_v16  ;;  %v4701_v4 = vpop.f32.mrf.mxu1  ;;  %v10145_v30 = vand.u32 4294901760, %v10144_v52  ;;  %v10151_v16 = vld [vmem:[#allocation32_spill] sm:$0xff] }
 0x1eb   : > { %3440 = vmatprep.mubr.f32.mxu1 %v10140_v43  ;;  %3160 = vmatprep.mubr.f32.mxu0 %v10119_v37  ;;  %v4615_v38 = vpop.f32.mrf.mxu0  ;;  %v10147_v37 = vld [vmem:[#allocation102_spill] sm:$0xff] }
 0x1ec   : > { %5215 = vmatprep.subr.mxu0 %v10142_v34  ;;  %5295 = vmatprep.subr.mxu1 %v10143_v24  ;;  %v1454_v62 = vadd.f32 %v4614_v60, %v8202_v25  ;;  %v10148_v17 = vand.u32 4294901760, %v10147_v37  ;;  %v4702_v47 = vpop.f32.mrf.mxu1 }
 0x1ed   : > { %5216 = vmatpush3.msra.mxu0 %v10145_v30  ;;  %5296 = vmatpush3.msra.mxu1 %v10146_v13  ;;  %v4616_v44 = vpop.f32.mrf.mxu0  ;;  %v4703_v41 = vadd.f32 %v4702_v47, %v4701_v4  ;;  %v10158_v4 = vld [vmem:[#allocation79_spill] sm:$0xff]  ;;  %v10159_v30 = vld [vmem:[#allocation45_spill] sm:$0xff] }
 0x1ee   : > { %3444 = vmatmul.mubr.f32.gmra.mxu1 %v10148_v17  ;;  %3163 = vmatmul.mubr.f32.gmra.mxu0 %v10127_v9  ;;  %v4617_v20 = vadd.f32 %v4616_v44, %v4615_v38  ;;  %v8517_v25 = vadd.f32 %v4694_v7, %v1454_v62  ;;  %v4704_v45 = vpop.f32.mrf.mxu1  ;;  %v10152_v9 = vand.u32 4294901760, %v10034_v29  ;;  %v10157_v29 = vand.u32 4294901760, %v10037_v55  ;;  %v10161_v13 = vld [vmem:[#allocation39_spill] sm:$0xff] }
 0x1ef   : > { %3451 = vmatprep.mubr.f32.mxu1 %v10149_v3  ;;  %3169 = vmatprep.mubr.f32.mxu0 %v10129_v40  ;;  %v4618_v43 = vpop.f32.mrf.mxu0  ;;  %v10154_v40 = vld [vmem:[#allocation103_spill] sm:$0xff]  ;;  %v10164_v55 = vand.u32 4294901760, %v8205_v54 }
 0x1f0   : > { %5217 = vmatprep.subr.mxu0 %v10150_v31  ;;  %5297 = vmatprep.subr.mxu1 %v10151_v16  ;;  %v1463_v42 = vadd.f32 %v4617_v20, %v8244_v6  ;;  %v10155_v60 = vand.u32 4294901760, %v10154_v40  ;;  %v4705_v59 = vpop.f32.mrf.mxu1  ;;  %v10165_v20 = vand.u32 4294901760, %v10041_v12  ;;  %v10166_v31 = vld [vmem:[#allocation43_spill] sm:$0xff]  ;;  %v10169_v12 = vand.u32 4294901760, %v8260_v15 }
 0x1f1   : > { %5218 = vmatpush3.msra.mxu0 %v10152_v9  ;;  %5298 = vmatpush3.msra.mxu1 %v10153_v28  ;;  %v4619_v7 = vpop.f32.mrf.mxu0  ;;  %v4706_v34 = vadd.f32 %v4705_v59, %v4704_v45 }
 0x1f2   : > { %3455 = vmatmul.mubr.f32.gmra.mxu1 %v10155_v60  ;;  %3172 = vmatmul.mubr.f32.gmra.mxu0 %v10137_v58  ;;  %v4620_v24 = vadd.f32 %v4619_v7, %v4618_v43  ;;  %v8532_v6 = vadd.f32 %v4697_v22, %v1463_v42  ;;  %v4707_v38 = vpop.f32.mrf.mxu1  ;;  %v10160_v58 = vand.u32 4294901760, %v10159_v30  ;;  %v10178_v30 = vld [vmem:[#allocation38_spill] sm:$0xff] }
 0x1f3   : > { %3462 = vmatprep.mubr.f32.mxu1 %v10156_v8  ;;  %3178 = vmatprep.mubr.f32.mxu0 %v10139_v63  ;;  %v4621_v52 = vpop.f32.mrf.mxu0  ;;  %v10162_v63 = vld [vmem:[#allocation104_spill] sm:$0xff] }
 0x1f4   : > { %5219 = vmatprep.subr.mxu0 %v10157_v29  ;;  %5299 = vmatprep.subr.mxu1 %v10158_v4  ;;  %v1472_v62 = vadd.f32 %v4620_v24, %v8282_v26  ;;  %v10163_v17 = vand.u32 4294901760, %v10162_v63  ;;  %v4708_v3 = vpop.f32.mrf.mxu1 }
 0x1f5   : > { %5220 = vmatpush3.msra.mxu0 %v10160_v58  ;;  %5300 = vmatpush3.msra.mxu1 %v10161_v13  ;;  %v4622_v22 = vpop.f32.mrf.mxu0  ;;  %v4709_v47 = vadd.f32 %v4708_v3, %v4707_v38  ;;  %v10176_v38 = vld [vmem:[#allocation55_spill] sm:$0xff] }
 0x1f6   : > { %3466 = vmatmul.mubr.f32.gmra.mxu1 %v10163_v17  ;;  %3181 = vmatmul.mubr.f32.gmra.mxu0 %v10147_v37  ;;  %v4623_v44 = vadd.f32 %v4622_v22, %v4621_v52  ;;  %v8547_v26 = vadd.f32 %v4700_v49, %v1472_v62  ;;  %v4710_v16 = vpop.f32.mrf.mxu1  ;;  %v10167_v37 = vand.u32 4294901760, %v10042_v11  ;;  %v10170_v11 = vand.u32 4294901760, %v10045_v35  ;;  %v10181_v62 = vld [vmem:[#allocation51_spill] sm:$0xff]  ;;  %v10185_v17 = vld [vmem:[#allocation81_spill] sm:$0xff] }
 0x1f7   : > { %3473 = vmatprep.mubr.f32.mxu1 %v10164_v55  ;;  %3187 = vmatprep.mubr.f32.mxu0 %v8121_v2  ;;  %v4624_v45 = vpop.f32.mrf.mxu0  ;;  %v10168_v2 = vand.u32 4294901760, %v8222_v61  ;;  %v10174_v35 = vand.u32 4294901760, %v8293_v50  ;;  %v10177_v52 = vand.u32 4294901760, %v10176_v38 }
 0x1f8   : > { %5221 = vmatprep.subr.mxu0 %v10165_v20  ;;  %5301 = vmatprep.subr.mxu1 %v10166_v31  ;;  %v1481_v43 = vadd.f32 %v4623_v44, %v8312_v39  ;;  %v4711_v9 = vpop.f32.mrf.mxu1  ;;  %v10186_v44 = vld [vmem:[#allocation59_spill] sm:$0xff]  ;;  %v10187_v31 = vld [vmem:[#allocation56_spill] sm:$0xff] }
 0x1f9   : > { %5222 = vmatpush3.msra.mxu0 %v10167_v37  ;;  %5302 = vmatpush3.msra.mxu1 %v7410_v10  ;;  %v4625_v49 = vpop.f32.mrf.mxu0  ;;  %v4712_v28 = vadd.f32 %v4711_v9, %v4710_v16  ;;  %v10171_v10 = vld [vmem:[#allocation47_spill] sm:$0xff]  ;;  %v10189_v37 = vld [vmem:[#allocation57_spill] sm:$0xff] }
 0x1fa   : > { %3477 = vmatmul.mubr.f32.gmra.mxu1 %v10168_v2  ;;  %3190 = vmatmul.mubr.f32.gmra.mxu0 %v10154_v40  ;;  %v4626_v42 = vadd.f32 %v4625_v49, %v4624_v45  ;;  %v8562_v39 = vadd.f32 %v4703_v41, %v1481_v43  ;;  %v4713_v60 = vpop.f32.mrf.mxu1  ;;  %v10172_v40 = vand.u32 4294901760, %v10047_v48  ;;  %v10190_v43 = vld [vmem:[#allocation58_spill] sm:$0xff] }
 0x1fb   : > { %3484 = vmatprep.mubr.f32.mxu1 %v10169_v12  ;;  %3196 = vmatprep.mubr.f32.mxu0 %v8163_v5  ;;  %v4627_v8 = vpop.f32.mrf.mxu0  ;;  %v10173_v5 = vand.u32 4294901760, %v8262_v0  ;;  %v10191_v2 = vand.u32 4294901760, %v10190_v43 }
 0x1fc   : > { %5223 = vmatprep.subr.mxu0 %v10170_v11  ;;  %5303 = vmatprep.subr.mxu1 %v10171_v10  ;;  %v1490_v59 = vadd.f32 %v4626_v42, %v8338_v32  ;;  %v4714_v7 = vpop.f32.mrf.mxu1  ;;  %v10194_v10 = vld [vmem:[#allocation82_spill] sm:$0xff] }
 0x1fd   : > { %5224 = vmatpush3.msra.mxu0 %v10172_v40  ;;  %5304 = vmatpush3.msra.mxu1 %v7460_v23  ;;  %v4628_v41 = vpop.f32.mrf.mxu0  ;;  %v4715_v24 = vadd.f32 %v4714_v7, %v4713_v60  ;;  %v10175_v23 = vand.u32 4294901760, %v7545_v46  ;;  %v10182_v46 = vld [vmem:[#allocation60_spill] sm:$0xff]  ;;  %v10195_v60 = vand.u32 4294901760, %v10194_v10 }
 0x1fe   : > { %3488 = vmatmul.mubr.f32.gmra.mxu1 %v10173_v5  ;;  %3199 = vmatmul.mubr.f32.gmra.mxu0 %v10162_v63  ;;  %v4629_v48 = vadd.f32 %v4628_v41, %v4627_v8  ;;  %v8577_v32 = vadd.f32 %v4706_v34, %v1490_v59  ;;  %v10183_v63 = vmov 1.0   ;;  %v10196_v40 = vld [vmem:[#allocation84_spill] sm:$0xff] }
 0x1ff   : > { %3495 = vmatprep.mubr.f32.mxu1 %v10174_v35  ;;  %3205 = vmatprep.mubr.f32.mxu0 %v8205_v54  ;;  %v4716_v29 = vpop.f32.mrf.mxu1  ;;  %v4630_v4 = vpop.f32.mrf.mxu0  ;;  %v10179_v54 = vld [vmem:[#allocation77_spill] sm:$0xff]  ;;  %v10197_v59 = vand.u32 4294901760, %v10196_v40 }
 0x200   : > { %5305 = vmatprep.subr.mxu1 %v7496_v33  ;;  %5225 = vmatprep.subr.mxu0 %v10175_v23  ;;  %v1499_v58 = vadd.f32 %v4629_v48, %v10178_v30  ;;  %v10180_v13 = vand.u32 4294901760, %v10179_v54 }
 0x201   : > { %5306 = vmatpush3.msra.mxu1 %v7508_v36  ;;  %5226 = vmatpush3.msra.mxu0 %v10177_v52  ;;  %v4717_v33 = vpop.f32.mrf.mxu1  ;;  %v4631_v34 = vpop.f32.mrf.mxu0 }
 0x202   : > { %3499 = vmatmul.mubr.f32.gmra.mxu1 %v10180_v13  ;;  %5307 = vmatprep.subr.mxu1 %v10181_v62  ;;  %v4718_v55 = vadd.f32 %v4717_v33, %v4716_v29  ;;  %v4632_v3 = vadd.f32 %v4631_v34, %v4630_v4  ;;  %v8593_v22 = vadd.f32 %v4709_v47, %v1499_v58 }
 0x203   : > { %3208 = vmatmul.mubr.f32.gmra.mxu0 %v8222_v61  ;;  %5308 = vmatpush3.msra.mxu1 %v10182_v46  ;;  %v4831_v20 = vpop.f32.mrf.mxu1  ;;  %v10188_v61 = vand.u32 4294901760, %v10187_v31  ;;  %v4633_v16 = vpop.f32.mrf.mxu0  ;;  %v10200_v46 = vld [vmem:[#allocation68_spill] sm:$0xff]  ;;  %v10203_v31 = vld [vmem:[#allocation69_spill] sm:$0xff] }
 0x204   : > { %4360 = vmatprep.mubr.msk.f32.mxu1 %vm313_vm3, %v10183_v63  ;;  %3214 = vmatprep.mubr.f32.mxu0 %v8260_v15  ;;  %v1508_v45 = vadd.f32 %v4632_v3, %v8370_v27  ;;  %v10192_v15 = vld [vmem:[#allocation83_spill] sm:$0xff] }
 0x205   : > { %5309 = vmatprep.subr.mxu1 %v10186_v44  ;;  %5227 = vmatprep.subr.mxu0 %v10188_v61  ;;  %v4832_v47 = vpop.f32.mrf.mxu1  ;;  %v4634_v12 = vpop.f32.mrf.mxu0 }
 0x206   : > { %5310 = vmatpush3.msra.mxu1 %v10189_v37  ;;  %5228 = vmatpush3.msra.mxu0 %v10191_v2  ;;  %v4833_v27 = vadd.f32 %v4832_v47, %v4831_v20  ;;  %v4635_v49 = vadd.f32 %v4634_v12, %v4633_v16  ;;  %v8612_v42 = vadd.f32 %v4712_v28, %v1508_v45  ;;  %v10206_v12 = vld [vmem:[#allocation70_spill] sm:$0xff] }
 0x207   : > { %4361 = vmatmul.mubr.msk.f32.vlgmr.msra.gmra.mxu1 %vm312_vm4, %v10183_v63  ;;  %3217 = vmatmul.mubr.f32.gmra.mxu0 %v8262_v0  ;;  %v4834_v11 = vpop.f32.mrf.mxu1  ;;  %v4636_v8 = vpop.f32.mrf.mxu0 }
 0x208   : > { %4362 = vmatprep.mubr.msk.f32.mxu1 %vm317_vm11, %v10183_v63  ;;  %3223 = vmatprep.mubr.f32.mxu0 %v8293_v50  ;;  %v1517_v0 = vadd.f32 %v4635_v49, %v8384_v57 }
 0x209   : > { %5229 = vmatprep.subr.mxu0 %v10195_v60  ;;  %v4835_v50 = vpop.f32.mrf.mxu1  ;;  %v4637_v28 = vpop.f32.mrf.mxu0 }
 0x20a   : > { %5230 = vmatpush3.msra.mxu0 %v10197_v59  ;;  %v4836_v35 = vadd.f32 %v4835_v50, %v4834_v11  ;;  %v4638_v57 = vadd.f32 %v4637_v28, %v4636_v8  ;;  %v8632_v7 = vadd.f32 %v4715_v24, %v1517_v0  ;;  %v10211_v0 = vld [vmem:[#allocation71_spill] sm:$0xff] }
 0x20b   : > { %4363 = vmatmul.mubr.msk.f32.gmra.mxu1 %vm316_vm7, %v10183_v63  ;;  %3226 = vmatmul.mubr.f32.gmra.mxu0 %v10179_v54  ;;  %v4837_v41 = vpop.f32.mrf.mxu1  ;;  %v4751_v48 = vpop.f32.mrf.mxu0 }
 0x20c   : > { %4364 = vmatprep.mubr.msk.f32.mxu1 %vm321_vm8, %v10183_v63  ;;  %4328 = vmatprep.mubr.msk.f32.mxu0 %vm313_vm3, %v10183_v63  ;;  %v1526_v23 = vadd.f32 %v4638_v57, %v8397_v56  ;;  %vm10201_vm3 = vcmp.eq.s32.totalorder %v10200_v46, %v10185_v17 }
 0x20d   : > { %v4838_v29 = vpop.f32.mrf.mxu1  ;;  %v4752_v4 = vpop.f32.mrf.mxu0 }
 0x20e   : > { %v4839_v24 = vadd.f32 %v4838_v29, %v4837_v41  ;;  %v4753_v56 = vadd.f32 %v4752_v4, %v4751_v48  ;;  %v8651_v52 = vadd.f32 %v4718_v55, %v1526_v23  ;;  %v10215_v41 = vld [vmem:[#allocation72_spill] sm:$0xff] }
 0x20f   : > { %4365 = vmatmul.mubr.msk.f32.gmra.mxu1 %vm320_vm13, %v10183_v63  ;;  %4329 = vmatmul.mubr.msk.f32.vlgmr.msra.gmra.mxu0 %vm312_vm4, %v10183_v63  ;;  %v4840_v30 = vpop.f32.mrf.mxu1  ;;  %v4754_v58 = vpop.f32.mrf.mxu0  ;;  %vm10202_vm4 = vcmp.eq.s32.totalorder %v10200_v46, %v10192_v15 }
 0x210   : > { %4366 = vmatprep.mubr.msk.f32.mxu1 %vm325_vm12, %v10183_v63  ;;  %4330 = vmatprep.mubr.msk.f32.mxu0 %vm317_vm11, %v10183_v63  ;;  %v1967_v54 = vadd.f32 %v4753_v56, %v8412_v21  ;;  %vm10204_vm11 = vcmp.eq.s32.totalorder %v10203_v31, %v10185_v17 }
 0x211   : > { %v4841_v13 = vpop.f32.mrf.mxu1  ;;  %v4755_v62 = vpop.f32.mrf.mxu0 }
 0x212   : > { %v4842_v33 = vadd.f32 %v4841_v13, %v4840_v30  ;;  %v4756_v21 = vadd.f32 %v4755_v62, %v4754_v58  ;;  %v8670_v34 = vadd.f32 %v4833_v27, %v1967_v54  ;;  %v10220_v30 = vld [vmem:[#allocation73_spill] sm:$0xff] }
 0x213   : > { %4367 = vmatmul.mubr.msk.f32.gmra.mxu1 %vm324_vm0, %v10183_v63  ;;  %4331 = vmatmul.mubr.msk.f32.gmra.mxu0 %vm316_vm7, %v10183_v63  ;;  %v4843_v36 = vpop.f32.mrf.mxu1  ;;  %v4757_v55 = vpop.f32.mrf.mxu0  ;;  %vm10205_vm7 = vcmp.eq.s32.totalorder %v10203_v31, %v10192_v15 }
 0x214   : > { %4368 = vmatprep.mubr.msk.f32.mxu1 %vm10201_vm3, %v10183_v63  ;;  %4332 = vmatprep.mubr.msk.f32.mxu0 %vm321_vm8, %v10183_v63  ;;  %v1974_v3 = vadd.f32 %v4756_v21, %v8427_v1  ;;  %vm10207_vm8 = vcmp.eq.s32.totalorder %v10206_v12, %v10185_v17 }
 0x215   : > { %v4844_v44 = vpop.f32.mrf.mxu1  ;;  %v4758_v20 = vpop.f32.mrf.mxu0 }
 0x216   : > { %v4845_v61 = vadd.f32 %v4844_v44, %v4843_v36  ;;  %v4759_v1 = vadd.f32 %v4758_v20, %v4757_v55  ;;  %v8689_v16 = vadd.f32 %v4836_v35, %v1974_v3  ;;  %v10225_v36 = vld [vmem:[#allocation74_spill] sm:$0xff] }
 0x217   : > { %4369 = vmatmul.mubr.msk.f32.gmra.mxu1 %vm10202_vm4, %v10183_v63  ;;  %4333 = vmatmul.mubr.msk.f32.gmra.mxu0 %vm320_vm13, %v10183_v63  ;;  %v4846_v45 = vpop.f32.mrf.mxu1  ;;  %v4760_v37 = vpop.f32.mrf.mxu0  ;;  %vm10208_vm13 = vmmov %vm10201_vm3  ;;  %vm10212_vm3 = vcmp.eq.s32.totalorder %v10211_v0, %v10185_v17 }
 0x218   : > { %4370 = vmatprep.mubr.msk.f32.mxu1 %vm10204_vm11, %v10183_v63  ;;  %4334 = vmatprep.mubr.msk.f32.mxu0 %vm325_vm12, %v10183_v63  ;;  %v1981_v43 = vadd.f32 %v4759_v1, %v8442_v53  ;;  %vm10209_vm12 = vcmp.eq.s32.totalorder %v10206_v12, %v10192_v15 }
 0x219   : > { %v4847_v2 = vpop.f32.mrf.mxu1  ;;  %v4761_v47 = vpop.f32.mrf.mxu0 }
 0x21a   : > { %v4848_v9 = vadd.f32 %v4847_v2, %v4846_v45  ;;  %v4762_v53 = vadd.f32 %v4761_v47, %v4760_v37  ;;  %v8708_v27 = vadd.f32 %v4839_v24, %v1981_v43  ;;  %v10230_v45 = vld [vmem:[#allocation75_spill] sm:$0xff] }
 0x21b   : > { %4371 = vmatmul.mubr.msk.f32.gmra.mxu1 %vm10205_vm7, %v10183_v63  ;;  %4335 = vmatmul.mubr.msk.f32.gmra.mxu0 %vm324_vm0, %v10183_v63  ;;  %v4849_v49 = vpop.f32.mrf.mxu1  ;;  %v4763_v11 = vpop.f32.mrf.mxu0  ;;  %vm10210_vm0 = vmmov %vm10202_vm4 }
 0x21c   : > { %4372 = vmatprep.mubr.msk.f32.mxu1 %vm10207_vm8, %v10183_v63  ;;  %4336 = vmatprep.mubr.msk.f32.mxu0 %vm10208_vm13, %v10183_v63  ;;  %v1988_v10 = vadd.f32 %v4762_v53, %v8457_v18  ;;  %vm10213_vm4 = vmmov %vm10204_vm11  ;;  %vm10214_vm11 = vcmp.eq.s32.totalorder %v10211_v0, %v10192_v15  ;;  %vm10216_vm8 = vcmp.eq.s32.totalorder %v10215_v41, %v10185_v17 }
 0x21d   : > { %v4850_v60 = vpop.f32.mrf.mxu1  ;;  %v4764_v8 = vpop.f32.mrf.mxu0  ;;  %vm10217_vm13 = vcmp.eq.s32.totalorder %v10206_v12, %v10185_v17 }
 0x21e   : > { %v4851_v40 = vadd.f32 %v4850_v60, %v4849_v49  ;;  %v4765_v18 = vadd.f32 %v4764_v8, %v4763_v11  ;;  %v8727_v59 = vadd.f32 %v4842_v33, %v1988_v10  ;;  %v10233_v49 = vld [vmem:[#allocation76_spill] sm:$0xff] }
 0x21f   : > { %4373 = vmatmul.mubr.msk.f32.gmra.mxu1 %vm10209_vm12, %v10183_v63  ;;  %4337 = vmatmul.mubr.msk.f32.gmra.mxu0 %vm10210_vm0, %v10183_v63  ;;  %v4852_v50 = vpop.f32.mrf.mxu1  ;;  %v4766_v28 = vpop.f32.mrf.mxu0  ;;  %vm10218_vm12 = vcmp.eq.s32.totalorder %v10215_v41, %v10192_v15  ;;  %vm10219_vm0 = vcmp.eq.s32.totalorder %v10206_v12, %v10192_v15 }
 0x220   : > { %4374 = vmatprep.mubr.msk.f32.mxu1 %vm10212_vm3, %v10183_v63  ;;  %4338 = vmatprep.mubr.msk.f32.mxu0 %vm10213_vm4, %v10183_v63  ;;  %v1995_v5 = vadd.f32 %v4765_v18, %v8472_v19  ;;  %vm10221_vm3 = vcmp.eq.s32.totalorder %v10220_v30, %v10185_v17  ;;  %vm10222_vm4 = vcmp.eq.s32.totalorder %v10211_v0, %v10185_v17 }
 0x221   : > { %v4853_v35 = vpop.f32.mrf.mxu1  ;;  %v4767_v57 = vpop.f32.mrf.mxu0 }
 0x222   : > { %v4854_v48 = vadd.f32 %v4853_v35, %v4852_v50  ;;  %v4768_v19 = vadd.f32 %v4767_v57, %v4766_v28  ;;  %v8746_v23 = vadd.f32 %v4845_v61, %v1995_v5 }
 0x223   : > { %4375 = vmatmul.mubr.msk.f32.gmra.mxu1 %vm10214_vm11, %v10183_v63  ;;  %4339 = vmatmul.mubr.msk.f32.gmra.mxu0 %vm10205_vm7, %v10183_v63  ;;  %v4855_v29 = vpop.f32.mrf.mxu1  ;;  %v4769_v4 = vpop.f32.mrf.mxu0  ;;  %vm10223_vm11 = vcmp.eq.s32.totalorder %v10220_v30, %v10192_v15  ;;  %vm10224_vm7 = vcmp.eq.s32.totalorder %v10211_v0, %v10192_v15 }
 0x224   : > { %4376 = vmatprep.mubr.msk.f32.mxu1 %vm10216_vm8, %v10183_v63  ;;  %4340 = vmatprep.mubr.msk.f32.mxu0 %vm10217_vm13, %v10183_v63  ;;  %v2002_v38 = vadd.f32 %v4768_v19, %v8487_v51  ;;  %vm10226_vm8 = vcmp.eq.s32.totalorder %v10225_v36, %v10185_v17  ;;  %vm10227_vm13 = vcmp.eq.s32.totalorder %v10215_v41, %v10185_v17 }
 0x225   : > { %v4856_v24 = vpop.f32.mrf.mxu1  ;;  %v4770_v56 = vpop.f32.mrf.mxu0 }
 0x226   : > { %v4857_v58 = vadd.f32 %v4856_v24, %v4855_v29  ;;  %v4771_v51 = vadd.f32 %v4770_v56, %v4769_v4  ;;  %v8765_v54 = vadd.f32 %v4848_v9, %v2002_v38 }
 0x227   : > { %4377 = vmatmul.mubr.msk.f32.gmra.mxu1 %vm10218_vm12, %v10183_v63  ;;  %4341 = vmatmul.mubr.msk.f32.gmra.mxu0 %vm10219_vm0, %v10183_v63  ;;  %v4858_v13 = vpop.f32.mrf.mxu1  ;;  %v4772_v62 = vpop.f32.mrf.mxu0  ;;  %vm10228_vm12 = vcmp.eq.s32.totalorder %v10225_v36, %v10192_v15  ;;  %vm10229_vm0 = vcmp.eq.s32.totalorder %v10215_v41, %v10192_v15 }
 0x228   : > { %4378 = vmatprep.mubr.msk.f32.mxu1 %vm10221_vm3, %v10183_v63  ;;  %4342 = vmatprep.mubr.msk.f32.mxu0 %vm10222_vm4, %v10183_v63  ;;  %v2009_v46 = vadd.f32 %v4771_v51, %v8502_v14  ;;  %vm10231_vm3 = vcmp.eq.s32.totalorder %v10230_v45, %v10185_v17  ;;  %vm10232_vm4 = vcmp.eq.s32.totalorder %v10220_v30, %v10185_v17 }
 0x229   : > { %v4859_v33 = vpop.f32.mrf.mxu1  ;;  %v4773_v21 = vpop.f32.mrf.mxu0 }
 0x22a   : > { %v4860_v55 = vadd.f32 %v4859_v33, %v4858_v13  ;;  %v4774_v14 = vadd.f32 %v4773_v21, %v4772_v62  ;;  %v8784_v3 = vadd.f32 %v4851_v40, %v2009_v46 }
 0x22b   : > { %4379 = vmatmul.mubr.msk.f32.gmra.mxu1 %vm10223_vm11, %v10183_v63  ;;  %4343 = vmatmul.mubr.msk.f32.gmra.mxu0 %vm10224_vm7, %v10183_v63  ;;  %v4861_v44 = vpop.f32.mrf.mxu1  ;;  %v4775_v20 = vpop.f32.mrf.mxu0  ;;  %vm10234_vm7 = vcmp.eq.s32.totalorder %v10233_v49, %v10185_v17 }
 0x22c   : > { %4380 = vmatprep.mubr.msk.f32.mxu1 %vm10226_vm8, %v10183_v63  ;;  %4344 = vmatprep.mubr.msk.f32.mxu0 %vm10227_vm13, %v10183_v63  ;;  %v2016_v31 = vadd.f32 %v4774_v14, %v8517_v25  ;;  %vm10235_vm13 = vmmov %vm10228_vm12 }
 0x22d   : > { %v4862_v61 = vpop.f32.mrf.mxu1  ;;  %v4776_v1 = vpop.f32.mrf.mxu0 }
 0x22e   : > { %v4863_v37 = vadd.f32 %v4862_v61, %v4861_v44  ;;  %v4777_v25 = vadd.f32 %v4776_v1, %v4775_v20  ;;  %v8803_v43 = vadd.f32 %v4854_v48, %v2016_v31 }
 0x22f   : > { %4381 = vmatmul.mubr.msk.f32.gmra.mxu1 %vm10228_vm12, %v10183_v63  ;;  %4345 = vmatmul.mubr.msk.f32.gmra.mxu0 %vm10229_vm0, %v10183_v63  ;;  %v4864_v2 = vpop.f32.mrf.mxu1  ;;  %v4778_v47 = vpop.f32.mrf.mxu0  ;;  %vm10237_vm12 = vmmov %vm10231_vm3 }
 0x230   : > { %4382 = vmatprep.mubr.msk.f32.mxu1 %vm10231_vm3, %v10183_v63  ;;  %4346 = vmatprep.mubr.msk.f32.mxu0 %vm10232_vm4, %v10183_v63  ;;  %v2023_v12 = vadd.f32 %v4777_v25, %v8532_v6  ;;  %vm10239_vm0 = vmmov %vm10234_vm7 }
 0x231   : > { %v4865_v9 = vpop.f32.mrf.mxu1  ;;  %v4779_v53 = vpop.f32.mrf.mxu0 }
 0x232   : > { %v4866_v11 = vadd.f32 %v4865_v9, %v4864_v2  ;;  %v4780_v6 = vadd.f32 %v4779_v53, %v4778_v47  ;;  %v8822_v10 = vadd.f32 %v4857_v58, %v2023_v12 }
 0x233   : > { %4383 = vmatmul.mubr.msk.f32.gmra.mxu1 %vm356_vm9, %v10183_v63  ;;  %4347 = vmatmul.mubr.msk.f32.gmra.mxu0 %vm10223_vm11, %v10183_v63  ;;  %v4867_v60 = vpop.f32.mrf.mxu1  ;;  %v4781_v8 = vpop.f32.mrf.mxu0 }
 0x234   : > { %4384 = vmatprep.mubr.msk.f32.mxu1 %vm10234_vm7, %v10183_v63  ;;  %4348 = vmatprep.mubr.msk.f32.mxu0 %vm10226_vm8, %v10183_v63  ;;  %v2030_v0 = vadd.f32 %v4780_v6, %v8547_v26 }
 0x235   : > { %v4868_v40 = vpop.f32.mrf.mxu1  ;;  %v4782_v18 = vpop.f32.mrf.mxu0 }
 0x236   : > { %v4869_v28 = vadd.f32 %v4868_v40, %v4867_v60  ;;  %v4783_v26 = vadd.f32 %v4782_v18, %v4781_v8  ;;  %v8841_v5 = vadd.f32 %v4860_v55, %v2030_v0 }
 0x237   : > { %4385 = vmatmul.mubr.msk.f32.gmra.mxu1 %vm360_vm15, %v10183_v63  ;;  %4349 = vmatmul.mubr.msk.f32.gmra.mxu0 %vm10235_vm13, %v10183_v63  ;;  %v4870_v35 = vpop.f32.mrf.mxu1  ;;  %v4784_v57 = vpop.f32.mrf.mxu0 }
 0x238   : > { %4386 = vmatprep.mubr.msk.f32.mxu1 %vm365_vm1, %v10183_v63  ;;  %4350 = vmatprep.mubr.msk.f32.mxu0 %vm10237_vm12, %v10183_v63  ;;  %v2037_v41 = vadd.f32 %v4783_v26, %v8562_v39 }
 0x239   : > { %v4871_v48 = vpop.f32.mrf.mxu1  ;;  %v4785_v19 = vpop.f32.mrf.mxu0 }
 0x23a   : > { %v4872_v4 = vadd.f32 %v4871_v48, %v4870_v35  ;;  %v4786_v39 = vadd.f32 %v4785_v19, %v4784_v57  ;;  %v8860_v38 = vadd.f32 %v4863_v37, %v2037_v41 }
 0x23b   : > { %4387 = vmatmul.mubr.msk.f32.gmra.mxu1 %vm364_vm2, %v10183_v63  ;;  %4351 = vmatmul.mubr.msk.f32.gmra.mxu0 %vm356_vm9, %v10183_v63  ;;  %v4873_v24 = vpop.f32.mrf.mxu1  ;;  %v4787_v56 = vpop.f32.mrf.mxu0 }
 0x23c   : > { %4388 = vmatprep.mubr.msk.f32.mxu1 %vm369_vm6, %v10183_v63  ;;  %4352 = vmatprep.mubr.msk.f32.mxu0 %vm10239_vm0, %v10183_v63  ;;  %v2044_v30 = vadd.f32 %v4786_v39, %v8577_v32 }
 0x23d   : > { %v4874_v58 = vpop.f32.mrf.mxu1  ;;  %v4788_v51 = vpop.f32.mrf.mxu0 }
 0x23e   : > { %v4875_v62 = vadd.f32 %v4874_v58, %v4873_v24  ;;  %v4789_v32 = vadd.f32 %v4788_v51, %v4787_v56  ;;  %v8879_v46 = vadd.f32 %v4866_v11, %v2044_v30 }
 0x23f   : > { %4389 = vmatmul.mubr.msk.f32.gmra.mxu1 %vm368_vm14, %v10183_v63  ;;  %4353 = vmatmul.mubr.msk.f32.gmra.mxu0 %vm360_vm15, %v10183_v63  ;;  %v4876_v33 = vpop.f32.mrf.mxu1  ;;  %v4790_v36 = vpop.f32.mrf.mxu0 }
 0x240   : > { %4390 = vmatprep.mubr.msk.f32.mxu1 %vm373_vm10, %v10183_v63  ;;  %4354 = vmatprep.mubr.msk.f32.mxu0 %vm365_vm1, %v10183_v63  ;;  %v2051_v21 = vadd.f32 %v4789_v32, %v8593_v22 }
 0x241   : > { %v4877_v55 = vpop.f32.mrf.mxu1  ;;  %v4791_v44 = vpop.f32.mrf.mxu0 }
 0x242   : > { %v4878_v14 = vadd.f32 %v4877_v55, %v4876_v33  ;;  %v8894_v22 = vadd.f32 %v4869_v28, %v2051_v21  ;;  %v4792_v20 = vadd.f32 %v4791_v44, %v4790_v36 }
 0x243   : > { %4391 = vmatmul.mubr.msk.f32.gmra.mxu1 %vm372_vm5, %v10183_v63  ;;  %4355 = vmatmul.mubr.msk.f32.gmra.mxu0 %vm364_vm2, %v10183_v63  ;;  %v4991_v31 = vpop.f32.mrf.mxu1 }
 0x244   : > { %4356 = vmatprep.mubr.msk.f32.mxu0 %vm369_vm6, %v10183_v63  ;;  %v4793_v61 = vpop.f32.mrf.mxu0  ;;  %v2058_v1 = vadd.f32 %v4792_v20, %v8612_v42 }
 0x245   : > { %v4992_v45 = vpop.f32.mrf.mxu1 }
 0x246   : > { %v4794_v37 = vpop.f32.mrf.mxu0  ;;  %v4993_v25 = vadd.f32 %v4992_v45, %v4991_v31  ;;  %v8905_v47 = vadd.f32 %v4872_v4, %v2058_v1 }
 0x247   : > { %4357 = vmatmul.mubr.msk.f32.gmra.mxu0 %vm368_vm14, %v10183_v63  ;;  %v4795_v2 = vadd.f32 %v4794_v37, %v4793_v61 }
 0x248   : > { %4358 = vmatprep.mubr.msk.f32.mxu0 %vm373_vm10, %v10183_v63  ;;  %v4994_v12 = vpop.f32.mrf.mxu1  ;;  %v4796_v9 = vpop.f32.mrf.mxu0 }
 0x249   : > { %v2065_v42 = vadd.f32 %v4795_v2, %v8632_v7 }
 0x24a   : > { %v4995_v53 = vpop.f32.mrf.mxu1  ;;  %v4797_v49 = vpop.f32.mrf.mxu0 }
 0x24b   : > { %4359 = vmatmul.mubr.msk.f32.gmra.mxu0 %vm372_vm5, %v10183_v63  ;;  %v4996_v11 = vadd.f32 %v4995_v53, %v4994_v12  ;;  %v4798_v6 = vadd.f32 %v4797_v49, %v4796_v9  ;;  %v8912_v17 = vadd.f32 %v4875_v62, %v2065_v42 }
 0x24c   : > { %v4997_v60 = vpop.f32.mrf.mxu1  ;;  %v4911_v8 = vpop.f32.mrf.mxu0 }
 0x24d   : > { %v2072_v0 = vadd.f32 %v4798_v6, %v8651_v52 }
 0x24e   : > { %v4998_v40 = vpop.f32.mrf.mxu1  ;;  %v4912_v18 = vpop.f32.mrf.mxu0 }
 0x24f   : > { %v4999_v50 = vadd.f32 %v4998_v40, %v4997_v60  ;;  %v4913_v28 = vadd.f32 %v4912_v18, %v4911_v8  ;;  %v8915_v7 = vadd.f32 %v4878_v14, %v2072_v0 }
 0x250   : > { %v5000_v26 = vpop.f32.mrf.mxu1  ;;  %v4914_v35 = vpop.f32.mrf.mxu0 }
 0x251   : > { %v2393_v63 = vadd.f32 %v4913_v28, %v8670_v34 }
 0x252   : > { %v5001_v15 = vpop.f32.mrf.mxu1  ;;  %v4915_v57 = vpop.f32.mrf.mxu0 }
 0x253   : > { %v5002_v41 = vadd.f32 %v5001_v15, %v5000_v26  ;;  %v4916_v48 = vadd.f32 %v4915_v57, %v4914_v35  ;;  %v8918_v19 = vadd.f32 %v4993_v25, %v2393_v63 }
 0x254   : > { %v5003_v29 = vpop.f32.mrf.mxu1  ;;  %v4917_v4 = vpop.f32.mrf.mxu0 }
 0x255   : > { %v2408_v52 = vadd.f32 %v4916_v48, %v8689_v16 }
 0x256   : > { %v5004_v39 = vpop.f32.mrf.mxu1  ;;  %v4918_v24 = vpop.f32.mrf.mxu0 }
 0x257   : > { %v5005_v56 = vadd.f32 %v5004_v39, %v5003_v29  ;;  %v4919_v30 = vadd.f32 %v4918_v24, %v4917_v4  ;;  %v8921_v58 = vadd.f32 %v4996_v11, %v2408_v52 }
 0x258   : > { %v5006_v51 = vpop.f32.mrf.mxu1  ;;  %v4920_v13 = vpop.f32.mrf.mxu0 }
 0x259   : > { %v2423_v34 = vadd.f32 %v4919_v30, %v8708_v27 }
 0x25a   : > { %v5007_v62 = vpop.f32.mrf.mxu1  ;;  %v4921_v32 = vpop.f32.mrf.mxu0 }
 0x25b   : > { %v5008_v33 = vadd.f32 %v5007_v62, %v5006_v51  ;;  %v4922_v21 = vadd.f32 %v4921_v32, %v4920_v13  ;;  %v8924_v36 = vadd.f32 %v4999_v50, %v2423_v34 }
 0x25c   : > { %v5009_v55 = vpop.f32.mrf.mxu1  ;;  %v4923_v14 = vpop.f32.mrf.mxu0 }
 0x25d   : > { %v2438_v16 = vadd.f32 %v4922_v21, %v8727_v59 }
 0x25e   : > { %v5010_v44 = vpop.f32.mrf.mxu1  ;;  %v4924_v20 = vpop.f32.mrf.mxu0 }
 0x25f   : > { %v5011_v31 = vadd.f32 %v5010_v44, %v5009_v55  ;;  %v4925_v61 = vadd.f32 %v4924_v20, %v4923_v14  ;;  %v8927_v1 = vadd.f32 %v5002_v41, %v2438_v16 }
 0x260   : > { %v5012_v45 = vpop.f32.mrf.mxu1  ;;  %v4926_v37 = vpop.f32.mrf.mxu0 }
 0x261   : > { %v2453_v27 = vadd.f32 %v4925_v61, %v8746_v23 }
 0x262   : > { %v5013_v25 = vpop.f32.mrf.mxu1  ;;  %v4927_v2 = vpop.f32.mrf.mxu0 }
 0x263   : > { %v5014_v12 = vadd.f32 %v5013_v25, %v5012_v45  ;;  %v4928_v9 = vadd.f32 %v4927_v2, %v4926_v37  ;;  %v8930_v42 = vadd.f32 %v5005_v56, %v2453_v27 }
 0x264   : > { %v5015_v53 = vpop.f32.mrf.mxu1  ;;  %v4929_v49 = vpop.f32.mrf.mxu0 }
 0x265   : > { %v2468_v59 = vadd.f32 %v4928_v9, %v8765_v54 }
 0x266   : > { %v5016_v11 = vpop.f32.mrf.mxu1  ;;  %v4930_v6 = vpop.f32.mrf.mxu0 }
 0x267   : > { %v5017_v60 = vadd.f32 %v5016_v11, %v5015_v53  ;;  %v4931_v8 = vadd.f32 %v4930_v6, %v4929_v49  ;;  %v8933_v0 = vadd.f32 %v5008_v33, %v2468_v59 }
 0x268   : > { %v5018_v40 = vpop.f32.mrf.mxu1 }
 0x269   : > { %v4932_v18 = vpop.f32.mrf.mxu0  ;;  %v2483_v23 = vadd.f32 %v4931_v8, %v8784_v3 }
 0x26a   : > { %v5019_v50 = vpop.f32.mrf.mxu1 }
 0x26b   : > { %v4933_v28 = vpop.f32.mrf.mxu0  ;;  %v5020_v26 = vadd.f32 %v5019_v50, %v5018_v40  ;;  %v8936_v63 = vadd.f32 %v5011_v31, %v2483_v23 }
 0x26c   : > { %v4934_v35 = vadd.f32 %v4933_v28, %v4932_v18  ;;  %v5021_v15 = vpop.f32.mrf.mxu1 }
 0x26d   : > { %v4935_v57 = vpop.f32.mrf.mxu0 }
 0x26e   : > { %v2498_v54 = vadd.f32 %v4934_v35, %v8803_v43  ;;  %v5022_v41 = vpop.f32.mrf.mxu1 }
 0x26f   : > { %v4936_v48 = vpop.f32.mrf.mxu0  ;;  %v5023_v29 = vadd.f32 %v5022_v41, %v5021_v15 }
 0x270   : > { %v4937_v4 = vadd.f32 %v4936_v48, %v4935_v57  ;;  %v8939_v52 = vadd.f32 %v5014_v12, %v2498_v54 }
 0x271   : > { %v5024_v39 = vpop.f32.mrf.mxu1  ;;  %v4938_v24 = vpop.f32.mrf.mxu0 }
 0x272   : > { %v2513_v3 = vadd.f32 %v4937_v4, %v8822_v10 }
 0x273   : > { %v5025_v56 = vpop.f32.mrf.mxu1  ;;  %v4939_v30 = vpop.f32.mrf.mxu0 }
 0x274   : > { %v5026_v51 = vadd.f32 %v5025_v56, %v5024_v39  ;;  %v4940_v13 = vadd.f32 %v4939_v30, %v4938_v24  ;;  %v8942_v34 = vadd.f32 %v5017_v60, %v2513_v3 }
 0x275   : > { %v5027_v62 = vpop.f32.mrf.mxu1  ;;  %v4941_v32 = vpop.f32.mrf.mxu0 }
 0x276   : > { %v2528_v43 = vadd.f32 %v4940_v13, %v8841_v5 }
 0x277   : > { %v5028_v33 = vpop.f32.mrf.mxu1  ;;  %v4942_v21 = vpop.f32.mrf.mxu0 }
 0x278   : > { %v5029_v55 = vadd.f32 %v5028_v33, %v5027_v62  ;;  %v4943_v14 = vadd.f32 %v4942_v21, %v4941_v32  ;;  %v8945_v16 = vadd.f32 %v5020_v26, %v2528_v43 }
 0x279   : > { %v5030_v44 = vpop.f32.mrf.mxu1  ;;  %v4944_v20 = vpop.f32.mrf.mxu0 }
 0x27a   : > { %10241 = vst [vmem:[#allocation40_spill] sm:$0xff] %v8945_v16  ;;  %v2543_v10 = vadd.f32 %v4943_v14, %v8860_v38 }
 0x27b   : > { %v5031_v31 = vpop.f32.mrf.mxu1  ;;  %v4945_v61 = vpop.f32.mrf.mxu0 }
 0x27c   : > { %v5032_v45 = vadd.f32 %v5031_v31, %v5030_v44  ;;  %v4946_v37 = vadd.f32 %v4945_v61, %v4944_v20  ;;  %v8948_v27 = vadd.f32 %v5023_v29, %v2543_v10 }
 0x27d   : > { %v5033_v25 = vpop.f32.mrf.mxu1  ;;  %v4947_v2 = vpop.f32.mrf.mxu0 }
 0x27e   : > { %10242 = vst [vmem:[#allocation46_spill] sm:$0xff] %v8948_v27  ;;  %v2558_v5 = vadd.f32 %v4946_v37, %v8879_v46 }
 0x27f   : > { %v5034_v12 = vpop.f32.mrf.mxu1  ;;  %v4948_v9 = vpop.f32.mrf.mxu0 }
 0x280   : > { %v5035_v53 = vadd.f32 %v5034_v12, %v5033_v25  ;;  %v4949_v49 = vadd.f32 %v4948_v9, %v4947_v2  ;;  %v8951_v59 = vadd.f32 %v5026_v51, %v2558_v5 }
 0x281   : > { %v5036_v11 = vpop.f32.mrf.mxu1  ;;  %v4950_v6 = vpop.f32.mrf.mxu0 }
 0x282   : > { %10243 = vst [vmem:[#allocation42_spill] sm:$0xff] %v8951_v59  ;;  %v2573_v38 = vadd.f32 %v4949_v49, %v8894_v22 }
 0x283   : > { %v5037_v60 = vpop.f32.mrf.mxu1  ;;  %v4951_v8 = vpop.f32.mrf.mxu0 }
 0x284   : > { %v5038_v40 = vadd.f32 %v5037_v60, %v5036_v11  ;;  %v4952_v18 = vadd.f32 %v4951_v8, %v4950_v6  ;;  %v8954_v23 = vadd.f32 %v5029_v55, %v2573_v38 }
 0x285   : > { %v4953_v28 = vpop.f32.mrf.mxu0 }
 0x286   : > { %10244 = vst [vmem:[#allocation48_spill] sm:$0xff] %v8954_v23  ;;  %v8956_v50 = vpop.f32.mrf.mxu1  ;;  %v2588_v46 = vadd.f32 %v4952_v18, %v8905_v47 }
 0x287   : > { %v4954_v35 = vpop.f32.mrf.mxu0 }
 0x288   : > { %v8959_v26 = vpop.f32.mrf.mxu1  ;;  %v4955_v15 = vadd.f32 %v4954_v35, %v4953_v28  ;;  %v8961_v57 = vadd.f32 %v5032_v45, %v2588_v46 }
 0x28a   : > { %10245 = vst [vmem:[#allocation50_spill] sm:$0xff] %v8961_v57  ;;  %v8963_v54 = vpop.f32.mrf.mxu1  ;;  %v4956_v22 = vpop.f32.mrf.mxu0  ;;  %v2603_v41 = vadd.f32 %v4955_v15, %v8912_v17 }
 0x28c   : > { %v8966_v48 = vpop.f32.mrf.mxu1  ;;  %v4957_v29 = vpop.f32.mrf.mxu0  ;;  %v8968_v39 = vadd.f32 %v5035_v53, %v2603_v41 }
 0x28d   : > { %v4958_v4 = vadd.f32 %v4957_v29, %v4956_v22 }
 0x28e   : > { %10246 = vst [vmem:[#allocation85_spill] sm:$0xff] %v8968_v39  ;;  %v8970_v24 = vpop.f32.mrf.mxu1  ;;  %v5071_v47 = vpop.f32.mrf.mxu0 }
 0x28f   : > { %v2618_v3 = vadd.f32 %v4958_v4, %v8915_v7 }
 0x290   : > { %v8973_v56 = vpop.f32.mrf.mxu1  ;;  %v5072_v30 = vpop.f32.mrf.mxu0 }
 0x291   : > { %v8975_v51 = vadd.f32 %v5038_v40, %v2618_v3 }
 0x292   : > { %v8977_v13 = vpop.f32.mrf.mxu1  ;;  %v5074_v62 = vpop.f32.mrf.mxu0 }
 0x293   : > { %10247 = vst [vmem:[#allocation86_spill] sm:$0xff] %v8975_v51 }
 0x294   : > { %v8979_v17 = vpop.f32.mrf.mxu1  ;;  %v5075_v32 = vpop.f32.mrf.mxu0 }
 0x296   : > { %v8981_v43 = vpop.f32.mrf.mxu1  ;;  %v8983_v33 = vpop.f32.mrf.mxu0 }
 0x298   : > { %v8985_v21 = vpop.f32.mrf.mxu1  ;;  %v8987_v55 = vpop.f32.mrf.mxu0 }
 0x29a   : > { %v8989_v7 = vpop.f32.mrf.mxu1  ;;  %v8991_v14 = vpop.f32.mrf.mxu0 }
 0x29c   : > { %v8993_v44 = vpop.f32.mrf.mxu1  ;;  %v8995_v20 = vpop.f32.mrf.mxu0 }
 0x29e   : > { %v8997_v10 = vpop.f32.mrf.mxu1  ;;  %v8999_v31 = vpop.f32.mrf.mxu0 }
 0x2a0   : > { %v9001_v61 = vpop.f32.mrf.mxu1  ;;  %v9003_v45 = vpop.f32.mrf.mxu0 }
 0x2a2   : > { %v9005_v37 = vpop.f32.mrf.mxu1  ;;  %v9007_v25 = vpop.f32.mrf.mxu0 }
 0x2a4   : > { %v9009_v2 = vpop.f32.mrf.mxu1  ;;  %v9011_v5 = vpop.f32.mrf.mxu0 }
 0x2a6   : > { %v9013_v12 = vpop.f32.mrf.mxu1  ;;  %v9015_v9 = vpop.f32.mrf.mxu0 }
 0x2a8   : > { %v9017_v53 = vpop.f32.mrf.mxu1  ;;  %v9019_v49 = vpop.f32.mrf.mxu0 }
 0x2aa   : > { %v9021_v11 = vpop.f32.mrf.mxu1  ;;  %v9023_v6 = vpop.f32.mrf.mxu0 }
 0x2ab   : > { %10248 = vst [vmem:[#allocation87_spill] sm:$0xff] %v9021_v11 }
 0x2ac   : > { %v9025_v38 = vpop.f32.mrf.mxu1  ;;  %v9027_v60 = vpop.f32.mrf.mxu0 }
 0x2ad   : > { %10249 = vst [vmem:[#allocation41_spill] sm:$0xff] %v9025_v38 }
 0x2ae   : > { %v9029_v8 = vpop.f32.mrf.mxu1  ;;  %v9031_v40 = vpop.f32.mrf.mxu0 }
 0x2af   : > { %10250 = vst [vmem:[#allocation88_spill] sm:$0xff] %v9029_v8 }
 0x2b0   : > { %v9033_v18 = vpop.f32.mrf.mxu1  ;;  %v9035_v28 = vpop.f32.mrf.mxu0 }
 0x2b1   : > { %10251 = vst [vmem:[#allocation89_spill] sm:$0xff] %v9033_v18 }
 0x2b2   : > { %v9037_v46 = vpop.f32.mrf.mxu1  ;;  %v9039_v35 = vpop.f32.mrf.mxu0 }
 0x2b3   : > { %10252 = vst [vmem:[#allocation49_spill] sm:$0xff] %v9037_v46 }
 0x2b4   : > { %v9041_v15 = vpop.f32.mrf.mxu1  ;;  %v9043_v22 = vpop.f32.mrf.mxu0 }
 0x2b5   : > { %10253 = vst [vmem:[#allocation44_spill] sm:$0xff] %v9041_v15 }
 0x2b6   : > { %v9045_v41 = vpop.f32.mrf.mxu1  ;;  %v9047_v29 = vpop.f32.mrf.mxu0 }
 0x2b7   : > { %10254 = vst [vmem:[#allocation52_spill] sm:$0xff] %v9045_v41  ;;  %10255 = vst [vmem:[#allocation64_spill] sm:$0xff] %v9047_v29 }
 0x2b8   : > { %v9049_v4 = vpop.f32.mrf.mxu1  ;;  %v9051_v3 = vpop.f32.mrf.mxu0 }
 0x2b9   : > { %10256 = vst [vmem:[#allocation14_spill] sm:$0xff] %v9049_v4  ;;  %10257 = vst [vmem:[#allocation53_spill] sm:$0xff] %v9051_v3 }
 0x2ba   : > { %v9053_v51 = vpop.f32.mrf.mxu1  ;;  %v9055_v39 = vpop.f32.mrf.mxu0 }
 0x2bb   : > { %10258 = vst [vmem:[#allocation54_spill] sm:$0xff] %v9053_v51  ;;  %10259 = vst [vmem:[#allocation63_spill] sm:$0xff] %v9055_v39 }
 0x2bc   : > { %v9057_v57 = vpop.f32.mrf.mxu1  ;;  %v9059_v23 = vpop.f32.mrf.mxu0 }
 0x2bd   : > { %10260 = vst [vmem:[#allocation90_spill] sm:$0xff] %v9057_v57  ;;  %10261 = vst [vmem:[#allocation91_spill] sm:$0xff] %v9059_v23 }
 0x2be   : > { %v9061_v46 = vpop.f32.mrf.mxu1  ;;  %v9063_v15 = vpop.f32.mrf.mxu0 }
 0x2bf   : > { %10262 = vst [vmem:[#allocation67_spill] sm:$0xff] %v9061_v46  ;;  %10263 = vst [vmem:[#allocation11_spill] sm:$0xff] %v9063_v15  ;;  %v5073_v15 = vadd.f32 %v5072_v30, %v5071_v47  ;;  %v5079_v47 = vadd.f32 %v8987_v55, %v8983_v33 }
 0x2c0   : > { %v9065_v59 = vpop.f32.mrf.mxu1  ;;  %v9067_v41 = vpop.f32.mrf.mxu0 }
 0x2c1   : > { %10264 = vst [vmem:[#allocation17_spill] sm:$0xff] %v9065_v59  ;;  %10265 = vst [vmem:[#allocation12_spill] sm:$0xff] %v9067_v41  ;;  %v5076_v41 = vadd.f32 %v5075_v32, %v5074_v62 }
 0x2c2   : > { %v9069_v18 = vpop.f32.mrf.mxu1 }
 0x2c3   : > { %10266 = vst [vmem:[#allocation92_spill] sm:$0xff] %v9069_v18  ;;  %v9071_v4 = vpop.f32.mrf.mxu0 }
 0x2c4   : > { %10267 = vst [vmem:[#allocation93_spill] sm:$0xff] %v9071_v4  ;;  %v9073_v51 = vpop.f32.mrf.mxu1  ;;  %v3093_v4 = vadd.f32 %v5073_v15, %v8918_v19  ;;  %v5156_v19 = vadd.f32 %v8966_v48, %v8963_v54 }
 0x2c5   : > { %10268 = vst [vmem:[#allocation16_spill] sm:$0xff] %v9073_v51  ;;  %v9075_v8 = vpop.f32.mrf.mxu0 }
 0x2c6   : > { %10269 = vst [vmem:[#allocation13_spill] sm:$0xff] %v9075_v8  ;;  %v3102_v8 = vadd.f32 %v5076_v41, %v8921_v58  ;;  %v3111_v58 = vadd.f32 %v5079_v47, %v8924_v36  ;;  %v5082_v41 = vadd.f32 %v8995_v20, %v8991_v14  ;;  %v5085_v36 = vadd.f32 %v9003_v45, %v8999_v31 }
 0x2c7   : > { %v5311_v57 = vpop.f32.mrf.mxu1  ;;  %v9077_v39 = vpop.f32.mrf.mxu0  ;;  %v5088_v45 = vadd.f32 %v9011_v5, %v9007_v25  ;;  %v5091_v25 = vadd.f32 %v9019_v49, %v9015_v9 }
 0x2c8   : > { %10270 = vst [vmem:[#allocation19_spill] sm:$0xff] %v9077_v39  ;;  %v5153_v39 = vadd.f32 %v8959_v26, %v8956_v50  ;;  %v3347_v50 = vadd.f32 %v5156_v19, %v3102_v8 }
 0x2c9   : > { %v5312_v23 = vpop.f32.mrf.mxu1  ;;  %v9079_v46 = vpop.f32.mrf.mxu0 }
 0x2ca   : > { %10271 = vst [vmem:[#allocation15_spill] sm:$0xff] %v9079_v46  ;;  %v3336_v30 = vadd.f32 %v5153_v39, %v3093_v4 }
 0x2cb   : > { %v5314_v59 = vpop.f32.mrf.mxu1  ;;  %v9081_v27 = vpop.f32.mrf.mxu0 }
 0x2cc   : > { %10272 = vst [vmem:[#allocation94_spill] sm:$0xff] %v9081_v27 }
 0x2cd   : > { %v5315_v18 = vpop.f32.mrf.mxu1  ;;  %v9083_v38 = vpop.f32.mrf.mxu0 }
 0x2ce   : > { %10273 = vst [vmem:[#allocation95_spill] sm:$0xff] %v9083_v38  ;;  %v5313_v38 = vadd.f32 %v5312_v23, %v5311_v57  ;;  %v5316_v54 = vadd.f32 %v5315_v18, %v5314_v59  ;;  %v5162_v59 = vadd.f32 %v8979_v17, %v8977_v13  ;;  %v3129_v18 = vadd.f32 %v5085_v36, %v8930_v42 }
 0x2cf   : > { %v5317_v51 = vpop.f32.mrf.mxu1  ;;  %v5231_v11 = vpop.f32.mrf.mxu0 }
 0x2d1   : > { %v5318_v46 = vpop.f32.mrf.mxu1  ;;  %v5232_v16 = vpop.f32.mrf.mxu0 }
 0x2d2   : > { %v5233_v62 = vadd.f32 %v5232_v16, %v5231_v11  ;;  %v5159_v16 = vadd.f32 %v8973_v56, %v8970_v24  ;;  %v5319_v24 = vadd.f32 %v5318_v46, %v5317_v51 }
 0x2d3   : > { %v5320_v32 = vpop.f32.mrf.mxu1  ;;  %v5234_v15 = vpop.f32.mrf.mxu0 }
 0x2d4   : > { %v3669_v27 = vadd.f32 %v5233_v62, %v3336_v30  ;;  %v3358_v20 = vadd.f32 %v5159_v16, %v3111_v58  ;;  %v5165_v62 = vadd.f32 %v8985_v21, %v8981_v43  ;;  %v5168_v43 = vadd.f32 %v8993_v44, %v8989_v7 }
 0x2d5   : > { %v5321_v3 = vpop.f32.mrf.mxu1  ;;  %v5235_v26 = vpop.f32.mrf.mxu0 }
 0x2d6   : > { %v3878_v33 = vadd.f32 %v5313_v38, %v3669_v27  ;;  %v5236_v55 = vadd.f32 %v5235_v26, %v5234_v15  ;;  %v3120_v27 = vadd.f32 %v5082_v41, %v8927_v1  ;;  %v5322_v13 = vadd.f32 %v5321_v3, %v5320_v32 }
 0x2d7   : > { %v5323_v29 = vpop.f32.mrf.mxu1  ;;  %v5237_v39 = vpop.f32.mrf.mxu0  ;;  %v3380_v46 = vadd.f32 %v5165_v62, %v3129_v18  ;;  %v5094_v32 = vadd.f32 %v9027_v60, %v9023_v6  ;;  %v5097_v60 = vadd.f32 %v9035_v28, %v9031_v40  ;;  %v5100_v40 = vadd.f32 %v9043_v22, %v9039_v35 }
 0x2d8   : > { %3986 = vst [vmem:[%s9101_s21] sm:$0xff] %v3878_v33  ;;  %v3676_v23 = vadd.f32 %v5236_v55, %v3347_v50  ;;  %v3369_v47 = vadd.f32 %v5162_v59, %v3120_v27  ;;  %v3138_v50 = vadd.f32 %v5088_v45, %v8933_v0  ;;  %v3147_v0 = vadd.f32 %v5091_v25, %v8936_v63 }
 0x2d9   : > { %v5324_v57 = vpop.f32.mrf.mxu1  ;;  %v5238_v48 = vpop.f32.mrf.mxu0  ;;  %v5174_v27 = vadd.f32 %v9009_v2, %v9005_v37  ;;  %v5177_v37 = vadd.f32 %v9017_v53, %v9013_v12 }
 0x2da   : > { %v3885_v14 = vadd.f32 %v5316_v54, %v3676_v23  ;;  %v5239_v11 = vadd.f32 %v5238_v48, %v5237_v39  ;;  %v5325_v21 = vadd.f32 %v5324_v57, %v5323_v29  ;;  %v3391_v9 = vadd.f32 %v5168_v43, %v3138_v50 }
 0x2db   : > { %v5326_v38 = vpop.f32.mrf.mxu1  ;;  %v5240_v8 = vpop.f32.mrf.mxu0  ;;  %v5171_v23 = vadd.f32 %v9001_v61, %v8997_v10  ;;  %v3156_v29 = vadd.f32 %v5094_v32, %v8939_v52  ;;  %v10283_v32 = vld [vmem:[#allocation89_spill] sm:$0xff] }
 0x2dc   : > { %3987 = vst [vmem:[%s9101_s21 + $0x8] sm:$0xff] %v3885_v14  ;;  %v3683_v56 = vadd.f32 %v5239_v11, %v3358_v20 }
 0x2dd   : > { %v5327_v4 = vpop.f32.mrf.mxu1  ;;  %v5241_v31 = vpop.f32.mrf.mxu0  ;;  %v3402_v57 = vadd.f32 %v5171_v23, %v3147_v0  ;;  %v10284_v23 = vld [vmem:[#allocation42_spill] sm:$0xff] }
 0x2de   : > { %v3892_v1 = vadd.f32 %v5319_v24, %v3683_v56  ;;  %v5242_v30 = vadd.f32 %v5241_v31, %v5240_v8  ;;  %v5328_v7 = vadd.f32 %v5327_v4, %v5326_v38  ;;  %v3413_v38 = vadd.f32 %v5174_v27, %v3156_v29  ;;  %v10274_v4 = vld [vmem:[#allocation64_spill] sm:$0xff]  ;;  %v10275_v31 = vld [vmem:[#allocation53_spill] sm:$0xff] }
 0x2df   : > { %v5329_v19 = vpop.f32.mrf.mxu1  ;;  %v5243_v15 = vpop.f32.mrf.mxu0  ;;  %v3165_v8 = vadd.f32 %v5097_v60, %v8942_v34  ;;  %v5103_v45 = vadd.f32 %v10275_v31, %v10274_v4  ;;  %v10276_v34 = vld [vmem:[#allocation40_spill] sm:$0xff]  ;;  %v10293_v4 = vld [vmem:[#allocation14_spill] sm:$0xff] }
 0x2e0   : > { %3988 = vst [vmem:[%s9101_s21 + $0x10] sm:$0xff] %v3892_v1  ;;  %v3690_v51 = vadd.f32 %v5242_v30, %v3369_v47  ;;  %v3174_v30 = vadd.f32 %v5100_v40, %v10276_v34  ;;  %v10286_v29 = vld [vmem:[#allocation12_spill] sm:$0xff] }
 0x2e1   : > { %v5330_v17 = vpop.f32.mrf.mxu1  ;;  %v5244_v42 = vpop.f32.mrf.mxu0  ;;  %v3424_v35 = vadd.f32 %v5177_v37, %v3165_v8  ;;  %v10288_v27 = vld [vmem:[#allocation44_spill] sm:$0xff] }
 0x2e2   : > { %v3899_v5 = vadd.f32 %v5322_v13, %v3690_v51  ;;  %v5245_v26 = vadd.f32 %v5244_v42, %v5243_v15  ;;  %v5331_v10 = vadd.f32 %v5330_v17, %v5329_v19  ;;  %v10277_v13 = vld [vmem:[#allocation87_spill] sm:$0xff]  ;;  %v10278_v51 = vld [vmem:[#allocation41_spill] sm:$0xff]  ;;  %v10291_v40 = vld [vmem:[#allocation48_spill] sm:$0xff] }
 0x2e3   : > { %v5332_v58 = vpop.f32.mrf.mxu1  ;;  %v5246_v41 = vpop.f32.mrf.mxu0  ;;  %v5180_v17 = vadd.f32 %v10278_v51, %v10277_v13 }
 0x2e4   : > { %3989 = vst [vmem:[%s9101_s21 + $0x18] sm:$0xff] %v3899_v5  ;;  %v3697_v3 = vadd.f32 %v5245_v26, %v3380_v46  ;;  %v10279_v46 = vld [vmem:[#allocation46_spill] sm:$0xff]  ;;  %v10280_v5 = vld [vmem:[#allocation63_spill] sm:$0xff] }
 0x2e5   : > { %v5333_v33 = vpop.f32.mrf.mxu1  ;;  %v5247_v55 = vpop.f32.mrf.mxu0  ;;  %v3183_v42 = vadd.f32 %v5103_v45, %v10279_v46  ;;  %v10281_v26 = vld [vmem:[#allocation91_spill] sm:$0xff]  ;;  %v3435_v43 = vadd.f32 %v5180_v17, %v3174_v30  ;;  %v10297_v17 = vld [vmem:[#allocation54_spill] sm:$0xff] }
 0x2e6   : > { %v3906_v39 = vadd.f32 %v5325_v21, %v3697_v3  ;;  %v5248_v49 = vadd.f32 %v5247_v55, %v5246_v41  ;;  %v5334_v2 = vadd.f32 %v5333_v33, %v5332_v58  ;;  %v5106_v58 = vadd.f32 %v10281_v26, %v10280_v5  ;;  %v10282_v3 = vld [vmem:[#allocation88_spill] sm:$0xff]  ;;  %v10299_v26 = vld [vmem:[#allocation85_spill] sm:$0xff] }
 0x2e7   : > { %v5335_v16 = vpop.f32.mrf.mxu1  ;;  %v5249_v54 = vpop.f32.mrf.mxu0  ;;  %v5183_v33 = vadd.f32 %v10283_v32, %v10282_v3 }
 0x2e8   : > { %3990 = vst [vmem:[%s9101_s21 + $0x20] sm:$0xff] %v3906_v39  ;;  %v3704_v44 = vadd.f32 %v5248_v49, %v3391_v9 }
 0x2e9   : > { %v5336_v36 = vpop.f32.mrf.mxu1  ;;  %v5250_v6 = vpop.f32.mrf.mxu0 }
 0x2ea   : > { %v3913_v63 = vadd.f32 %v5328_v7, %v3704_v44  ;;  %v5251_v48 = vadd.f32 %v5250_v6, %v5249_v54  ;;  %v5337_v12 = vadd.f32 %v5336_v36, %v5335_v16  ;;  %v3446_v16 = vadd.f32 %v5183_v33, %v3183_v42  ;;  %v10285_v44 = vld [vmem:[#allocation11_spill] sm:$0xff] }
 0x2eb   : > { %v5338_v14 = vpop.f32.mrf.mxu1  ;;  %v5252_v20 = vpop.f32.mrf.mxu0  ;;  %v3192_v7 = vadd.f32 %v5106_v58, %v10284_v23  ;;  %v5109_v36 = vadd.f32 %v10286_v29, %v10285_v44  ;;  %v10304_v23 = vld [vmem:[#allocation86_spill] sm:$0xff] }
 0x2ec   : > { %3991 = vst [vmem:[%s9101_s21 + $0x28] sm:$0xff] %v3913_v63  ;;  %v3711_v61 = vadd.f32 %v5251_v48, %v3402_v57  ;;  %v10287_v48 = vld [vmem:[#allocation49_spill] sm:$0xff] }
 0x2ed   : > { %v5339_v11 = vpop.f32.mrf.mxu1  ;;  %v5253_v52 = vpop.f32.mrf.mxu0 }
 0x2ee   : > { %v3920_v28 = vadd.f32 %v5331_v10, %v3711_v61  ;;  %v5254_v59 = vadd.f32 %v5253_v52, %v5252_v20  ;;  %v5340_v39 = vadd.f32 %v5339_v11, %v5338_v14  ;;  %v5186_v20 = vadd.f32 %v10288_v27, %v10287_v48  ;;  %v10289_v61 = vld [vmem:[#allocation93_spill] sm:$0xff] }
 0x2ef   : > { %v5341_v24 = vpop.f32.mrf.mxu1  ;;  %v5255_v56 = vpop.f32.mrf.mxu0  ;;  %v10290_v11 = vld [vmem:[#allocation13_spill] sm:$0xff] }
 0x2f0   : > { %3992 = vst [vmem:[%s9101_s21 + $0x30] sm:$0xff] %v3920_v28  ;;  %v3718_v18 = vadd.f32 %v5254_v59, %v3413_v38  ;;  %v5112_v38 = vadd.f32 %v10290_v11, %v10289_v61  ;;  %v3201_v28 = vadd.f32 %v5109_v36, %v10291_v40 }
 0x2f1   : > { %v5342_v1 = vpop.f32.mrf.mxu1  ;;  %v5256_v47 = vpop.f32.mrf.mxu0 }
 0x2f2   : > { %v3927_v62 = vadd.f32 %v5334_v2, %v3718_v18  ;;  %v5257_v22 = vadd.f32 %v5256_v47, %v5255_v56  ;;  %v5343_v10 = vadd.f32 %v5342_v1, %v5341_v24  ;;  %v3457_v56 = vadd.f32 %v5186_v20, %v3192_v7  ;;  %v10292_v18 = vld [vmem:[#allocation52_spill] sm:$0xff]  ;;  %v10294_v1 = vld [vmem:[#allocation50_spill] sm:$0xff] }
 0x2f3   : > { %v5344_v19 = vpop.f32.mrf.mxu1  ;;  %v5258_v15 = vpop.f32.mrf.mxu0  ;;  %v5189_v31 = vadd.f32 %v10293_v4, %v10292_v18  ;;  %v3210_v47 = vadd.f32 %v5112_v38, %v10294_v1 }
 0x2f4   : > { %3993 = vst [vmem:[%s9101_s21 + $0x38] sm:$0xff] %v3927_v62  ;;  %v3725_v53 = vadd.f32 %v5257_v22, %v3424_v35  ;;  %v10295_v62 = vld [vmem:[#allocation19_spill] sm:$0xff] }
 0x2f5   : > { %v5345_v50 = vpop.f32.mrf.mxu1  ;;  %v5259_v25 = vpop.f32.mrf.mxu0  ;;  %v10296_v35 = vld [vmem:[#allocation15_spill] sm:$0xff]  ;;  %v3468_v13 = vadd.f32 %v5189_v31, %v3201_v28 }
 0x2f6   : > { %v3934_v41 = vadd.f32 %v5337_v12, %v3725_v53  ;;  %v5260_v21 = vadd.f32 %v5259_v25, %v5258_v15  ;;  %v5346_v45 = vadd.f32 %v5345_v50, %v5344_v19  ;;  %v5115_v22 = vadd.f32 %v10296_v35, %v10295_v62  ;;  %v10298_v12 = vld [vmem:[#allocation90_spill] sm:$0xff] }
 0x2f7   : > { %v5347_v55 = vpop.f32.mrf.mxu1  ;;  %v5261_v0 = vpop.f32.mrf.mxu0  ;;  %v5192_v53 = vadd.f32 %v10298_v12, %v10297_v17 }
 0x2f8   : > { %3994 = vst [vmem:[%s9101_s21 + $0x40] sm:$0xff] %v3934_v41  ;;  %v3732_v9 = vadd.f32 %v5260_v21, %v3435_v43  ;;  %v3219_v58 = vadd.f32 %v5115_v22, %v10299_v26  ;;  %v10300_v41 = vld [vmem:[#allocation94_spill] sm:$0xff]  ;;  %v10301_v43 = vld [vmem:[#allocation95_spill] sm:$0xff] }
 0x2f9   : > { %v5348_v49 = vpop.f32.mrf.mxu1  ;;  %v5262_v54 = vpop.f32.mrf.mxu0  ;;  %v3479_v25 = vadd.f32 %v5192_v53, %v3210_v47  ;;  %v5118_v21 = vadd.f32 %v10301_v43, %v10300_v41 }
 0x2fa   : > { %v3941_v6 = vadd.f32 %v5340_v39, %v3732_v9  ;;  %v5263_v60 = vadd.f32 %v5262_v54, %v5261_v0  ;;  %v5349_v42 = vadd.f32 %v5348_v49, %v5347_v55  ;;  %v10302_v0 = vld [vmem:[#allocation67_spill] sm:$0xff]  ;;  %v10303_v39 = vld [vmem:[#allocation17_spill] sm:$0xff] }
 0x2fb   : > { %v5350_v63 = vpop.f32.mrf.mxu1  ;;  %v5264_v57 = vpop.f32.mrf.mxu0  ;;  %v5195_v9 = vadd.f32 %v10303_v39, %v10302_v0  ;;  %v3228_v7 = vadd.f32 %v5118_v21, %v10304_v23 }
 0x2fc   : > { %3995 = vst [vmem:[%s9101_s21 + $0x48] sm:$0xff] %v3941_v6  ;;  %v3739_v14 = vadd.f32 %v5263_v60, %v3446_v16  ;;  %v10305_v60 = vld [vmem:[#allocation92_spill] sm:$0xff] }
 0x2fd   : > { %v5351_v52 = vpop.f32.mrf.mxu1  ;;  %v5265_v8 = vpop.f32.mrf.mxu0  ;;  %v3490_v29 = vadd.f32 %v5195_v9, %v3219_v58 }
 0x2fe   : > { %v3948_v59 = vadd.f32 %v5343_v10, %v3739_v14  ;;  %v5266_v37 = vadd.f32 %v5265_v8, %v5264_v57  ;;  %v5352_v55 = vadd.f32 %v5351_v52, %v5350_v63  ;;  %v10306_v57 = vld [vmem:[#allocation16_spill] sm:$0xff] }
 0x2ff   : > { %v5267_v2 = vpop.f32.mrf.mxu0  ;;  %v5353_v34 = vpop.f32.mrf.mxu1  ;;  %v5198_v48 = vadd.f32 %v10306_v57, %v10305_v60 }
 0x300   : > { %3996 = vst [vmem:[%s9101_s21 + $0x50] sm:$0xff] %v3948_v59  ;;  %v3746_v24 = vadd.f32 %v5266_v37, %v3457_v56 }
 0x301   : > { %v5268_v30 = vpop.f32.mrf.mxu0  ;;  %v5354_v50 = vpop.f32.mrf.mxu1  ;;  %v3501_v61 = vadd.f32 %v5198_v48, %v3228_v7 }
 0x302   : > { %v3955_v15 = vadd.f32 %v5346_v45, %v3746_v24  ;;  %v5269_v51 = vadd.f32 %v5268_v30, %v5267_v2  ;;  %v5355_v27 = vadd.f32 %v5354_v50, %v5353_v34 }
 0x303   : > { %v5270_v46 = vpop.f32.mrf.mxu0  ;;  %v5356_v16 = vpop.f32.mrf.mxu1 }
 0x304   : > { %3997 = vst [vmem:[%s9101_s21 + $0x58] sm:$0xff] %v3955_v15  ;;  %v3753_v19 = vadd.f32 %v5269_v51, %v3468_v13 }
 0x305   : > { %v5271_v5 = vpop.f32.mrf.mxu0  ;;  %v5357_v20 = vpop.f32.mrf.mxu1 }
 0x306   : > { %v3962_v3 = vadd.f32 %v5349_v42, %v3753_v19  ;;  %v5272_v32 = vadd.f32 %v5271_v5, %v5270_v46  ;;  %v5358_v38 = vadd.f32 %v5357_v20, %v5356_v16 }
 0x307   : > { %v5273_v33 = vpop.f32.mrf.mxu0 }
 0x308   : > { %3998 = vst [vmem:[%s9101_s21 + $0x60] sm:$0xff] %v3962_v3  ;;  %v3760_v49 = vadd.f32 %v5272_v32, %v3479_v25 }
 0x309   : > { %v5274_v54 = vpop.f32.mrf.mxu0 }
 0x30a   : > { %v3969_v44 = vadd.f32 %v5352_v55, %v3760_v49  ;;  %v5275_v36 = vadd.f32 %v5274_v54, %v5273_v33 }
 0x30b   : > { %v5276_v6 = vpop.f32.mrf.mxu0 }
 0x30c   : > { %3999 = vst [vmem:[%s9101_s21 + $0x68] sm:$0xff] %v3969_v44  ;;  %v3767_v63 = vadd.f32 %v5275_v36, %v3490_v29 }
 0x30d   : > { %v5277_v10 = vpop.f32.mrf.mxu0 }
 0x30e   : > { %v3976_v14 = vadd.f32 %v5355_v27, %v3767_v63  ;;  %v5278_v11 = vadd.f32 %v5277_v10, %v5276_v6 }
 0x310   : > { %4000 = vst [vmem:[%s9101_s21 + $0x70] sm:$0xff] %v3976_v14  ;;  %v3774_v52 = vadd.f32 %v5278_v11, %v3501_v61 }
 0x312   : > { %v3983_v8 = vadd.f32 %v5358_v38, %v3774_v52 }
 0x314   : > { %4001 = vst [vmem:[%s9101_s21 + $0x78] sm:$0xff] %v3983_v8 }
 0x315   : > { %5511 = shalt.err (!%p5508_p0)
}
 0x316   : > { %s5512_s18 = scalar_lea.hbm %s9186_s7, 2048  ;;  %s5516_s21 = scalar_lea.hbm %s9257_s3, 8192 }
 0x317   : > { %p5513_p3 = scmp.ne.s32.totalorder %s9186_s7, %s5512_s18  ;;  %p5517_p4 = scmp.lt.s32.totalorder %s9186_s7, %s9257_s3 }
 0x318   : > { %p5518_p5 = scmp.lt.s32.totalorder %s5516_s21, %s5512_s18 }
 0x319   : > { %p5514_p1 = pnand %p5513_p3, %p5739_p13 }
 0x31a   : > { %p5519_p8 = por %p5518_p5, %p5517_p4 }
 0x31b   : > { %p5515_p6 = pneg %p5514_p1 }
 0x31d   : > { %p5520_p7 = pnand %p5519_p8, %p5515_p6 }
 0x31f   : > { %5523 = shalt.err (!%p5520_p7)
}
 0x320   : > { %s5627_s19 = smov 128   ;;  %s5628_s23 = smov 8  }
 0x321   : > { %5361 = dma.vmem_to_hbm [thread:$0]  (%p5739_p13), %s9189_s26, 2048, %s9186_s7, %s9194_s24, %s5627_s19, %s5627_s19, %s5628_s23  }
 0x322 PF: > { %p5372_p9 = scmp.ge.s32.totalorder %s5618_s22, 2  ;;  %s4033_s6 = sand.u32 1, %s5578_s12  }
 0x323   : > { %s4034_s28 = scalar_lea.sflag [#allocation4], %s4033_s6 }
 0x324   : > { %p5368_p10 = pnand %p5372_p9, %p5744_p2 }
 0x326   : > { %p5369_p11 = pneg %p5368_p10 }
 0x328   : > { %5573 = dma.done.wait (%p5369_p11), %s4034_s28, 2048  }
 0x329   : > { %5575 = vsyncadd (%p5369_p11), %s4034_s28, 4294965248  ;;  %s19_s22 = sadd.s32 1, %s5618_s22   ;;  %s10307_s19 = sld [smem:[#allocation8_spill]] }
 0x32a   : > { %p16_p12 = scmp.ge.s32.totalorder %s19_s22, 6   ;;  %s10308_s9 = sld [smem:[#allocation9_spill]] }
 0x32b   : > { %s10309_s21 = sld [smem:[#allocation10_spill]]  ;;  %s10310_s12 = smov %s5582_s13 }
 0x32c   : > { %s10311_s13 = smov %s5586_s14  ;;  %s10312_s14 = smov %s5737_s8 }
 0x32d   : > { %s10313_s15 = smov %s5594_s16  ;;  %s10314_s16 = smov %s5598_s17 }
 0x32e   : > { %s10315_s17 = smov %s5723_s30  ;;  %s10316_s18 = smov %s5610_s20 }
 0x32f   :  { %18 = sbr.rel (!%p16_p12) target bundleno = 9 (0x9), region = 80 }
 0x330   : > { %s10317_s20 = smov %s10308_s9 }
 0x334   :  { %4039 = vsyncpa [#allocation3], 1 }
 0x335   :  { %4041 = vsyncpa [#allocation3 + $0x1], 1 }
 0x336   :  { %4042 = vsyncpa [#allocation4], 1 }
 0x337   :  { %4044 = vsyncpa [#allocation4 + $0x1], 1 }

</bundles_post_ra>
